<compile_context>
chip_gen: v7x
topology: tpu7x:2x2x1
jax: 0.10.0
libtpu: 0.0.40
codegen_flags: <defaults>
</compile_context>

<pallas_src>
import functools

import jax
import jax.numpy as jnp
from jax import lax
from jax.experimental import pallas as pl
from jax.experimental.pallas import tpu as pltpu

_MASK_VALUE = -9e15  # effectively -inf for masked (non-adjacent) logits


# ---------------------------------------------------------------------------
# Fully fused encoder kernel: one invocation processes the whole batch through
# every [GAT, 1x1-conv] pair. Static Python loops over layers / heads / channels
# (all tiny) keep lowering simple; everything lives in registers/VMEM.
# ---------------------------------------------------------------------------
def _encoder_kernel(h_ref, adj_ref, *rest, cfgs, B, N, slope):
    n_layers = len(cfgs)
    w_refs = rest[:2 * n_layers]
    o_ref = rest[2 * n_layers]

    adj_ok_2d = adj_ref[...] > 0                       # (N, N), shared by all layers

    x0 = h_ref[...]                                    # (B, C0, N, F0)
    x = x0.reshape(-1, x0.shape[-1])                   # (B*C0*N, F0) rows (b,c,n): free

    for li, (C_in, Fin, H, nh, Cout) in enumerate(cfgs):
        out_dim = H * nh
        fw_ref = w_refs[2 * li]                        # (Fin, out_dim + 2H)   VMEM
        cwb_ref = w_refs[2 * li + 1]                   # (Cout, C_in + 1)      SMEM

        # ---- fused projection + per-head src/tgt scores: ONE MXU matmul ----
        proj = jnp.dot(x, fw_ref[...], preferred_element_type=jnp.float32)
        G = B * C_in
        proj = proj.reshape(G, N, out_dim + 2 * H)     # free leading split
        ht3 = proj[:, :, :out_dim]                     # (G, N, out_dim) head values
        tgt = proj[:, :, out_dim + H:]                 # (G, N, H) target scores
        tgt_sw = jnp.swapaxes(tgt, 1, 2)               # (G, H, N): single transpose

        # hoisted: one broadcast of the adjacency mask per layer (not per head)
        adj_ok = jnp.broadcast_to(adj_ok_2d[None, :, :], (G, N, N))
        lane = lax.broadcasted_iota(jnp.int32, (1, 1, out_dim), 2)

        # ---- attention heads: tiny static loop, lane-masked accumulation ----
        agg = jnp.zeros((G, N, out_dim), jnp.float32)
        for h in range(H):
            src_h = proj[:, :, out_dim + h:out_dim + h + 1]        # (G, N, 1)
            e = src_h + tgt_sw[:, h:h + 1, :]                      # (G, N, N)
            e = jnp.where(e > 0, e, slope * e)                     # LeakyReLU
            e = jnp.where(adj_ok, e, _MASK_VALUE)                  # connectivity mask
            e = e - jnp.max(e, axis=-1, keepdims=True)             # stable softmax
            p = jnp.exp(e)
            att = p * pl.reciprocal(jnp.sum(p, axis=-1, keepdims=True),
                                    approx=True)                   # EUP reciprocal
            head_mask = (lane >= h * nh) & (lane < (h + 1) * nh)
            vals = jnp.where(head_mask, ht3, 0.0)                  # head-h lanes only
            agg = agg + jnp.einsum('gnm,gmd->gnd', att, vals,
                                   preferred_element_type=jnp.float32)

        # ---- 1x1 conv: channel mix with SMEM scalar weights (+ folded bias) ----
        agg4 = agg.reshape(B, C_in, N, out_dim)        # free leading split
        ch_out = []
        for o in range(Cout):
            acc = cwb_ref[o, 0] * agg4[:, 0]
            for c in range(1, C_in):
                acc = acc + cwb_ref[o, c] * agg4[:, c]
            ch_out.append(acc + cwb_ref[o, C_in])      # + bias (scalar broadcast)
        x_next = jnp.stack(ch_out, axis=1)             # (B, Cout, N, out_dim)

        if li == n_layers - 1:
            o_ref[...] = x_next                        # single store of the result
        else:
            x = x_next.reshape(B * Cout * N, out_dim)  # free leading merge


# ---------------------------------------------------------------------------
# Wrapper: folds attention vectors into the projection, fuses the weights,
# builds the specs and launches the single pallas_call.
# ---------------------------------------------------------------------------
def gat_encoder_forward(h4, adj, params, leaky_relu_slope=0.2):
    """h4: (B, C0, N, F0), adj: (N, N) -> (B, Cout_last, N, out_dim_last)."""
    B, C0, N, F0 = h4.shape

    cfgs = []
    weight_inputs = []
    in_specs = [
        pl.BlockSpec((B, C0, N, F0), lambda i: (0, 0, 0, 0)),
        pl.BlockSpec((N, N), lambda i: (0, 0)),
    ]
    C_cur, F_cur = C0, F0
    for p in params:
        H, nh = p["n_heads"], p["n_hidden"]
        W = p["W"]                                     # (Fin, H*nh)
        Fin, out_dim = W.shape[0], H * nh
        Cout, C_in = p["conv_w"].shape
        assert C_in == C_cur and Fin == F_cur, "layer config mismatch"

        # fold per-head attention vectors into the projection: Wa[:, h] = W_h @ a_h
        w_heads = W.reshape(Fin, H, nh)
        wa_src = jnp.einsum('fhd,hd->fh', w_heads, p["a_src"])      # (Fin, H)
        wa_tgt = jnp.einsum('fhd,hd->fh', w_heads, p["a_tgt"])      # (Fin, H)
        fused_w = jnp.concatenate([W, wa_src, wa_tgt], axis=1)      # (Fin, od+2H)
        cwb = jnp.concatenate([p["conv_w"], p["conv_b"][:, None]], axis=1)

        weight_inputs += [fused_w, cwb]
        in_specs += [
            pl.BlockSpec(fused_w.shape, lambda i: (0, 0)),
            pl.BlockSpec(memory_space=pltpu.MemorySpace.SMEM),      # scalar weights
        ]
        cfgs.append((C_in, Fin, H, nh, Cout))
        C_cur, F_cur = Cout, out_dim

    Cout_last, od_last = C_cur, F_cur
    kernel = functools.partial(_encoder_kernel, cfgs=tuple(cfgs), B=B, N=N,
                               slope=leaky_relu_slope)

    out = pl.pallas_call(
        kernel,
        out_shape=jax.ShapeDtypeStruct((B, Cout_last, N, od_last), jnp.float32),
        grid_spec=pltpu.PrefetchScalarGridSpec(
            num_scalar_prefetch=0,
            grid=(1,),                                 # whole problem in one step
            in_specs=in_specs,
            out_specs=pl.BlockSpec((B, Cout_last, N, od_last),
                                   lambda i: (0, 0, 0, 0)),
        ),
        compiler_params=pltpu.CompilerParams(
            dimension_semantics=("arbitrary",)),
    )(h4, adj, *weight_inputs)
    return out


# ---------------------------------------------------------------------------
# Parameter init (same parameterization / semantics as the previous revision)
# ---------------------------------------------------------------------------
def init_params(key, GAT_config, channel_config):
    params = []
    for (fin, fout, heads), (cin, cout) in zip(GAT_config, channel_config):
        assert fout % heads == 0, "concat=True requires out_features % n_heads == 0"
        nh = fout // heads
        key, k1, k2, k3, k4 = jax.random.split(key, 5)
        scale_w = (2.0 / (fin + fout)) ** 0.5
        scale_a = (2.0 / (2 * nh + 1)) ** 0.5
        W = scale_w * jax.random.normal(k1, (fin, heads * nh), jnp.float32)
        a = scale_a * jax.random.normal(k2, (heads, 2 * nh), jnp.float32)
        a_src, a_tgt = a[:, :nh], a[:, nh:]
        cw = (1.0 / cin ** 0.5) * jax.random.normal(k3, (cout, cin), jnp.float32)
        cb = (1.0 / cin ** 0.5) * jax.random.normal(k4, (cout,), jnp.float32)
        params.append(dict(W=W, a_src=a_src, a_tgt=a_tgt,
                           n_heads=heads, n_hidden=nh,
                           conv_w=cw, conv_b=cb))
    return params


if __name__ == "__main__":
    key = jax.random.PRNGKey(0)
    k_h, k_adj, k_p = jax.random.split(key, 3)

    # config: GAT_config[i] = (in_features, out_features, n_heads)
    #         channel_config[i] = (in_channels, out_channels) for the 1x1 conv
    GAT_config = [(16, 32, 4), (32, 32, 2)]
    channel_config = [(4, 8), (8, 4)]

    B, N = 2, 8
    C0, Fin0 = channel_config[0][0], GAT_config[0][0]

    h = jax.random.normal(k_h, (B, C0, N, Fin0), jnp.float32)      # (2, 4, 8, 16)
    adj = (jax.random.uniform(k_adj, (N, N)) > 0.5).astype(jnp.float32)
    adj = jnp.maximum(adj, jnp.eye(N, dtype=jnp.float32))          # self loops

    params = init_params(k_p, GAT_config, channel_config)

    out = gat_encoder_forward(h, adj, params)
    jax.block_until_ready(out)

    expected_shape = (B, channel_config[-1][1], N, GAT_config[-1][1])
    assert out.shape == expected_shape, (out.shape, expected_shape)
    assert bool(jnp.all(jnp.isfinite(out)))
    print("KERNEL_OK")
</pallas_src>

<mosaic_0001>
module attributes {stable_mosaic.version = 11 : i64} {
  func.func @_encoder_kernel(%arg0: i32, %arg1: memref<2x4x8x16xf32, #tpu.memory_space<vmem>>, %arg2: memref<8x8xf32, #tpu.memory_space<vmem>>, %arg3: memref<16x40xf32, #tpu.memory_space<vmem>>, %arg4: memref<8x5xf32, #tpu.memory_space<smem>>, %arg5: memref<32x36xf32, #tpu.memory_space<vmem>>, %arg6: memref<4x9xf32, #tpu.memory_space<smem>>, %arg7: memref<2x4x8x32xf32, #tpu.memory_space<vmem>>) attributes {dimension_semantics = [#tpu.dimension_semantics<arbitrary>], iteration_bounds = array<i64: 1>, scalar_prefetch = 0 : i64, scratch_operands = 0 : i64, tpu.core_type = #tpu.core_type<tc>, window_params = [{pipeline_mode = #tpu.pipeline_mode<synchronous>, transform_indices = @transform_0, window_bounds = array<i64: 2, 4, 8, 16>}, {pipeline_mode = #tpu.pipeline_mode<synchronous>, transform_indices = @transform_1, window_bounds = array<i64: 8, 8>}, {pipeline_mode = #tpu.pipeline_mode<synchronous>, transform_indices = @transform_2, window_bounds = array<i64: 16, 40>}, {transform_indices = @transform_3, window_bounds = array<i64: 8, 5>}, {pipeline_mode = #tpu.pipeline_mode<synchronous>, transform_indices = @transform_4, window_bounds = array<i64: 32, 36>}, {transform_indices = @transform_5, window_bounds = array<i64: 4, 9>}, {pipeline_mode = #tpu.pipeline_mode<synchronous>, transform_indices = @transform_6, window_bounds = array<i64: 2, 4, 8, 32>}]} {
    %c0 = arith.constant 0 : index
    %c0_0 = arith.constant 0 : index
    %0 = vector.load %arg2[%c0, %c0_0] : memref<8x8xf32, #tpu.memory_space<vmem>>, vector<8x8xf32>
    %cst = arith.constant 0.000000e+00 : f32
    %1 = vector.broadcast %cst : f32 to vector<8x8xf32>
    %2 = arith.cmpf ogt, %0, %1 : vector<8x8xf32>
    %c0_1 = arith.constant 0 : index
    %c0_2 = arith.constant 0 : index
    %c0_3 = arith.constant 0 : index
    %c0_4 = arith.constant 0 : index
    %3 = vector.load %arg1[%c0_1, %c0_2, %c0_3, %c0_4] : memref<2x4x8x16xf32, #tpu.memory_space<vmem>>, vector<2x4x8x16xf32>
    %4 = vector.shape_cast %3 : vector<2x4x8x16xf32> to vector<64x16xf32>
    %c0_5 = arith.constant 0 : index
    %c0_6 = arith.constant 0 : index
    %5 = vector.load %arg3[%c0_5, %c0_6] : memref<16x40xf32, #tpu.memory_space<vmem>>, vector<16x40xf32>
    %cst_7 = arith.constant dense<0.000000e+00> : vector<64x40xf32>
    %6 = tpu.matmul %4, %5, %cst_7 {dimension_numbers = #tpu.dot_dimension_numbers<[1], [0], [0], [1], [0, 0, 1, 1], [], []>} : vector<64x16xf32>, vector<16x40xf32>, vector<64x40xf32> -> vector<64x40xf32>
    %7 = vector.shape_cast %6 : vector<64x40xf32> to vector<8x8x40xf32>
    %8 = vector.extract_strided_slice %7 {offsets = [0, 0, 0], sizes = [8, 8, 32], strides = [1, 1, 1]} : vector<8x8x40xf32> to vector<8x8x32xf32>
    %9 = vector.extract_strided_slice %7 {offsets = [0, 0, 36], sizes = [8, 8, 4], strides = [1, 1, 1]} : vector<8x8x40xf32> to vector<8x8x4xf32>
    %10 = tpu.transpose %9, [0, 2, 1] : vector<8x8x4xf32> -> vector<8x4x8xf32>
    %11 = vector.shape_cast %2 : vector<8x8xi1> to vector<1x8x8xi1>
    %12 = vector.shape_cast %11 : vector<1x8x8xi1> to vector<1x8x8xi1>
    %13 = vector.broadcast %12 : vector<1x8x8xi1> to vector<8x8x8xi1>
    %14 = tpu.iota {dimensions = array<i32: 2>} : vector<1x1x32xi32>
    %cst_8 = arith.constant 0.000000e+00 : f32
    %15 = vector.broadcast %cst_8 : f32 to vector<8x8x32xf32>
    %16 = vector.extract_strided_slice %7 {offsets = [0, 0, 32], sizes = [8, 8, 1], strides = [1, 1, 1]} : vector<8x8x40xf32> to vector<8x8x1xf32>
    %17 = vector.extract_strided_slice %10 {offsets = [0, 0, 0], sizes = [8, 1, 8], strides = [1, 1, 1]} : vector<8x4x8xf32> to vector<8x1x8xf32>
    %18 = vector.broadcast %16 : vector<8x8x1xf32> to vector<8x8x8xf32>
    %19 = vector.broadcast %17 : vector<8x1x8xf32> to vector<8x8x8xf32>
    %20 = arith.addf %18, %19 : vector<8x8x8xf32>
    %cst_9 = arith.constant 0.000000e+00 : f32
    %21 = vector.broadcast %cst_9 : f32 to vector<8x8x8xf32>
    %22 = arith.cmpf ogt, %20, %21 : vector<8x8x8xf32>
    %cst_10 = arith.constant 2.000000e-01 : f32
    %23 = vector.broadcast %cst_10 : f32 to vector<8x8x8xf32>
    %24 = arith.mulf %23, %20 : vector<8x8x8xf32>
    %25 = arith.select %22, %20, %24 : vector<8x8x8xi1>, vector<8x8x8xf32>
    %cst_11 = arith.constant -9.000000e+15 : f32
    %26 = vector.broadcast %cst_11 : f32 to vector<8x8x8xf32>
    %27 = arith.select %13, %25, %26 : vector<8x8x8xi1>, vector<8x8x8xf32>
    %cst_12 = arith.constant dense<0xFF800000> : vector<8x8xf32>
    %28 = vector.multi_reduction <maximumf>, %27, %cst_12 [2] : vector<8x8x8xf32> to vector<8x8xf32>
    %29 = vector.shape_cast %28 : vector<8x8xf32> to vector<8x8x1xf32>
    %30 = vector.broadcast %29 : vector<8x8x1xf32> to vector<8x8x8xf32>
    %31 = arith.subf %27, %30 : vector<8x8x8xf32>
    %32 = math.exp %31 : vector<8x8x8xf32>
    %cst_13 = arith.constant dense<0.000000e+00> : vector<8x8xf32>
    %33 = vector.multi_reduction <add>, %32, %cst_13 [2] : vector<8x8x8xf32> to vector<8x8xf32>
    %34 = vector.shape_cast %33 : vector<8x8xf32> to vector<8x8x1xf32>
    %35 = tpu.reciprocal %34 {approx = true} : vector<8x8x1xf32> -> vector<8x8x1xf32>
    %36 = vector.broadcast %35 : vector<8x8x1xf32> to vector<8x8x8xf32>
    %37 = arith.mulf %32, %36 : vector<8x8x8xf32>
    %c0_i32 = arith.constant 0 : i32
    %38 = vector.broadcast %c0_i32 : i32 to vector<1x1x32xi32>
    %39 = arith.cmpi sge, %14, %38 : vector<1x1x32xi32>
    %c8_i32 = arith.constant 8 : i32
    %40 = vector.broadcast %c8_i32 : i32 to vector<1x1x32xi32>
    %41 = arith.cmpi slt, %14, %40 : vector<1x1x32xi32>
    %42 = arith.andi %39, %41 : vector<1x1x32xi1>
    %cst_14 = arith.constant 0.000000e+00 : f32
    %43 = vector.shape_cast %42 : vector<1x1x32xi1> to vector<1x1x32xi1>
    %44 = vector.broadcast %43 : vector<1x1x32xi1> to vector<8x8x32xi1>
    %45 = vector.broadcast %cst_14 : f32 to vector<8x8x32xf32>
    %46 = arith.select %44, %8, %45 : vector<8x8x32xi1>, vector<8x8x32xf32>
    "tpu.trace_start"() <{level = 10 : i32, message = "gnm,gmd->gnd"}> : () -> ()
    %cst_15 = arith.constant dense<0.000000e+00> : vector<8x8x32xf32>
    %47 = tpu.matmul %37, %46, %cst_15 {dimension_numbers = #tpu.dot_dimension_numbers<[2], [1], [1], [2], [0, 0, 0, 1, 1, 2], [0], [0]>} : vector<8x8x8xf32>, vector<8x8x32xf32>, vector<8x8x32xf32> -> vector<8x8x32xf32>
    "tpu.trace_stop"() : () -> ()
    %48 = arith.addf %15, %47 : vector<8x8x32xf32>
    %49 = vector.extract_strided_slice %7 {offsets = [0, 0, 33], sizes = [8, 8, 1], strides = [1, 1, 1]} : vector<8x8x40xf32> to vector<8x8x1xf32>
    %50 = vector.extract_strided_slice %10 {offsets = [0, 1, 0], sizes = [8, 1, 8], strides = [1, 1, 1]} : vector<8x4x8xf32> to vector<8x1x8xf32>
    %51 = vector.broadcast %49 : vector<8x8x1xf32> to vector<8x8x8xf32>
    %52 = vector.broadcast %50 : vector<8x1x8xf32> to vector<8x8x8xf32>
    %53 = arith.addf %51, %52 : vector<8x8x8xf32>
    %cst_16 = arith.constant 0.000000e+00 : f32
    %54 = vector.broadcast %cst_16 : f32 to vector<8x8x8xf32>
    %55 = arith.cmpf ogt, %53, %54 : vector<8x8x8xf32>
    %cst_17 = arith.constant 2.000000e-01 : f32
    %56 = vector.broadcast %cst_17 : f32 to vector<8x8x8xf32>
    %57 = arith.mulf %56, %53 : vector<8x8x8xf32>
    %58 = arith.select %55, %53, %57 : vector<8x8x8xi1>, vector<8x8x8xf32>
    %cst_18 = arith.constant -9.000000e+15 : f32
    %59 = vector.broadcast %cst_18 : f32 to vector<8x8x8xf32>
    %60 = arith.select %13, %58, %59 : vector<8x8x8xi1>, vector<8x8x8xf32>
    %cst_19 = arith.constant dense<0xFF800000> : vector<8x8xf32>
    %61 = vector.multi_reduction <maximumf>, %60, %cst_19 [2] : vector<8x8x8xf32> to vector<8x8xf32>
    %62 = vector.shape_cast %61 : vector<8x8xf32> to vector<8x8x1xf32>
    %63 = vector.broadcast %62 : vector<8x8x1xf32> to vector<8x8x8xf32>
    %64 = arith.subf %60, %63 : vector<8x8x8xf32>
    %65 = math.exp %64 : vector<8x8x8xf32>
    %cst_20 = arith.constant dense<0.000000e+00> : vector<8x8xf32>
    %66 = vector.multi_reduction <add>, %65, %cst_20 [2] : vector<8x8x8xf32> to vector<8x8xf32>
    %67 = vector.shape_cast %66 : vector<8x8xf32> to vector<8x8x1xf32>
    %68 = tpu.reciprocal %67 {approx = true} : vector<8x8x1xf32> -> vector<8x8x1xf32>
    %69 = vector.broadcast %68 : vector<8x8x1xf32> to vector<8x8x8xf32>
    %70 = arith.mulf %65, %69 : vector<8x8x8xf32>
    %c8_i32_21 = arith.constant 8 : i32
    %71 = vector.broadcast %c8_i32_21 : i32 to vector<1x1x32xi32>
    %72 = arith.cmpi sge, %14, %71 : vector<1x1x32xi32>
    %c16_i32 = arith.constant 16 : i32
    %73 = vector.broadcast %c16_i32 : i32 to vector<1x1x32xi32>
    %74 = arith.cmpi slt, %14, %73 : vector<1x1x32xi32>
    %75 = arith.andi %72, %74 : vector<1x1x32xi1>
    %cst_22 = arith.constant 0.000000e+00 : f32
    %76 = vector.shape_cast %75 : vector<1x1x32xi1> to vector<1x1x32xi1>
    %77 = vector.broadcast %76 : vector<1x1x32xi1> to vector<8x8x32xi1>
    %78 = vector.broadcast %cst_22 : f32 to vector<8x8x32xf32>
    %79 = arith.select %77, %8, %78 : vector<8x8x32xi1>, vector<8x8x32xf32>
    "tpu.trace_start"() <{level = 10 : i32, message = "gnm,gmd->gnd"}> : () -> ()
    %cst_23 = arith.constant dense<0.000000e+00> : vector<8x8x32xf32>
    %80 = tpu.matmul %70, %79, %cst_23 {dimension_numbers = #tpu.dot_dimension_numbers<[2], [1], [1], [2], [0, 0, 0, 1, 1, 2], [0], [0]>} : vector<8x8x8xf32>, vector<8x8x32xf32>, vector<8x8x32xf32> -> vector<8x8x32xf32>
    "tpu.trace_stop"() : () -> ()
    %81 = arith.addf %48, %80 : vector<8x8x32xf32>
    %82 = vector.extract_strided_slice %7 {offsets = [0, 0, 34], sizes = [8, 8, 1], strides = [1, 1, 1]} : vector<8x8x40xf32> to vector<8x8x1xf32>
    %83 = vector.extract_strided_slice %10 {offsets = [0, 2, 0], sizes = [8, 1, 8], strides = [1, 1, 1]} : vector<8x4x8xf32> to vector<8x1x8xf32>
    %84 = vector.broadcast %82 : vector<8x8x1xf32> to vector<8x8x8xf32>
    %85 = vector.broadcast %83 : vector<8x1x8xf32> to vector<8x8x8xf32>
    %86 = arith.addf %84, %85 : vector<8x8x8xf32>
    %cst_24 = arith.constant 0.000000e+00 : f32
    %87 = vector.broadcast %cst_24 : f32 to vector<8x8x8xf32>
    %88 = arith.cmpf ogt, %86, %87 : vector<8x8x8xf32>
    %cst_25 = arith.constant 2.000000e-01 : f32
    %89 = vector.broadcast %cst_25 : f32 to vector<8x8x8xf32>
    %90 = arith.mulf %89, %86 : vector<8x8x8xf32>
    %91 = arith.select %88, %86, %90 : vector<8x8x8xi1>, vector<8x8x8xf32>
    %cst_26 = arith.constant -9.000000e+15 : f32
    %92 = vector.broadcast %cst_26 : f32 to vector<8x8x8xf32>
    %93 = arith.select %13, %91, %92 : vector<8x8x8xi1>, vector<8x8x8xf32>
    %cst_27 = arith.constant dense<0xFF800000> : vector<8x8xf32>
    %94 = vector.multi_reduction <maximumf>, %93, %cst_27 [2] : vector<8x8x8xf32> to vector<8x8xf32>
    %95 = vector.shape_cast %94 : vector<8x8xf32> to vector<8x8x1xf32>
    %96 = vector.broadcast %95 : vector<8x8x1xf32> to vector<8x8x8xf32>
    %97 = arith.subf %93, %96 : vector<8x8x8xf32>
    %98 = math.exp %97 : vector<8x8x8xf32>
    %cst_28 = arith.constant dense<0.000000e+00> : vector<8x8xf32>
    %99 = vector.multi_reduction <add>, %98, %cst_28 [2] : vector<8x8x8xf32> to vector<8x8xf32>
    %100 = vector.shape_cast %99 : vector<8x8xf32> to vector<8x8x1xf32>
    %101 = tpu.reciprocal %100 {approx = true} : vector<8x8x1xf32> -> vector<8x8x1xf32>
    %102 = vector.broadcast %101 : vector<8x8x1xf32> to vector<8x8x8xf32>
    %103 = arith.mulf %98, %102 : vector<8x8x8xf32>
    %c16_i32_29 = arith.constant 16 : i32
    %104 = vector.broadcast %c16_i32_29 : i32 to vector<1x1x32xi32>
    %105 = arith.cmpi sge, %14, %104 : vector<1x1x32xi32>
    %c24_i32 = arith.constant 24 : i32
    %106 = vector.broadcast %c24_i32 : i32 to vector<1x1x32xi32>
    %107 = arith.cmpi slt, %14, %106 : vector<1x1x32xi32>
    %108 = arith.andi %105, %107 : vector<1x1x32xi1>
    %cst_30 = arith.constant 0.000000e+00 : f32
    %109 = vector.shape_cast %108 : vector<1x1x32xi1> to vector<1x1x32xi1>
    %110 = vector.broadcast %109 : vector<1x1x32xi1> to vector<8x8x32xi1>
    %111 = vector.broadcast %cst_30 : f32 to vector<8x8x32xf32>
    %112 = arith.select %110, %8, %111 : vector<8x8x32xi1>, vector<8x8x32xf32>
    "tpu.trace_start"() <{level = 10 : i32, message = "gnm,gmd->gnd"}> : () -> ()
    %cst_31 = arith.constant dense<0.000000e+00> : vector<8x8x32xf32>
    %113 = tpu.matmul %103, %112, %cst_31 {dimension_numbers = #tpu.dot_dimension_numbers<[2], [1], [1], [2], [0, 0, 0, 1, 1, 2], [0], [0]>} : vector<8x8x8xf32>, vector<8x8x32xf32>, vector<8x8x32xf32> -> vector<8x8x32xf32>
    "tpu.trace_stop"() : () -> ()
    %114 = arith.addf %81, %113 : vector<8x8x32xf32>
    %115 = vector.extract_strided_slice %7 {offsets = [0, 0, 35], sizes = [8, 8, 1], strides = [1, 1, 1]} : vector<8x8x40xf32> to vector<8x8x1xf32>
    %116 = vector.extract_strided_slice %10 {offsets = [0, 3, 0], sizes = [8, 1, 8], strides = [1, 1, 1]} : vector<8x4x8xf32> to vector<8x1x8xf32>
    %117 = vector.broadcast %115 : vector<8x8x1xf32> to vector<8x8x8xf32>
    %118 = vector.broadcast %116 : vector<8x1x8xf32> to vector<8x8x8xf32>
    %119 = arith.addf %117, %118 : vector<8x8x8xf32>
    %cst_32 = arith.constant 0.000000e+00 : f32
    %120 = vector.broadcast %cst_32 : f32 to vector<8x8x8xf32>
    %121 = arith.cmpf ogt, %119, %120 : vector<8x8x8xf32>
    %cst_33 = arith.constant 2.000000e-01 : f32
    %122 = vector.broadcast %cst_33 : f32 to vector<8x8x8xf32>
    %123 = arith.mulf %122, %119 : vector<8x8x8xf32>
    %124 = arith.select %121, %119, %123 : vector<8x8x8xi1>, vector<8x8x8xf32>
    %cst_34 = arith.constant -9.000000e+15 : f32
    %125 = vector.broadcast %cst_34 : f32 to vector<8x8x8xf32>
    %126 = arith.select %13, %124, %125 : vector<8x8x8xi1>, vector<8x8x8xf32>
    %cst_35 = arith.constant dense<0xFF800000> : vector<8x8xf32>
    %127 = vector.multi_reduction <maximumf>, %126, %cst_35 [2] : vector<8x8x8xf32> to vector<8x8xf32>
    %128 = vector.shape_cast %127 : vector<8x8xf32> to vector<8x8x1xf32>
    %129 = vector.broadcast %128 : vector<8x8x1xf32> to vector<8x8x8xf32>
    %130 = arith.subf %126, %129 : vector<8x8x8xf32>
    %131 = math.exp %130 : vector<8x8x8xf32>
    %cst_36 = arith.constant dense<0.000000e+00> : vector<8x8xf32>
    %132 = vector.multi_reduction <add>, %131, %cst_36 [2] : vector<8x8x8xf32> to vector<8x8xf32>
    %133 = vector.shape_cast %132 : vector<8x8xf32> to vector<8x8x1xf32>
    %134 = tpu.reciprocal %133 {approx = true} : vector<8x8x1xf32> -> vector<8x8x1xf32>
    %135 = vector.broadcast %134 : vector<8x8x1xf32> to vector<8x8x8xf32>
    %136 = arith.mulf %131, %135 : vector<8x8x8xf32>
    %c24_i32_37 = arith.constant 24 : i32
    %137 = vector.broadcast %c24_i32_37 : i32 to vector<1x1x32xi32>
    %138 = arith.cmpi sge, %14, %137 : vector<1x1x32xi32>
    %c32_i32 = arith.constant 32 : i32
    %139 = vector.broadcast %c32_i32 : i32 to vector<1x1x32xi32>
    %140 = arith.cmpi slt, %14, %139 : vector<1x1x32xi32>
    %141 = arith.andi %138, %140 : vector<1x1x32xi1>
    %cst_38 = arith.constant 0.000000e+00 : f32
    %142 = vector.shape_cast %141 : vector<1x1x32xi1> to vector<1x1x32xi1>
    %143 = vector.broadcast %142 : vector<1x1x32xi1> to vector<8x8x32xi1>
    %144 = vector.broadcast %cst_38 : f32 to vector<8x8x32xf32>
    %145 = arith.select %143, %8, %144 : vector<8x8x32xi1>, vector<8x8x32xf32>
    "tpu.trace_start"() <{level = 10 : i32, message = "gnm,gmd->gnd"}> : () -> ()
    %cst_39 = arith.constant dense<0.000000e+00> : vector<8x8x32xf32>
    %146 = tpu.matmul %136, %145, %cst_39 {dimension_numbers = #tpu.dot_dimension_numbers<[2], [1], [1], [2], [0, 0, 0, 1, 1, 2], [0], [0]>} : vector<8x8x8xf32>, vector<8x8x32xf32>, vector<8x8x32xf32> -> vector<8x8x32xf32>
    "tpu.trace_stop"() : () -> ()
    %147 = arith.addf %114, %146 : vector<8x8x32xf32>
    %148 = vector.shape_cast %147 : vector<8x8x32xf32> to vector<2x4x8x32xf32>
    %c0_40 = arith.constant 0 : index
    %c0_41 = arith.constant 0 : index
    %149 = memref.load %arg4[%c0_40, %c0_41] : memref<8x5xf32, #tpu.memory_space<smem>>
    %150 = vector.extract_strided_slice %148 {offsets = [0, 0, 0, 0], sizes = [2, 1, 8, 32], strides = [1, 1, 1, 1]} : vector<2x4x8x32xf32> to vector<2x1x8x32xf32>
    %151 = vector.shape_cast %150 : vector<2x1x8x32xf32> to vector<2x8x32xf32>
    %152 = vector.broadcast %149 : f32 to vector<2x8x32xf32>
    %153 = arith.mulf %152, %151 : vector<2x8x32xf32>
    %c0_42 = arith.constant 0 : index
    %c1 = arith.constant 1 : index
    %154 = memref.load %arg4[%c0_42, %c1] : memref<8x5xf32, #tpu.memory_space<smem>>
    %155 = vector.extract_strided_slice %148 {offsets = [0, 1, 0, 0], sizes = [2, 1, 8, 32], strides = [1, 1, 1, 1]} : vector<2x4x8x32xf32> to vector<2x1x8x32xf32>
    %156 = vector.shape_cast %155 : vector<2x1x8x32xf32> to vector<2x8x32xf32>
    %157 = vector.broadcast %154 : f32 to vector<2x8x32xf32>
    %158 = arith.mulf %157, %156 : vector<2x8x32xf32>
    %159 = arith.addf %153, %158 : vector<2x8x32xf32>
    %c0_43 = arith.constant 0 : index
    %c2 = arith.constant 2 : index
    %160 = memref.load %arg4[%c0_43, %c2] : memref<8x5xf32, #tpu.memory_space<smem>>
    %161 = vector.extract_strided_slice %148 {offsets = [0, 2, 0, 0], sizes = [2, 1, 8, 32], strides = [1, 1, 1, 1]} : vector<2x4x8x32xf32> to vector<2x1x8x32xf32>
    %162 = vector.shape_cast %161 : vector<2x1x8x32xf32> to vector<2x8x32xf32>
    %163 = vector.broadcast %160 : f32 to vector<2x8x32xf32>
    %164 = arith.mulf %163, %162 : vector<2x8x32xf32>
    %165 = arith.addf %159, %164 : vector<2x8x32xf32>
    %c0_44 = arith.constant 0 : index
    %c3 = arith.constant 3 : index
    %166 = memref.load %arg4[%c0_44, %c3] : memref<8x5xf32, #tpu.memory_space<smem>>
    %167 = vector.extract_strided_slice %148 {offsets = [0, 3, 0, 0], sizes = [2, 1, 8, 32], strides = [1, 1, 1, 1]} : vector<2x4x8x32xf32> to vector<2x1x8x32xf32>
    %168 = vector.shape_cast %167 : vector<2x1x8x32xf32> to vector<2x8x32xf32>
    %169 = vector.broadcast %166 : f32 to vector<2x8x32xf32>
    %170 = arith.mulf %169, %168 : vector<2x8x32xf32>
    %171 = arith.addf %165, %170 : vector<2x8x32xf32>
    %c0_45 = arith.constant 0 : index
    %c4 = arith.constant 4 : index
    %172 = memref.load %arg4[%c0_45, %c4] : memref<8x5xf32, #tpu.memory_space<smem>>
    %173 = vector.broadcast %172 : f32 to vector<2x8x32xf32>
    %174 = arith.addf %171, %173 : vector<2x8x32xf32>
    %c1_46 = arith.constant 1 : index
    %c0_47 = arith.constant 0 : index
    %175 = memref.load %arg4[%c1_46, %c0_47] : memref<8x5xf32, #tpu.memory_space<smem>>
    %176 = vector.extract_strided_slice %148 {offsets = [0, 0, 0, 0], sizes = [2, 1, 8, 32], strides = [1, 1, 1, 1]} : vector<2x4x8x32xf32> to vector<2x1x8x32xf32>
    %177 = vector.shape_cast %176 : vector<2x1x8x32xf32> to vector<2x8x32xf32>
    %178 = vector.broadcast %175 : f32 to vector<2x8x32xf32>
    %179 = arith.mulf %178, %177 : vector<2x8x32xf32>
    %c1_48 = arith.constant 1 : index
    %c1_49 = arith.constant 1 : index
    %180 = memref.load %arg4[%c1_48, %c1_49] : memref<8x5xf32, #tpu.memory_space<smem>>
    %181 = vector.extract_strided_slice %148 {offsets = [0, 1, 0, 0], sizes = [2, 1, 8, 32], strides = [1, 1, 1, 1]} : vector<2x4x8x32xf32> to vector<2x1x8x32xf32>
    %182 = vector.shape_cast %181 : vector<2x1x8x32xf32> to vector<2x8x32xf32>
    %183 = vector.broadcast %180 : f32 to vector<2x8x32xf32>
    %184 = arith.mulf %183, %182 : vector<2x8x32xf32>
    %185 = arith.addf %179, %184 : vector<2x8x32xf32>
    %c1_50 = arith.constant 1 : index
    %c2_51 = arith.constant 2 : index
    %186 = memref.load %arg4[%c1_50, %c2_51] : memref<8x5xf32, #tpu.memory_space<smem>>
    %187 = vector.extract_strided_slice %148 {offsets = [0, 2, 0, 0], sizes = [2, 1, 8, 32], strides = [1, 1, 1, 1]} : vector<2x4x8x32xf32> to vector<2x1x8x32xf32>
    %188 = vector.shape_cast %187 : vector<2x1x8x32xf32> to vector<2x8x32xf32>
    %189 = vector.broadcast %186 : f32 to vector<2x8x32xf32>
    %190 = arith.mulf %189, %188 : vector<2x8x32xf32>
    %191 = arith.addf %185, %190 : vector<2x8x32xf32>
    %c1_52 = arith.constant 1 : index
    %c3_53 = arith.constant 3 : index
    %192 = memref.load %arg4[%c1_52, %c3_53] : memref<8x5xf32, #tpu.memory_space<smem>>
    %193 = vector.extract_strided_slice %148 {offsets = [0, 3, 0, 0], sizes = [2, 1, 8, 32], strides = [1, 1, 1, 1]} : vector<2x4x8x32xf32> to vector<2x1x8x32xf32>
    %194 = vector.shape_cast %193 : vector<2x1x8x32xf32> to vector<2x8x32xf32>
    %195 = vector.broadcast %192 : f32 to vector<2x8x32xf32>
    %196 = arith.mulf %195, %194 : vector<2x8x32xf32>
    %197 = arith.addf %191, %196 : vector<2x8x32xf32>
    %c1_54 = arith.constant 1 : index
    %c4_55 = arith.constant 4 : index
    %198 = memref.load %arg4[%c1_54, %c4_55] : memref<8x5xf32, #tpu.memory_space<smem>>
    %199 = vector.broadcast %198 : f32 to vector<2x8x32xf32>
    %200 = arith.addf %197, %199 : vector<2x8x32xf32>
    %c2_56 = arith.constant 2 : index
    %c0_57 = arith.constant 0 : index
    %201 = memref.load %arg4[%c2_56, %c0_57] : memref<8x5xf32, #tpu.memory_space<smem>>
    %202 = vector.extract_strided_slice %148 {offsets = [0, 0, 0, 0], sizes = [2, 1, 8, 32], strides = [1, 1, 1, 1]} : vector<2x4x8x32xf32> to vector<2x1x8x32xf32>
    %203 = vector.shape_cast %202 : vector<2x1x8x32xf32> to vector<2x8x32xf32>
    %204 = vector.broadcast %201 : f32 to vector<2x8x32xf32>
    %205 = arith.mulf %204, %203 : vector<2x8x32xf32>
    %c2_58 = arith.constant 2 : index
    %c1_59 = arith.constant 1 : index
    %206 = memref.load %arg4[%c2_58, %c1_59] : memref<8x5xf32, #tpu.memory_space<smem>>
    %207 = vector.extract_strided_slice %148 {offsets = [0, 1, 0, 0], sizes = [2, 1, 8, 32], strides = [1, 1, 1, 1]} : vector<2x4x8x32xf32> to vector<2x1x8x32xf32>
    %208 = vector.shape_cast %207 : vector<2x1x8x32xf32> to vector<2x8x32xf32>
    %209 = vector.broadcast %206 : f32 to vector<2x8x32xf32>
    %210 = arith.mulf %209, %208 : vector<2x8x32xf32>
    %211 = arith.addf %205, %210 : vector<2x8x32xf32>
    %c2_60 = arith.constant 2 : index
    %c2_61 = arith.constant 2 : index
    %212 = memref.load %arg4[%c2_60, %c2_61] : memref<8x5xf32, #tpu.memory_space<smem>>
    %213 = vector.extract_strided_slice %148 {offsets = [0, 2, 0, 0], sizes = [2, 1, 8, 32], strides = [1, 1, 1, 1]} : vector<2x4x8x32xf32> to vector<2x1x8x32xf32>
    %214 = vector.shape_cast %213 : vector<2x1x8x32xf32> to vector<2x8x32xf32>
    %215 = vector.broadcast %212 : f32 to vector<2x8x32xf32>
    %216 = arith.mulf %215, %214 : vector<2x8x32xf32>
    %217 = arith.addf %211, %216 : vector<2x8x32xf32>
    %c2_62 = arith.constant 2 : index
    %c3_63 = arith.constant 3 : index
    %218 = memref.load %arg4[%c2_62, %c3_63] : memref<8x5xf32, #tpu.memory_space<smem>>
    %219 = vector.extract_strided_slice %148 {offsets = [0, 3, 0, 0], sizes = [2, 1, 8, 32], strides = [1, 1, 1, 1]} : vector<2x4x8x32xf32> to vector<2x1x8x32xf32>
    %220 = vector.shape_cast %219 : vector<2x1x8x32xf32> to vector<2x8x32xf32>
    %221 = vector.broadcast %218 : f32 to vector<2x8x32xf32>
    %222 = arith.mulf %221, %220 : vector<2x8x32xf32>
    %223 = arith.addf %217, %222 : vector<2x8x32xf32>
    %c2_64 = arith.constant 2 : index
    %c4_65 = arith.constant 4 : index
    %224 = memref.load %arg4[%c2_64, %c4_65] : memref<8x5xf32, #tpu.memory_space<smem>>
    %225 = vector.broadcast %224 : f32 to vector<2x8x32xf32>
    %226 = arith.addf %223, %225 : vector<2x8x32xf32>
    %c3_66 = arith.constant 3 : index
    %c0_67 = arith.constant 0 : index
    %227 = memref.load %arg4[%c3_66, %c0_67] : memref<8x5xf32, #tpu.memory_space<smem>>
    %228 = vector.extract_strided_slice %148 {offsets = [0, 0, 0, 0], sizes = [2, 1, 8, 32], strides = [1, 1, 1, 1]} : vector<2x4x8x32xf32> to vector<2x1x8x32xf32>
    %229 = vector.shape_cast %228 : vector<2x1x8x32xf32> to vector<2x8x32xf32>
    %230 = vector.broadcast %227 : f32 to vector<2x8x32xf32>
    %231 = arith.mulf %230, %229 : vector<2x8x32xf32>
    %c3_68 = arith.constant 3 : index
    %c1_69 = arith.constant 1 : index
    %232 = memref.load %arg4[%c3_68, %c1_69] : memref<8x5xf32, #tpu.memory_space<smem>>
    %233 = vector.extract_strided_slice %148 {offsets = [0, 1, 0, 0], sizes = [2, 1, 8, 32], strides = [1, 1, 1, 1]} : vector<2x4x8x32xf32> to vector<2x1x8x32xf32>
    %234 = vector.shape_cast %233 : vector<2x1x8x32xf32> to vector<2x8x32xf32>
    %235 = vector.broadcast %232 : f32 to vector<2x8x32xf32>
    %236 = arith.mulf %235, %234 : vector<2x8x32xf32>
    %237 = arith.addf %231, %236 : vector<2x8x32xf32>
    %c3_70 = arith.constant 3 : index
    %c2_71 = arith.constant 2 : index
    %238 = memref.load %arg4[%c3_70, %c2_71] : memref<8x5xf32, #tpu.memory_space<smem>>
    %239 = vector.extract_strided_slice %148 {offsets = [0, 2, 0, 0], sizes = [2, 1, 8, 32], strides = [1, 1, 1, 1]} : vector<2x4x8x32xf32> to vector<2x1x8x32xf32>
    %240 = vector.shape_cast %239 : vector<2x1x8x32xf32> to vector<2x8x32xf32>
    %241 = vector.broadcast %238 : f32 to vector<2x8x32xf32>
    %242 = arith.mulf %241, %240 : vector<2x8x32xf32>
    %243 = arith.addf %237, %242 : vector<2x8x32xf32>
    %c3_72 = arith.constant 3 : index
    %c3_73 = arith.constant 3 : index
    %244 = memref.load %arg4[%c3_72, %c3_73] : memref<8x5xf32, #tpu.memory_space<smem>>
    %245 = vector.extract_strided_slice %148 {offsets = [0, 3, 0, 0], sizes = [2, 1, 8, 32], strides = [1, 1, 1, 1]} : vector<2x4x8x32xf32> to vector<2x1x8x32xf32>
    %246 = vector.shape_cast %245 : vector<2x1x8x32xf32> to vector<2x8x32xf32>
    %247 = vector.broadcast %244 : f32 to vector<2x8x32xf32>
    %248 = arith.mulf %247, %246 : vector<2x8x32xf32>
    %249 = arith.addf %243, %248 : vector<2x8x32xf32>
    %c3_74 = arith.constant 3 : index
    %c4_75 = arith.constant 4 : index
    %250 = memref.load %arg4[%c3_74, %c4_75] : memref<8x5xf32, #tpu.memory_space<smem>>
    %251 = vector.broadcast %250 : f32 to vector<2x8x32xf32>
    %252 = arith.addf %249, %251 : vector<2x8x32xf32>
    %c4_76 = arith.constant 4 : index
    %c0_77 = arith.constant 0 : index
    %253 = memref.load %arg4[%c4_76, %c0_77] : memref<8x5xf32, #tpu.memory_space<smem>>
    %254 = vector.extract_strided_slice %148 {offsets = [0, 0, 0, 0], sizes = [2, 1, 8, 32], strides = [1, 1, 1, 1]} : vector<2x4x8x32xf32> to vector<2x1x8x32xf32>
    %255 = vector.shape_cast %254 : vector<2x1x8x32xf32> to vector<2x8x32xf32>
    %256 = vector.broadcast %253 : f32 to vector<2x8x32xf32>
    %257 = arith.mulf %256, %255 : vector<2x8x32xf32>
    %c4_78 = arith.constant 4 : index
    %c1_79 = arith.constant 1 : index
    %258 = memref.load %arg4[%c4_78, %c1_79] : memref<8x5xf32, #tpu.memory_space<smem>>
    %259 = vector.extract_strided_slice %148 {offsets = [0, 1, 0, 0], sizes = [2, 1, 8, 32], strides = [1, 1, 1, 1]} : vector<2x4x8x32xf32> to vector<2x1x8x32xf32>
    %260 = vector.shape_cast %259 : vector<2x1x8x32xf32> to vector<2x8x32xf32>
    %261 = vector.broadcast %258 : f32 to vector<2x8x32xf32>
    %262 = arith.mulf %261, %260 : vector<2x8x32xf32>
    %263 = arith.addf %257, %262 : vector<2x8x32xf32>
    %c4_80 = arith.constant 4 : index
    %c2_81 = arith.constant 2 : index
    %264 = memref.load %arg4[%c4_80, %c2_81] : memref<8x5xf32, #tpu.memory_space<smem>>
    %265 = vector.extract_strided_slice %148 {offsets = [0, 2, 0, 0], sizes = [2, 1, 8, 32], strides = [1, 1, 1, 1]} : vector<2x4x8x32xf32> to vector<2x1x8x32xf32>
    %266 = vector.shape_cast %265 : vector<2x1x8x32xf32> to vector<2x8x32xf32>
    %267 = vector.broadcast %264 : f32 to vector<2x8x32xf32>
    %268 = arith.mulf %267, %266 : vector<2x8x32xf32>
    %269 = arith.addf %263, %268 : vector<2x8x32xf32>
    %c4_82 = arith.constant 4 : index
    %c3_83 = arith.constant 3 : index
    %270 = memref.load %arg4[%c4_82, %c3_83] : memref<8x5xf32, #tpu.memory_space<smem>>
    %271 = vector.extract_strided_slice %148 {offsets = [0, 3, 0, 0], sizes = [2, 1, 8, 32], strides = [1, 1, 1, 1]} : vector<2x4x8x32xf32> to vector<2x1x8x32xf32>
    %272 = vector.shape_cast %271 : vector<2x1x8x32xf32> to vector<2x8x32xf32>
    %273 = vector.broadcast %270 : f32 to vector<2x8x32xf32>
    %274 = arith.mulf %273, %272 : vector<2x8x32xf32>
    %275 = arith.addf %269, %274 : vector<2x8x32xf32>
    %c4_84 = arith.constant 4 : index
    %c4_85 = arith.constant 4 : index
    %276 = memref.load %arg4[%c4_84, %c4_85] : memref<8x5xf32, #tpu.memory_space<smem>>
    %277 = vector.broadcast %276 : f32 to vector<2x8x32xf32>
    %278 = arith.addf %275, %277 : vector<2x8x32xf32>
    %c5 = arith.constant 5 : index
    %c0_86 = arith.constant 0 : index
    %279 = memref.load %arg4[%c5, %c0_86] : memref<8x5xf32, #tpu.memory_space<smem>>
    %280 = vector.extract_strided_slice %148 {offsets = [0, 0, 0, 0], sizes = [2, 1, 8, 32], strides = [1, 1, 1, 1]} : vector<2x4x8x32xf32> to vector<2x1x8x32xf32>
    %281 = vector.shape_cast %280 : vector<2x1x8x32xf32> to vector<2x8x32xf32>
    %282 = vector.broadcast %279 : f32 to vector<2x8x32xf32>
    %283 = arith.mulf %282, %281 : vector<2x8x32xf32>
    %c5_87 = arith.constant 5 : index
    %c1_88 = arith.constant 1 : index
    %284 = memref.load %arg4[%c5_87, %c1_88] : memref<8x5xf32, #tpu.memory_space<smem>>
    %285 = vector.extract_strided_slice %148 {offsets = [0, 1, 0, 0], sizes = [2, 1, 8, 32], strides = [1, 1, 1, 1]} : vector<2x4x8x32xf32> to vector<2x1x8x32xf32>
    %286 = vector.shape_cast %285 : vector<2x1x8x32xf32> to vector<2x8x32xf32>
    %287 = vector.broadcast %284 : f32 to vector<2x8x32xf32>
    %288 = arith.mulf %287, %286 : vector<2x8x32xf32>
    %289 = arith.addf %283, %288 : vector<2x8x32xf32>
    %c5_89 = arith.constant 5 : index
    %c2_90 = arith.constant 2 : index
    %290 = memref.load %arg4[%c5_89, %c2_90] : memref<8x5xf32, #tpu.memory_space<smem>>
    %291 = vector.extract_strided_slice %148 {offsets = [0, 2, 0, 0], sizes = [2, 1, 8, 32], strides = [1, 1, 1, 1]} : vector<2x4x8x32xf32> to vector<2x1x8x32xf32>
    %292 = vector.shape_cast %291 : vector<2x1x8x32xf32> to vector<2x8x32xf32>
    %293 = vector.broadcast %290 : f32 to vector<2x8x32xf32>
    %294 = arith.mulf %293, %292 : vector<2x8x32xf32>
    %295 = arith.addf %289, %294 : vector<2x8x32xf32>
    %c5_91 = arith.constant 5 : index
    %c3_92 = arith.constant 3 : index
    %296 = memref.load %arg4[%c5_91, %c3_92] : memref<8x5xf32, #tpu.memory_space<smem>>
    %297 = vector.extract_strided_slice %148 {offsets = [0, 3, 0, 0], sizes = [2, 1, 8, 32], strides = [1, 1, 1, 1]} : vector<2x4x8x32xf32> to vector<2x1x8x32xf32>
    %298 = vector.shape_cast %297 : vector<2x1x8x32xf32> to vector<2x8x32xf32>
    %299 = vector.broadcast %296 : f32 to vector<2x8x32xf32>
    %300 = arith.mulf %299, %298 : vector<2x8x32xf32>
    %301 = arith.addf %295, %300 : vector<2x8x32xf32>
    %c5_93 = arith.constant 5 : index
    %c4_94 = arith.constant 4 : index
    %302 = memref.load %arg4[%c5_93, %c4_94] : memref<8x5xf32, #tpu.memory_space<smem>>
    %303 = vector.broadcast %302 : f32 to vector<2x8x32xf32>
    %304 = arith.addf %301, %303 : vector<2x8x32xf32>
    %c6 = arith.constant 6 : index
    %c0_95 = arith.constant 0 : index
    %305 = memref.load %arg4[%c6, %c0_95] : memref<8x5xf32, #tpu.memory_space<smem>>
    %306 = vector.extract_strided_slice %148 {offsets = [0, 0, 0, 0], sizes = [2, 1, 8, 32], strides = [1, 1, 1, 1]} : vector<2x4x8x32xf32> to vector<2x1x8x32xf32>
    %307 = vector.shape_cast %306 : vector<2x1x8x32xf32> to vector<2x8x32xf32>
    %308 = vector.broadcast %305 : f32 to vector<2x8x32xf32>
    %309 = arith.mulf %308, %307 : vector<2x8x32xf32>
    %c6_96 = arith.constant 6 : index
    %c1_97 = arith.constant 1 : index
    %310 = memref.load %arg4[%c6_96, %c1_97] : memref<8x5xf32, #tpu.memory_space<smem>>
    %311 = vector.extract_strided_slice %148 {offsets = [0, 1, 0, 0], sizes = [2, 1, 8, 32], strides = [1, 1, 1, 1]} : vector<2x4x8x32xf32> to vector<2x1x8x32xf32>
    %312 = vector.shape_cast %311 : vector<2x1x8x32xf32> to vector<2x8x32xf32>
    %313 = vector.broadcast %310 : f32 to vector<2x8x32xf32>
    %314 = arith.mulf %313, %312 : vector<2x8x32xf32>
    %315 = arith.addf %309, %314 : vector<2x8x32xf32>
    %c6_98 = arith.constant 6 : index
    %c2_99 = arith.constant 2 : index
    %316 = memref.load %arg4[%c6_98, %c2_99] : memref<8x5xf32, #tpu.memory_space<smem>>
    %317 = vector.extract_strided_slice %148 {offsets = [0, 2, 0, 0], sizes = [2, 1, 8, 32], strides = [1, 1, 1, 1]} : vector<2x4x8x32xf32> to vector<2x1x8x32xf32>
    %318 = vector.shape_cast %317 : vector<2x1x8x32xf32> to vector<2x8x32xf32>
    %319 = vector.broadcast %316 : f32 to vector<2x8x32xf32>
    %320 = arith.mulf %319, %318 : vector<2x8x32xf32>
    %321 = arith.addf %315, %320 : vector<2x8x32xf32>
    %c6_100 = arith.constant 6 : index
    %c3_101 = arith.constant 3 : index
    %322 = memref.load %arg4[%c6_100, %c3_101] : memref<8x5xf32, #tpu.memory_space<smem>>
    %323 = vector.extract_strided_slice %148 {offsets = [0, 3, 0, 0], sizes = [2, 1, 8, 32], strides = [1, 1, 1, 1]} : vector<2x4x8x32xf32> to vector<2x1x8x32xf32>
    %324 = vector.shape_cast %323 : vector<2x1x8x32xf32> to vector<2x8x32xf32>
    %325 = vector.broadcast %322 : f32 to vector<2x8x32xf32>
    %326 = arith.mulf %325, %324 : vector<2x8x32xf32>
    %327 = arith.addf %321, %326 : vector<2x8x32xf32>
    %c6_102 = arith.constant 6 : index
    %c4_103 = arith.constant 4 : index
    %328 = memref.load %arg4[%c6_102, %c4_103] : memref<8x5xf32, #tpu.memory_space<smem>>
    %329 = vector.broadcast %328 : f32 to vector<2x8x32xf32>
    %330 = arith.addf %327, %329 : vector<2x8x32xf32>
    %c7 = arith.constant 7 : index
    %c0_104 = arith.constant 0 : index
    %331 = memref.load %arg4[%c7, %c0_104] : memref<8x5xf32, #tpu.memory_space<smem>>
    %332 = vector.extract_strided_slice %148 {offsets = [0, 0, 0, 0], sizes = [2, 1, 8, 32], strides = [1, 1, 1, 1]} : vector<2x4x8x32xf32> to vector<2x1x8x32xf32>
    %333 = vector.shape_cast %332 : vector<2x1x8x32xf32> to vector<2x8x32xf32>
    %334 = vector.broadcast %331 : f32 to vector<2x8x32xf32>
    %335 = arith.mulf %334, %333 : vector<2x8x32xf32>
    %c7_105 = arith.constant 7 : index
    %c1_106 = arith.constant 1 : index
    %336 = memref.load %arg4[%c7_105, %c1_106] : memref<8x5xf32, #tpu.memory_space<smem>>
    %337 = vector.extract_strided_slice %148 {offsets = [0, 1, 0, 0], sizes = [2, 1, 8, 32], strides = [1, 1, 1, 1]} : vector<2x4x8x32xf32> to vector<2x1x8x32xf32>
    %338 = vector.shape_cast %337 : vector<2x1x8x32xf32> to vector<2x8x32xf32>
    %339 = vector.broadcast %336 : f32 to vector<2x8x32xf32>
    %340 = arith.mulf %339, %338 : vector<2x8x32xf32>
    %341 = arith.addf %335, %340 : vector<2x8x32xf32>
    %c7_107 = arith.constant 7 : index
    %c2_108 = arith.constant 2 : index
    %342 = memref.load %arg4[%c7_107, %c2_108] : memref<8x5xf32, #tpu.memory_space<smem>>
    %343 = vector.extract_strided_slice %148 {offsets = [0, 2, 0, 0], sizes = [2, 1, 8, 32], strides = [1, 1, 1, 1]} : vector<2x4x8x32xf32> to vector<2x1x8x32xf32>
    %344 = vector.shape_cast %343 : vector<2x1x8x32xf32> to vector<2x8x32xf32>
    %345 = vector.broadcast %342 : f32 to vector<2x8x32xf32>
    %346 = arith.mulf %345, %344 : vector<2x8x32xf32>
    %347 = arith.addf %341, %346 : vector<2x8x32xf32>
    %c7_109 = arith.constant 7 : index
    %c3_110 = arith.constant 3 : index
    %348 = memref.load %arg4[%c7_109, %c3_110] : memref<8x5xf32, #tpu.memory_space<smem>>
    %349 = vector.extract_strided_slice %148 {offsets = [0, 3, 0, 0], sizes = [2, 1, 8, 32], strides = [1, 1, 1, 1]} : vector<2x4x8x32xf32> to vector<2x1x8x32xf32>
    %350 = vector.shape_cast %349 : vector<2x1x8x32xf32> to vector<2x8x32xf32>
    %351 = vector.broadcast %348 : f32 to vector<2x8x32xf32>
    %352 = arith.mulf %351, %350 : vector<2x8x32xf32>
    %353 = arith.addf %347, %352 : vector<2x8x32xf32>
    %c7_111 = arith.constant 7 : index
    %c4_112 = arith.constant 4 : index
    %354 = memref.load %arg4[%c7_111, %c4_112] : memref<8x5xf32, #tpu.memory_space<smem>>
    %355 = vector.broadcast %354 : f32 to vector<2x8x32xf32>
    %356 = arith.addf %353, %355 : vector<2x8x32xf32>
    %357 = vector.shape_cast %174 : vector<2x8x32xf32> to vector<2x1x8x32xf32>
    %358 = vector.shape_cast %200 : vector<2x8x32xf32> to vector<2x1x8x32xf32>
    %359 = vector.shape_cast %226 : vector<2x8x32xf32> to vector<2x1x8x32xf32>
    %360 = vector.shape_cast %252 : vector<2x8x32xf32> to vector<2x1x8x32xf32>
    %361 = vector.shape_cast %278 : vector<2x8x32xf32> to vector<2x1x8x32xf32>
    %362 = vector.shape_cast %304 : vector<2x8x32xf32> to vector<2x1x8x32xf32>
    %363 = vector.shape_cast %330 : vector<2x8x32xf32> to vector<2x1x8x32xf32>
    %364 = vector.shape_cast %356 : vector<2x8x32xf32> to vector<2x1x8x32xf32>
    %365 = tpu.concatenate %357, %358, %359, %360, %361, %362, %363, %364 in 1 : vector<2x1x8x32xf32>, vector<2x1x8x32xf32>, vector<2x1x8x32xf32>, vector<2x1x8x32xf32>, vector<2x1x8x32xf32>, vector<2x1x8x32xf32>, vector<2x1x8x32xf32>, vector<2x1x8x32xf32> -> vector<2x8x8x32xf32>
    %366 = vector.shape_cast %365 : vector<2x8x8x32xf32> to vector<128x32xf32>
    %c0_113 = arith.constant 0 : index
    %c0_114 = arith.constant 0 : index
    %367 = vector.load %arg5[%c0_113, %c0_114] : memref<32x36xf32, #tpu.memory_space<vmem>>, vector<32x36xf32>
    %cst_115 = arith.constant dense<0.000000e+00> : vector<128x36xf32>
    %368 = tpu.matmul %366, %367, %cst_115 {dimension_numbers = #tpu.dot_dimension_numbers<[1], [0], [0], [1], [0, 0, 1, 1], [], []>} : vector<128x32xf32>, vector<32x36xf32>, vector<128x36xf32> -> vector<128x36xf32>
    %369 = vector.shape_cast %368 : vector<128x36xf32> to vector<16x8x36xf32>
    %370 = vector.extract_strided_slice %369 {offsets = [0, 0, 0], sizes = [16, 8, 32], strides = [1, 1, 1]} : vector<16x8x36xf32> to vector<16x8x32xf32>
    %371 = vector.extract_strided_slice %369 {offsets = [0, 0, 34], sizes = [16, 8, 2], strides = [1, 1, 1]} : vector<16x8x36xf32> to vector<16x8x2xf32>
    %372 = tpu.transpose %371, [0, 2, 1] : vector<16x8x2xf32> -> vector<16x2x8xf32>
    %373 = vector.shape_cast %2 : vector<8x8xi1> to vector<1x8x8xi1>
    %374 = vector.shape_cast %373 : vector<1x8x8xi1> to vector<1x8x8xi1>
    %375 = vector.broadcast %374 : vector<1x8x8xi1> to vector<16x8x8xi1>
    %376 = tpu.iota {dimensions = array<i32: 2>} : vector<1x1x32xi32>
    %cst_116 = arith.constant 0.000000e+00 : f32
    %377 = vector.broadcast %cst_116 : f32 to vector<16x8x32xf32>
    %378 = vector.extract_strided_slice %369 {offsets = [0, 0, 32], sizes = [16, 8, 1], strides = [1, 1, 1]} : vector<16x8x36xf32> to vector<16x8x1xf32>
    %379 = vector.extract_strided_slice %372 {offsets = [0, 0, 0], sizes = [16, 1, 8], strides = [1, 1, 1]} : vector<16x2x8xf32> to vector<16x1x8xf32>
    %380 = vector.broadcast %378 : vector<16x8x1xf32> to vector<16x8x8xf32>
    %381 = vector.broadcast %379 : vector<16x1x8xf32> to vector<16x8x8xf32>
    %382 = arith.addf %380, %381 : vector<16x8x8xf32>
    %cst_117 = arith.constant 0.000000e+00 : f32
    %383 = vector.broadcast %cst_117 : f32 to vector<16x8x8xf32>
    %384 = arith.cmpf ogt, %382, %383 : vector<16x8x8xf32>
    %cst_118 = arith.constant 2.000000e-01 : f32
    %385 = vector.broadcast %cst_118 : f32 to vector<16x8x8xf32>
    %386 = arith.mulf %385, %382 : vector<16x8x8xf32>
    %387 = arith.select %384, %382, %386 : vector<16x8x8xi1>, vector<16x8x8xf32>
    %cst_119 = arith.constant -9.000000e+15 : f32
    %388 = vector.broadcast %cst_119 : f32 to vector<16x8x8xf32>
    %389 = arith.select %375, %387, %388 : vector<16x8x8xi1>, vector<16x8x8xf32>
    %cst_120 = arith.constant dense<0xFF800000> : vector<16x8xf32>
    %390 = vector.multi_reduction <maximumf>, %389, %cst_120 [2] : vector<16x8x8xf32> to vector<16x8xf32>
    %391 = vector.shape_cast %390 : vector<16x8xf32> to vector<16x8x1xf32>
    %392 = vector.broadcast %391 : vector<16x8x1xf32> to vector<16x8x8xf32>
    %393 = arith.subf %389, %392 : vector<16x8x8xf32>
    %394 = math.exp %393 : vector<16x8x8xf32>
    %cst_121 = arith.constant dense<0.000000e+00> : vector<16x8xf32>
    %395 = vector.multi_reduction <add>, %394, %cst_121 [2] : vector<16x8x8xf32> to vector<16x8xf32>
    %396 = vector.shape_cast %395 : vector<16x8xf32> to vector<16x8x1xf32>
    %397 = tpu.reciprocal %396 {approx = true} : vector<16x8x1xf32> -> vector<16x8x1xf32>
    %398 = vector.broadcast %397 : vector<16x8x1xf32> to vector<16x8x8xf32>
    %399 = arith.mulf %394, %398 : vector<16x8x8xf32>
    %c0_i32_122 = arith.constant 0 : i32
    %400 = vector.broadcast %c0_i32_122 : i32 to vector<1x1x32xi32>
    %401 = arith.cmpi sge, %376, %400 : vector<1x1x32xi32>
    %c16_i32_123 = arith.constant 16 : i32
    %402 = vector.broadcast %c16_i32_123 : i32 to vector<1x1x32xi32>
    %403 = arith.cmpi slt, %376, %402 : vector<1x1x32xi32>
    %404 = arith.andi %401, %403 : vector<1x1x32xi1>
    %cst_124 = arith.constant 0.000000e+00 : f32
    %405 = vector.shape_cast %404 : vector<1x1x32xi1> to vector<1x1x32xi1>
    %406 = vector.broadcast %405 : vector<1x1x32xi1> to vector<16x8x32xi1>
    %407 = vector.broadcast %cst_124 : f32 to vector<16x8x32xf32>
    %408 = arith.select %406, %370, %407 : vector<16x8x32xi1>, vector<16x8x32xf32>
    "tpu.trace_start"() <{level = 10 : i32, message = "gnm,gmd->gnd"}> : () -> ()
    %cst_125 = arith.constant dense<0.000000e+00> : vector<16x8x32xf32>
    %409 = tpu.matmul %399, %408, %cst_125 {dimension_numbers = #tpu.dot_dimension_numbers<[2], [1], [1], [2], [0, 0, 0, 1, 1, 2], [0], [0]>} : vector<16x8x8xf32>, vector<16x8x32xf32>, vector<16x8x32xf32> -> vector<16x8x32xf32>
    "tpu.trace_stop"() : () -> ()
    %410 = arith.addf %377, %409 : vector<16x8x32xf32>
    %411 = vector.extract_strided_slice %369 {offsets = [0, 0, 33], sizes = [16, 8, 1], strides = [1, 1, 1]} : vector<16x8x36xf32> to vector<16x8x1xf32>
    %412 = vector.extract_strided_slice %372 {offsets = [0, 1, 0], sizes = [16, 1, 8], strides = [1, 1, 1]} : vector<16x2x8xf32> to vector<16x1x8xf32>
    %413 = vector.broadcast %411 : vector<16x8x1xf32> to vector<16x8x8xf32>
    %414 = vector.broadcast %412 : vector<16x1x8xf32> to vector<16x8x8xf32>
    %415 = arith.addf %413, %414 : vector<16x8x8xf32>
    %cst_126 = arith.constant 0.000000e+00 : f32
    %416 = vector.broadcast %cst_126 : f32 to vector<16x8x8xf32>
    %417 = arith.cmpf ogt, %415, %416 : vector<16x8x8xf32>
    %cst_127 = arith.constant 2.000000e-01 : f32
    %418 = vector.broadcast %cst_127 : f32 to vector<16x8x8xf32>
    %419 = arith.mulf %418, %415 : vector<16x8x8xf32>
    %420 = arith.select %417, %415, %419 : vector<16x8x8xi1>, vector<16x8x8xf32>
    %cst_128 = arith.constant -9.000000e+15 : f32
    %421 = vector.broadcast %cst_128 : f32 to vector<16x8x8xf32>
    %422 = arith.select %375, %420, %421 : vector<16x8x8xi1>, vector<16x8x8xf32>
    %cst_129 = arith.constant dense<0xFF800000> : vector<16x8xf32>
    %423 = vector.multi_reduction <maximumf>, %422, %cst_129 [2] : vector<16x8x8xf32> to vector<16x8xf32>
    %424 = vector.shape_cast %423 : vector<16x8xf32> to vector<16x8x1xf32>
    %425 = vector.broadcast %424 : vector<16x8x1xf32> to vector<16x8x8xf32>
    %426 = arith.subf %422, %425 : vector<16x8x8xf32>
    %427 = math.exp %426 : vector<16x8x8xf32>
    %cst_130 = arith.constant dense<0.000000e+00> : vector<16x8xf32>
    %428 = vector.multi_reduction <add>, %427, %cst_130 [2] : vector<16x8x8xf32> to vector<16x8xf32>
    %429 = vector.shape_cast %428 : vector<16x8xf32> to vector<16x8x1xf32>
    %430 = tpu.reciprocal %429 {approx = true} : vector<16x8x1xf32> -> vector<16x8x1xf32>
    %431 = vector.broadcast %430 : vector<16x8x1xf32> to vector<16x8x8xf32>
    %432 = arith.mulf %427, %431 : vector<16x8x8xf32>
    %c16_i32_131 = arith.constant 16 : i32
    %433 = vector.broadcast %c16_i32_131 : i32 to vector<1x1x32xi32>
    %434 = arith.cmpi sge, %376, %433 : vector<1x1x32xi32>
    %c32_i32_132 = arith.constant 32 : i32
    %435 = vector.broadcast %c32_i32_132 : i32 to vector<1x1x32xi32>
    %436 = arith.cmpi slt, %376, %435 : vector<1x1x32xi32>
    %437 = arith.andi %434, %436 : vector<1x1x32xi1>
    %cst_133 = arith.constant 0.000000e+00 : f32
    %438 = vector.shape_cast %437 : vector<1x1x32xi1> to vector<1x1x32xi1>
    %439 = vector.broadcast %438 : vector<1x1x32xi1> to vector<16x8x32xi1>
    %440 = vector.broadcast %cst_133 : f32 to vector<16x8x32xf32>
    %441 = arith.select %439, %370, %440 : vector<16x8x32xi1>, vector<16x8x32xf32>
    "tpu.trace_start"() <{level = 10 : i32, message = "gnm,gmd->gnd"}> : () -> ()
    %cst_134 = arith.constant dense<0.000000e+00> : vector<16x8x32xf32>
    %442 = tpu.matmul %432, %441, %cst_134 {dimension_numbers = #tpu.dot_dimension_numbers<[2], [1], [1], [2], [0, 0, 0, 1, 1, 2], [0], [0]>} : vector<16x8x8xf32>, vector<16x8x32xf32>, vector<16x8x32xf32> -> vector<16x8x32xf32>
    "tpu.trace_stop"() : () -> ()
    %443 = arith.addf %410, %442 : vector<16x8x32xf32>
    %444 = vector.shape_cast %443 : vector<16x8x32xf32> to vector<2x8x8x32xf32>
    %c0_135 = arith.constant 0 : index
    %c0_136 = arith.constant 0 : index
    %445 = memref.load %arg6[%c0_135, %c0_136] : memref<4x9xf32, #tpu.memory_space<smem>>
    %446 = vector.extract_strided_slice %444 {offsets = [0, 0, 0, 0], sizes = [2, 1, 8, 32], strides = [1, 1, 1, 1]} : vector<2x8x8x32xf32> to vector<2x1x8x32xf32>
    %447 = vector.shape_cast %446 : vector<2x1x8x32xf32> to vector<2x8x32xf32>
    %448 = vector.broadcast %445 : f32 to vector<2x8x32xf32>
    %449 = arith.mulf %448, %447 : vector<2x8x32xf32>
    %c0_137 = arith.constant 0 : index
    %c1_138 = arith.constant 1 : index
    %450 = memref.load %arg6[%c0_137, %c1_138] : memref<4x9xf32, #tpu.memory_space<smem>>
    %451 = vector.extract_strided_slice %444 {offsets = [0, 1, 0, 0], sizes = [2, 1, 8, 32], strides = [1, 1, 1, 1]} : vector<2x8x8x32xf32> to vector<2x1x8x32xf32>
    %452 = vector.shape_cast %451 : vector<2x1x8x32xf32> to vector<2x8x32xf32>
    %453 = vector.broadcast %450 : f32 to vector<2x8x32xf32>
    %454 = arith.mulf %453, %452 : vector<2x8x32xf32>
    %455 = arith.addf %449, %454 : vector<2x8x32xf32>
    %c0_139 = arith.constant 0 : index
    %c2_140 = arith.constant 2 : index
    %456 = memref.load %arg6[%c0_139, %c2_140] : memref<4x9xf32, #tpu.memory_space<smem>>
    %457 = vector.extract_strided_slice %444 {offsets = [0, 2, 0, 0], sizes = [2, 1, 8, 32], strides = [1, 1, 1, 1]} : vector<2x8x8x32xf32> to vector<2x1x8x32xf32>
    %458 = vector.shape_cast %457 : vector<2x1x8x32xf32> to vector<2x8x32xf32>
    %459 = vector.broadcast %456 : f32 to vector<2x8x32xf32>
    %460 = arith.mulf %459, %458 : vector<2x8x32xf32>
    %461 = arith.addf %455, %460 : vector<2x8x32xf32>
    %c0_141 = arith.constant 0 : index
    %c3_142 = arith.constant 3 : index
    %462 = memref.load %arg6[%c0_141, %c3_142] : memref<4x9xf32, #tpu.memory_space<smem>>
    %463 = vector.extract_strided_slice %444 {offsets = [0, 3, 0, 0], sizes = [2, 1, 8, 32], strides = [1, 1, 1, 1]} : vector<2x8x8x32xf32> to vector<2x1x8x32xf32>
    %464 = vector.shape_cast %463 : vector<2x1x8x32xf32> to vector<2x8x32xf32>
    %465 = vector.broadcast %462 : f32 to vector<2x8x32xf32>
    %466 = arith.mulf %465, %464 : vector<2x8x32xf32>
    %467 = arith.addf %461, %466 : vector<2x8x32xf32>
    %c0_143 = arith.constant 0 : index
    %c4_144 = arith.constant 4 : index
    %468 = memref.load %arg6[%c0_143, %c4_144] : memref<4x9xf32, #tpu.memory_space<smem>>
    %469 = vector.extract_strided_slice %444 {offsets = [0, 4, 0, 0], sizes = [2, 1, 8, 32], strides = [1, 1, 1, 1]} : vector<2x8x8x32xf32> to vector<2x1x8x32xf32>
    %470 = vector.shape_cast %469 : vector<2x1x8x32xf32> to vector<2x8x32xf32>
    %471 = vector.broadcast %468 : f32 to vector<2x8x32xf32>
    %472 = arith.mulf %471, %470 : vector<2x8x32xf32>
    %473 = arith.addf %467, %472 : vector<2x8x32xf32>
    %c0_145 = arith.constant 0 : index
    %c5_146 = arith.constant 5 : index
    %474 = memref.load %arg6[%c0_145, %c5_146] : memref<4x9xf32, #tpu.memory_space<smem>>
    %475 = vector.extract_strided_slice %444 {offsets = [0, 5, 0, 0], sizes = [2, 1, 8, 32], strides = [1, 1, 1, 1]} : vector<2x8x8x32xf32> to vector<2x1x8x32xf32>
    %476 = vector.shape_cast %475 : vector<2x1x8x32xf32> to vector<2x8x32xf32>
    %477 = vector.broadcast %474 : f32 to vector<2x8x32xf32>
    %478 = arith.mulf %477, %476 : vector<2x8x32xf32>
    %479 = arith.addf %473, %478 : vector<2x8x32xf32>
    %c0_147 = arith.constant 0 : index
    %c6_148 = arith.constant 6 : index
    %480 = memref.load %arg6[%c0_147, %c6_148] : memref<4x9xf32, #tpu.memory_space<smem>>
    %481 = vector.extract_strided_slice %444 {offsets = [0, 6, 0, 0], sizes = [2, 1, 8, 32], strides = [1, 1, 1, 1]} : vector<2x8x8x32xf32> to vector<2x1x8x32xf32>
    %482 = vector.shape_cast %481 : vector<2x1x8x32xf32> to vector<2x8x32xf32>
    %483 = vector.broadcast %480 : f32 to vector<2x8x32xf32>
    %484 = arith.mulf %483, %482 : vector<2x8x32xf32>
    %485 = arith.addf %479, %484 : vector<2x8x32xf32>
    %c0_149 = arith.constant 0 : index
    %c7_150 = arith.constant 7 : index
    %486 = memref.load %arg6[%c0_149, %c7_150] : memref<4x9xf32, #tpu.memory_space<smem>>
    %487 = vector.extract_strided_slice %444 {offsets = [0, 7, 0, 0], sizes = [2, 1, 8, 32], strides = [1, 1, 1, 1]} : vector<2x8x8x32xf32> to vector<2x1x8x32xf32>
    %488 = vector.shape_cast %487 : vector<2x1x8x32xf32> to vector<2x8x32xf32>
    %489 = vector.broadcast %486 : f32 to vector<2x8x32xf32>
    %490 = arith.mulf %489, %488 : vector<2x8x32xf32>
    %491 = arith.addf %485, %490 : vector<2x8x32xf32>
    %c0_151 = arith.constant 0 : index
    %c8 = arith.constant 8 : index
    %492 = memref.load %arg6[%c0_151, %c8] : memref<4x9xf32, #tpu.memory_space<smem>>
    %493 = vector.broadcast %492 : f32 to vector<2x8x32xf32>
    %494 = arith.addf %491, %493 : vector<2x8x32xf32>
    %c1_152 = arith.constant 1 : index
    %c0_153 = arith.constant 0 : index
    %495 = memref.load %arg6[%c1_152, %c0_153] : memref<4x9xf32, #tpu.memory_space<smem>>
    %496 = vector.extract_strided_slice %444 {offsets = [0, 0, 0, 0], sizes = [2, 1, 8, 32], strides = [1, 1, 1, 1]} : vector<2x8x8x32xf32> to vector<2x1x8x32xf32>
    %497 = vector.shape_cast %496 : vector<2x1x8x32xf32> to vector<2x8x32xf32>
    %498 = vector.broadcast %495 : f32 to vector<2x8x32xf32>
    %499 = arith.mulf %498, %497 : vector<2x8x32xf32>
    %c1_154 = arith.constant 1 : index
    %c1_155 = arith.constant 1 : index
    %500 = memref.load %arg6[%c1_154, %c1_155] : memref<4x9xf32, #tpu.memory_space<smem>>
    %501 = vector.extract_strided_slice %444 {offsets = [0, 1, 0, 0], sizes = [2, 1, 8, 32], strides = [1, 1, 1, 1]} : vector<2x8x8x32xf32> to vector<2x1x8x32xf32>
    %502 = vector.shape_cast %501 : vector<2x1x8x32xf32> to vector<2x8x32xf32>
    %503 = vector.broadcast %500 : f32 to vector<2x8x32xf32>
    %504 = arith.mulf %503, %502 : vector<2x8x32xf32>
    %505 = arith.addf %499, %504 : vector<2x8x32xf32>
    %c1_156 = arith.constant 1 : index
    %c2_157 = arith.constant 2 : index
    %506 = memref.load %arg6[%c1_156, %c2_157] : memref<4x9xf32, #tpu.memory_space<smem>>
    %507 = vector.extract_strided_slice %444 {offsets = [0, 2, 0, 0], sizes = [2, 1, 8, 32], strides = [1, 1, 1, 1]} : vector<2x8x8x32xf32> to vector<2x1x8x32xf32>
    %508 = vector.shape_cast %507 : vector<2x1x8x32xf32> to vector<2x8x32xf32>
    %509 = vector.broadcast %506 : f32 to vector<2x8x32xf32>
    %510 = arith.mulf %509, %508 : vector<2x8x32xf32>
    %511 = arith.addf %505, %510 : vector<2x8x32xf32>
    %c1_158 = arith.constant 1 : index
    %c3_159 = arith.constant 3 : index
    %512 = memref.load %arg6[%c1_158, %c3_159] : memref<4x9xf32, #tpu.memory_space<smem>>
    %513 = vector.extract_strided_slice %444 {offsets = [0, 3, 0, 0], sizes = [2, 1, 8, 32], strides = [1, 1, 1, 1]} : vector<2x8x8x32xf32> to vector<2x1x8x32xf32>
    %514 = vector.shape_cast %513 : vector<2x1x8x32xf32> to vector<2x8x32xf32>
    %515 = vector.broadcast %512 : f32 to vector<2x8x32xf32>
    %516 = arith.mulf %515, %514 : vector<2x8x32xf32>
    %517 = arith.addf %511, %516 : vector<2x8x32xf32>
    %c1_160 = arith.constant 1 : index
    %c4_161 = arith.constant 4 : index
    %518 = memref.load %arg6[%c1_160, %c4_161] : memref<4x9xf32, #tpu.memory_space<smem>>
    %519 = vector.extract_strided_slice %444 {offsets = [0, 4, 0, 0], sizes = [2, 1, 8, 32], strides = [1, 1, 1, 1]} : vector<2x8x8x32xf32> to vector<2x1x8x32xf32>
    %520 = vector.shape_cast %519 : vector<2x1x8x32xf32> to vector<2x8x32xf32>
    %521 = vector.broadcast %518 : f32 to vector<2x8x32xf32>
    %522 = arith.mulf %521, %520 : vector<2x8x32xf32>
    %523 = arith.addf %517, %522 : vector<2x8x32xf32>
    %c1_162 = arith.constant 1 : index
    %c5_163 = arith.constant 5 : index
    %524 = memref.load %arg6[%c1_162, %c5_163] : memref<4x9xf32, #tpu.memory_space<smem>>
    %525 = vector.extract_strided_slice %444 {offsets = [0, 5, 0, 0], sizes = [2, 1, 8, 32], strides = [1, 1, 1, 1]} : vector<2x8x8x32xf32> to vector<2x1x8x32xf32>
    %526 = vector.shape_cast %525 : vector<2x1x8x32xf32> to vector<2x8x32xf32>
    %527 = vector.broadcast %524 : f32 to vector<2x8x32xf32>
    %528 = arith.mulf %527, %526 : vector<2x8x32xf32>
    %529 = arith.addf %523, %528 : vector<2x8x32xf32>
    %c1_164 = arith.constant 1 : index
    %c6_165 = arith.constant 6 : index
    %530 = memref.load %arg6[%c1_164, %c6_165] : memref<4x9xf32, #tpu.memory_space<smem>>
    %531 = vector.extract_strided_slice %444 {offsets = [0, 6, 0, 0], sizes = [2, 1, 8, 32], strides = [1, 1, 1, 1]} : vector<2x8x8x32xf32> to vector<2x1x8x32xf32>
    %532 = vector.shape_cast %531 : vector<2x1x8x32xf32> to vector<2x8x32xf32>
    %533 = vector.broadcast %530 : f32 to vector<2x8x32xf32>
    %534 = arith.mulf %533, %532 : vector<2x8x32xf32>
    %535 = arith.addf %529, %534 : vector<2x8x32xf32>
    %c1_166 = arith.constant 1 : index
    %c7_167 = arith.constant 7 : index
    %536 = memref.load %arg6[%c1_166, %c7_167] : memref<4x9xf32, #tpu.memory_space<smem>>
    %537 = vector.extract_strided_slice %444 {offsets = [0, 7, 0, 0], sizes = [2, 1, 8, 32], strides = [1, 1, 1, 1]} : vector<2x8x8x32xf32> to vector<2x1x8x32xf32>
    %538 = vector.shape_cast %537 : vector<2x1x8x32xf32> to vector<2x8x32xf32>
    %539 = vector.broadcast %536 : f32 to vector<2x8x32xf32>
    %540 = arith.mulf %539, %538 : vector<2x8x32xf32>
    %541 = arith.addf %535, %540 : vector<2x8x32xf32>
    %c1_168 = arith.constant 1 : index
    %c8_169 = arith.constant 8 : index
    %542 = memref.load %arg6[%c1_168, %c8_169] : memref<4x9xf32, #tpu.memory_space<smem>>
    %543 = vector.broadcast %542 : f32 to vector<2x8x32xf32>
    %544 = arith.addf %541, %543 : vector<2x8x32xf32>
    %c2_170 = arith.constant 2 : index
    %c0_171 = arith.constant 0 : index
    %545 = memref.load %arg6[%c2_170, %c0_171] : memref<4x9xf32, #tpu.memory_space<smem>>
    %546 = vector.extract_strided_slice %444 {offsets = [0, 0, 0, 0], sizes = [2, 1, 8, 32], strides = [1, 1, 1, 1]} : vector<2x8x8x32xf32> to vector<2x1x8x32xf32>
    %547 = vector.shape_cast %546 : vector<2x1x8x32xf32> to vector<2x8x32xf32>
    %548 = vector.broadcast %545 : f32 to vector<2x8x32xf32>
    %549 = arith.mulf %548, %547 : vector<2x8x32xf32>
    %c2_172 = arith.constant 2 : index
    %c1_173 = arith.constant 1 : index
    %550 = memref.load %arg6[%c2_172, %c1_173] : memref<4x9xf32, #tpu.memory_space<smem>>
    %551 = vector.extract_strided_slice %444 {offsets = [0, 1, 0, 0], sizes = [2, 1, 8, 32], strides = [1, 1, 1, 1]} : vector<2x8x8x32xf32> to vector<2x1x8x32xf32>
    %552 = vector.shape_cast %551 : vector<2x1x8x32xf32> to vector<2x8x32xf32>
    %553 = vector.broadcast %550 : f32 to vector<2x8x32xf32>
    %554 = arith.mulf %553, %552 : vector<2x8x32xf32>
    %555 = arith.addf %549, %554 : vector<2x8x32xf32>
    %c2_174 = arith.constant 2 : index
    %c2_175 = arith.constant 2 : index
    %556 = memref.load %arg6[%c2_174, %c2_175] : memref<4x9xf32, #tpu.memory_space<smem>>
    %557 = vector.extract_strided_slice %444 {offsets = [0, 2, 0, 0], sizes = [2, 1, 8, 32], strides = [1, 1, 1, 1]} : vector<2x8x8x32xf32> to vector<2x1x8x32xf32>
    %558 = vector.shape_cast %557 : vector<2x1x8x32xf32> to vector<2x8x32xf32>
    %559 = vector.broadcast %556 : f32 to vector<2x8x32xf32>
    %560 = arith.mulf %559, %558 : vector<2x8x32xf32>
    %561 = arith.addf %555, %560 : vector<2x8x32xf32>
    %c2_176 = arith.constant 2 : index
    %c3_177 = arith.constant 3 : index
    %562 = memref.load %arg6[%c2_176, %c3_177] : memref<4x9xf32, #tpu.memory_space<smem>>
    %563 = vector.extract_strided_slice %444 {offsets = [0, 3, 0, 0], sizes = [2, 1, 8, 32], strides = [1, 1, 1, 1]} : vector<2x8x8x32xf32> to vector<2x1x8x32xf32>
    %564 = vector.shape_cast %563 : vector<2x1x8x32xf32> to vector<2x8x32xf32>
    %565 = vector.broadcast %562 : f32 to vector<2x8x32xf32>
    %566 = arith.mulf %565, %564 : vector<2x8x32xf32>
    %567 = arith.addf %561, %566 : vector<2x8x32xf32>
    %c2_178 = arith.constant 2 : index
    %c4_179 = arith.constant 4 : index
    %568 = memref.load %arg6[%c2_178, %c4_179] : memref<4x9xf32, #tpu.memory_space<smem>>
    %569 = vector.extract_strided_slice %444 {offsets = [0, 4, 0, 0], sizes = [2, 1, 8, 32], strides = [1, 1, 1, 1]} : vector<2x8x8x32xf32> to vector<2x1x8x32xf32>
    %570 = vector.shape_cast %569 : vector<2x1x8x32xf32> to vector<2x8x32xf32>
    %571 = vector.broadcast %568 : f32 to vector<2x8x32xf32>
    %572 = arith.mulf %571, %570 : vector<2x8x32xf32>
    %573 = arith.addf %567, %572 : vector<2x8x32xf32>
    %c2_180 = arith.constant 2 : index
    %c5_181 = arith.constant 5 : index
    %574 = memref.load %arg6[%c2_180, %c5_181] : memref<4x9xf32, #tpu.memory_space<smem>>
    %575 = vector.extract_strided_slice %444 {offsets = [0, 5, 0, 0], sizes = [2, 1, 8, 32], strides = [1, 1, 1, 1]} : vector<2x8x8x32xf32> to vector<2x1x8x32xf32>
    %576 = vector.shape_cast %575 : vector<2x1x8x32xf32> to vector<2x8x32xf32>
    %577 = vector.broadcast %574 : f32 to vector<2x8x32xf32>
    %578 = arith.mulf %577, %576 : vector<2x8x32xf32>
    %579 = arith.addf %573, %578 : vector<2x8x32xf32>
    %c2_182 = arith.constant 2 : index
    %c6_183 = arith.constant 6 : index
    %580 = memref.load %arg6[%c2_182, %c6_183] : memref<4x9xf32, #tpu.memory_space<smem>>
    %581 = vector.extract_strided_slice %444 {offsets = [0, 6, 0, 0], sizes = [2, 1, 8, 32], strides = [1, 1, 1, 1]} : vector<2x8x8x32xf32> to vector<2x1x8x32xf32>
    %582 = vector.shape_cast %581 : vector<2x1x8x32xf32> to vector<2x8x32xf32>
    %583 = vector.broadcast %580 : f32 to vector<2x8x32xf32>
    %584 = arith.mulf %583, %582 : vector<2x8x32xf32>
    %585 = arith.addf %579, %584 : vector<2x8x32xf32>
    %c2_184 = arith.constant 2 : index
    %c7_185 = arith.constant 7 : index
    %586 = memref.load %arg6[%c2_184, %c7_185] : memref<4x9xf32, #tpu.memory_space<smem>>
    %587 = vector.extract_strided_slice %444 {offsets = [0, 7, 0, 0], sizes = [2, 1, 8, 32], strides = [1, 1, 1, 1]} : vector<2x8x8x32xf32> to vector<2x1x8x32xf32>
    %588 = vector.shape_cast %587 : vector<2x1x8x32xf32> to vector<2x8x32xf32>
    %589 = vector.broadcast %586 : f32 to vector<2x8x32xf32>
    %590 = arith.mulf %589, %588 : vector<2x8x32xf32>
    %591 = arith.addf %585, %590 : vector<2x8x32xf32>
    %c2_186 = arith.constant 2 : index
    %c8_187 = arith.constant 8 : index
    %592 = memref.load %arg6[%c2_186, %c8_187] : memref<4x9xf32, #tpu.memory_space<smem>>
    %593 = vector.broadcast %592 : f32 to vector<2x8x32xf32>
    %594 = arith.addf %591, %593 : vector<2x8x32xf32>
    %c3_188 = arith.constant 3 : index
    %c0_189 = arith.constant 0 : index
    %595 = memref.load %arg6[%c3_188, %c0_189] : memref<4x9xf32, #tpu.memory_space<smem>>
    %596 = vector.extract_strided_slice %444 {offsets = [0, 0, 0, 0], sizes = [2, 1, 8, 32], strides = [1, 1, 1, 1]} : vector<2x8x8x32xf32> to vector<2x1x8x32xf32>
    %597 = vector.shape_cast %596 : vector<2x1x8x32xf32> to vector<2x8x32xf32>
    %598 = vector.broadcast %595 : f32 to vector<2x8x32xf32>
    %599 = arith.mulf %598, %597 : vector<2x8x32xf32>
    %c3_190 = arith.constant 3 : index
    %c1_191 = arith.constant 1 : index
    %600 = memref.load %arg6[%c3_190, %c1_191] : memref<4x9xf32, #tpu.memory_space<smem>>
    %601 = vector.extract_strided_slice %444 {offsets = [0, 1, 0, 0], sizes = [2, 1, 8, 32], strides = [1, 1, 1, 1]} : vector<2x8x8x32xf32> to vector<2x1x8x32xf32>
    %602 = vector.shape_cast %601 : vector<2x1x8x32xf32> to vector<2x8x32xf32>
    %603 = vector.broadcast %600 : f32 to vector<2x8x32xf32>
    %604 = arith.mulf %603, %602 : vector<2x8x32xf32>
    %605 = arith.addf %599, %604 : vector<2x8x32xf32>
    %c3_192 = arith.constant 3 : index
    %c2_193 = arith.constant 2 : index
    %606 = memref.load %arg6[%c3_192, %c2_193] : memref<4x9xf32, #tpu.memory_space<smem>>
    %607 = vector.extract_strided_slice %444 {offsets = [0, 2, 0, 0], sizes = [2, 1, 8, 32], strides = [1, 1, 1, 1]} : vector<2x8x8x32xf32> to vector<2x1x8x32xf32>
    %608 = vector.shape_cast %607 : vector<2x1x8x32xf32> to vector<2x8x32xf32>
    %609 = vector.broadcast %606 : f32 to vector<2x8x32xf32>
    %610 = arith.mulf %609, %608 : vector<2x8x32xf32>
    %611 = arith.addf %605, %610 : vector<2x8x32xf32>
    %c3_194 = arith.constant 3 : index
    %c3_195 = arith.constant 3 : index
    %612 = memref.load %arg6[%c3_194, %c3_195] : memref<4x9xf32, #tpu.memory_space<smem>>
    %613 = vector.extract_strided_slice %444 {offsets = [0, 3, 0, 0], sizes = [2, 1, 8, 32], strides = [1, 1, 1, 1]} : vector<2x8x8x32xf32> to vector<2x1x8x32xf32>
    %614 = vector.shape_cast %613 : vector<2x1x8x32xf32> to vector<2x8x32xf32>
    %615 = vector.broadcast %612 : f32 to vector<2x8x32xf32>
    %616 = arith.mulf %615, %614 : vector<2x8x32xf32>
    %617 = arith.addf %611, %616 : vector<2x8x32xf32>
    %c3_196 = arith.constant 3 : index
    %c4_197 = arith.constant 4 : index
    %618 = memref.load %arg6[%c3_196, %c4_197] : memref<4x9xf32, #tpu.memory_space<smem>>
    %619 = vector.extract_strided_slice %444 {offsets = [0, 4, 0, 0], sizes = [2, 1, 8, 32], strides = [1, 1, 1, 1]} : vector<2x8x8x32xf32> to vector<2x1x8x32xf32>
    %620 = vector.shape_cast %619 : vector<2x1x8x32xf32> to vector<2x8x32xf32>
    %621 = vector.broadcast %618 : f32 to vector<2x8x32xf32>
    %622 = arith.mulf %621, %620 : vector<2x8x32xf32>
    %623 = arith.addf %617, %622 : vector<2x8x32xf32>
    %c3_198 = arith.constant 3 : index
    %c5_199 = arith.constant 5 : index
    %624 = memref.load %arg6[%c3_198, %c5_199] : memref<4x9xf32, #tpu.memory_space<smem>>
    %625 = vector.extract_strided_slice %444 {offsets = [0, 5, 0, 0], sizes = [2, 1, 8, 32], strides = [1, 1, 1, 1]} : vector<2x8x8x32xf32> to vector<2x1x8x32xf32>
    %626 = vector.shape_cast %625 : vector<2x1x8x32xf32> to vector<2x8x32xf32>
    %627 = vector.broadcast %624 : f32 to vector<2x8x32xf32>
    %628 = arith.mulf %627, %626 : vector<2x8x32xf32>
    %629 = arith.addf %623, %628 : vector<2x8x32xf32>
    %c3_200 = arith.constant 3 : index
    %c6_201 = arith.constant 6 : index
    %630 = memref.load %arg6[%c3_200, %c6_201] : memref<4x9xf32, #tpu.memory_space<smem>>
    %631 = vector.extract_strided_slice %444 {offsets = [0, 6, 0, 0], sizes = [2, 1, 8, 32], strides = [1, 1, 1, 1]} : vector<2x8x8x32xf32> to vector<2x1x8x32xf32>
    %632 = vector.shape_cast %631 : vector<2x1x8x32xf32> to vector<2x8x32xf32>
    %633 = vector.broadcast %630 : f32 to vector<2x8x32xf32>
    %634 = arith.mulf %633, %632 : vector<2x8x32xf32>
    %635 = arith.addf %629, %634 : vector<2x8x32xf32>
    %c3_202 = arith.constant 3 : index
    %c7_203 = arith.constant 7 : index
    %636 = memref.load %arg6[%c3_202, %c7_203] : memref<4x9xf32, #tpu.memory_space<smem>>
    %637 = vector.extract_strided_slice %444 {offsets = [0, 7, 0, 0], sizes = [2, 1, 8, 32], strides = [1, 1, 1, 1]} : vector<2x8x8x32xf32> to vector<2x1x8x32xf32>
    %638 = vector.shape_cast %637 : vector<2x1x8x32xf32> to vector<2x8x32xf32>
    %639 = vector.broadcast %636 : f32 to vector<2x8x32xf32>
    %640 = arith.mulf %639, %638 : vector<2x8x32xf32>
    %641 = arith.addf %635, %640 : vector<2x8x32xf32>
    %c3_204 = arith.constant 3 : index
    %c8_205 = arith.constant 8 : index
    %642 = memref.load %arg6[%c3_204, %c8_205] : memref<4x9xf32, #tpu.memory_space<smem>>
    %643 = vector.broadcast %642 : f32 to vector<2x8x32xf32>
    %644 = arith.addf %641, %643 : vector<2x8x32xf32>
    %645 = vector.shape_cast %494 : vector<2x8x32xf32> to vector<2x1x8x32xf32>
    %646 = vector.shape_cast %544 : vector<2x8x32xf32> to vector<2x1x8x32xf32>
    %647 = vector.shape_cast %594 : vector<2x8x32xf32> to vector<2x1x8x32xf32>
    %648 = vector.shape_cast %644 : vector<2x8x32xf32> to vector<2x1x8x32xf32>
    %649 = tpu.concatenate %645, %646, %647, %648 in 1 : vector<2x1x8x32xf32>, vector<2x1x8x32xf32>, vector<2x1x8x32xf32>, vector<2x1x8x32xf32> -> vector<2x4x8x32xf32>
    %c0_206 = arith.constant 0 : index
    %c0_207 = arith.constant 0 : index
    %c0_208 = arith.constant 0 : index
    %c0_209 = arith.constant 0 : index
    %650 = vector.load %arg7[%c0_206, %c0_207, %c0_208, %c0_209] : memref<2x4x8x32xf32, #tpu.memory_space<vmem>>, vector<2x4x8x32xf32>
    tpu.vector_store %arg7[%c0_206, %c0_207, %c0_208, %c0_209], %649 {strides = array<i32>} : memref<2x4x8x32xf32, #tpu.memory_space<vmem>>, vector<2x4x8x32xf32>,
    return
  }
  func.func @transform_0(%arg0: i32) -> (i32, i32, i32, i32) {
    %c0_i32 = arith.constant 0 : i32
    %c0_i32_0 = arith.constant 0 : i32
    %c0_i32_1 = arith.constant 0 : i32
    %c0_i32_2 = arith.constant 0 : i32
    %c0_i32_3 = arith.constant 0 : i32
    return %c0_i32, %c0_i32_0, %c0_i32_1, %c0_i32_2 : i32, i32, i32, i32
  }
  func.func @transform_1(%arg0: i32) -> (i32, i32) {
    %c0_i32 = arith.constant 0 : i32
    %c0_i32_0 = arith.constant 0 : i32
    %c0_i32_1 = arith.constant 0 : i32
    return %c0_i32, %c0_i32_0 : i32, i32
  }
  func.func @transform_2(%arg0: i32) -> (i32, i32) {
    %c0_i32 = arith.constant 0 : i32
    %c0_i32_0 = arith.constant 0 : i32
    %c0_i32_1 = arith.constant 0 : i32
    return %c0_i32, %c0_i32_0 : i32, i32
  }
  func.func @transform_3(%arg0: i32) -> (i32, i32) {
    %c0_i32 = arith.constant 0 : i32
    %c0_i32_0 = arith.constant 0 : i32
    %c0_i32_1 = arith.constant 0 : i32
    return %c0_i32, %c0_i32_0 : i32, i32
  }
  func.func @transform_4(%arg0: i32) -> (i32, i32) {
    %c0_i32 = arith.constant 0 : i32
    %c0_i32_0 = arith.constant 0 : i32
    %c0_i32_1 = arith.constant 0 : i32
    return %c0_i32, %c0_i32_0 : i32, i32
  }
  func.func @transform_5(%arg0: i32) -> (i32, i32) {
    %c0_i32 = arith.constant 0 : i32
    %c0_i32_0 = arith.constant 0 : i32
    %c0_i32_1 = arith.constant 0 : i32
    return %c0_i32, %c0_i32_0 : i32, i32
  }
  func.func @transform_6(%arg0: i32) -> (i32, i32, i32, i32) {
    %c0_i32 = arith.constant 0 : i32
    %c0_i32_0 = arith.constant 0 : i32
    %c0_i32_1 = arith.constant 0 : i32
    %c0_i32_2 = arith.constant 0 : i32
    %c0_i32_3 = arith.constant 0 : i32
    return %c0_i32, %c0_i32_0, %c0_i32_1, %c0_i32_2 : i32, i32, i32, i32
  }
}

</mosaic_0001>

<bundles_post_ra>
// kernel: tpu_custom_call.1
= control target key start
LH: loop header
LB: loop body
LE: loop exit
PB: predicated region body
PF: predicated region fallthrough
CT: control target
= control target key end

     0   :  { %s11970_s0 = inlined_call_operand.hbm [shape: f32[2,4,8,16], index: 0, kind: input, shape index: {}]   ;;  %s11971_s1 = inlined_call_operand.hbm [shape: f32[8,8], index: 1, kind: input, shape index: {}]   ;;  %s11972_s2 = inlined_call_operand.hbm [shape: f32[16,40], index: 2, kind: input, shape index: {}]   ;;  %s11973_s3 = inlined_call_operand.vmem [shape: f32[8,5], index: 3, kind: input, shape index: {}]   ;;  %s11974_s4 = inlined_call_operand.hbm [shape: f32[32,36], index: 4, kind: input, shape index: {}]   ;;  %s11975_s5 = inlined_call_operand.vmem [shape: f32[4,9], index: 5, kind: input, shape index: {}]   ;;  %s11976_s6 = inlined_call_operand.hbm [shape: f32[2,4,8,32], index: 6, kind: output, shape index: {}]  }
   0x1   :  { %12067 = sst [smem:[#allocation53_spill]] %s11976_s6 }
   0x2   :  { %11 = vsyncpa [#allocation3], 0 }
   0x3   :  { %12 = vsyncpa [#allocation7], 0 }
   0x4   :  { %13 = vsyncpa [#allocation5], 0 }
   0x5   :  { %14 = vsyncpa [#allocation11], 0 }
   0x6   :  { %15 = vsyncpa [#allocation13], 0 }
   0x7   :  { %16 = vsyncpa [#allocation4], 0  ;;  %s9371_s21 = smov [#allocation6]   ;;  %s9372_s23 = smov [#allocation2]  }
   0x8   :  { %s35_s22 = sshll.u32 %s9371_s21, 4  ;;  %s22_s24 = sshll.u32 %s9372_s23, 4  ;;  %s36_s22 = int_to_ptr.vmem [resolvable:$true] %s35_s22  ;;  %s9423_s24 = int_to_ptr.vmem [resolvable:$true] %s22_s24 }
   0x9   :  { %s9225_s27 = scalar_lea.hbm %s11971_s1, 128 }
   0xa   :  { %p9226_p0 = scmp.ne.s32.totalorder %s11971_s1, %s9225_s27  ;;  %p9229_p1 = scmp.lt.u32.totalorder %s9225_s27, %s11971_s1 }
   0xc   :  { %p9231_p2 = pnand %p9229_p1, %p9226_p0 }
   0xe   :  { %9234 = shalt.err (!%p9231_p2)
}
   0xf   :  { %s9235_s8 = scalar_lea.vmem %s36_s22, 128  ;;  %p9240_p4 = scmp.lt.s32.totalorder %s36_s22, %s36_s22 }
  0x10   :  { %p9236_p3 = scmp.ne.s32.totalorder %s36_s22, %s9235_s8  ;;  %p9241_p5 = scmp.lt.s32.totalorder %s9235_s8, %s9235_s8 }
  0x12   :  { %p9242_p6 = por %p9241_p5, %p9240_p4 }
  0x14   :  { %p9243_p7 = pnand %p9242_p6, %p9236_p3 }
  0x16   :  { %9246 = shalt.err (!%p9243_p7)
}
  0x17   :  { %38 = dma.hbm_to_vmem [thread:$0]  %s11971_s1, 128, %s36_s22, [#allocation7]  }
  0x18   :  { %s9247_s13 = scalar_lea.hbm %s11970_s0, 1024 }
  0x19   :  { %p9248_p8 = scmp.ne.s32.totalorder %s11970_s0, %s9247_s13  ;;  %p9251_p9 = scmp.lt.u32.totalorder %s9247_s13, %s11970_s0 }
  0x1b   :  { %p9253_p10 = pnand %p9251_p9, %p9248_p8 }
  0x1d   :  { %9256 = shalt.err (!%p9253_p10)
}
  0x1e   :  { %s9257_s18 = scalar_lea.vmem %s9423_s24, 1024  ;;  %p9262_p12 = scmp.lt.s32.totalorder %s9423_s24, %s9423_s24 }
  0x1f   :  { %p9258_p11 = scmp.ne.s32.totalorder %s9423_s24, %s9257_s18  ;;  %p9263_p13 = scmp.lt.s32.totalorder %s9257_s18, %s9257_s18 }
  0x21   :  { %p9264_p0 = por %p9263_p13, %p9262_p12 }
  0x23   :  { %p9265_p1 = pnand %p9264_p0, %p9258_p11 }
  0x25   :  { %9268 = shalt.err (!%p9265_p1)
}
  0x26   :  { %s12003_s1 = smov 128   ;;  %s12004_s19 = smov 8  }
  0x27   :  { %28 = dma.hbm_to_vmem [thread:$0]  %s11970_s0, 1024, %s9423_s24, [#allocation3], %s12003_s1, %s12003_s1, %s12004_s19  }
  0x28   :  { %s57_s25 = sshll.u32 %s11973_s3, 4  ;;  %s9375_s26 = smov [#allocation8]   ;;  %s58_s25 = int_to_ptr.vmem [resolvable:$true] %s57_s25 }
  0x29   :  { %s44_s27 = sshll.u32 %s9375_s26, 4  ;;  %s9269_s30 = scalar_lea.hbm %s11972_s2, 256  ;;  %s45_s27 = int_to_ptr.vmem [resolvable:$true] %s44_s27 }
  0x2a   :  { %p9270_p2 = scmp.ne.s32.totalorder %s11972_s2, %s9269_s30  ;;  %p9273_p3 = scmp.lt.u32.totalorder %s9269_s30, %s11972_s2 }
  0x2c   :  { %p9275_p4 = pnand %p9273_p3, %p9270_p2 }
  0x2e   :  { %9278 = shalt.err (!%p9275_p4)
}
  0x2f   :  { %s9279_s0 = scalar_lea.vmem %s45_s27, 256  ;;  %p9284_p6 = scmp.lt.s32.totalorder %s45_s27, %s45_s27 }
  0x30   :  { %p9280_p5 = scmp.ne.s32.totalorder %s45_s27, %s9279_s0  ;;  %p9285_p7 = scmp.lt.s32.totalorder %s9279_s0, %s9279_s0 }
  0x32   :  { %p9286_p8 = por %p9285_p7, %p9284_p6 }
  0x34   :  { %p9287_p9 = pnand %p9286_p8, %p9280_p5 }
  0x36   :  { %9290 = shalt.err (!%p9287_p9)
}
  0x37   :  { %50 = dma.hbm_to_vmem [thread:$0]  %s11972_s2, 256, %s45_s27, [#allocation7], %s12003_s1, %s12003_s1, %s12004_s19  }
  0x38   :  { %s9291_s11 = scalar_lea.vmem %s58_s25, 128  ;;  %p9296_p11 = scmp.lt.s32.totalorder %s58_s25, %s58_s25 }
  0x39   :  { %p9292_p10 = scmp.ne.s32.totalorder %s58_s25, %s9291_s11  ;;  %p9297_p12 = scmp.lt.s32.totalorder %s9291_s11, %s9291_s11 }
  0x3b   :  { %p9298_p13 = por %p9297_p12, %p9296_p11 }
  0x3d   :  { %p9299_p0 = pnand %p9298_p13, %p9292_p10 }
  0x3f   :  { %9302 = shalt.err (!%p9299_p0)
}
  0x40   :  { %s9376_s12 = smov [#allocation9]   ;;  %s79_s15 = sshll.u32 %s11975_s5, 4  ;;  %s80_s15 = int_to_ptr.vmem [resolvable:$true] %s79_s15 }
  0x41   :  { %60 = dma.vmem_to_smem %s58_s25, 128, %s9376_s12, [#allocation5]  }
  0x42   :  { %s9377_s16 = smov [#allocation10]   ;;  %s9303_s2 = scalar_lea.hbm %s11974_s4, 512 }
  0x43   :  { %s66_s17 = sshll.u32 %s9377_s16, 4  ;;  %p9304_p1 = scmp.ne.s32.totalorder %s11974_s4, %s9303_s2  ;;  %s67_s17 = int_to_ptr.vmem [resolvable:$true] %s66_s17 }
  0x44   :  { %p9307_p2 = scmp.lt.u32.totalorder %s9303_s2, %s11974_s4 }
  0x46   :  { %p9309_p3 = pnand %p9307_p2, %p9304_p1 }
  0x48   :  { %9312 = shalt.err (!%p9309_p3)
}
  0x49   :  { %s9313_s25 = scalar_lea.vmem %s67_s17, 512  ;;  %p9318_p5 = scmp.lt.s32.totalorder %s67_s17, %s67_s17 }
  0x4a   :  { %p9314_p4 = scmp.ne.s32.totalorder %s67_s17, %s9313_s25  ;;  %p9319_p6 = scmp.lt.s32.totalorder %s9313_s25, %s9313_s25 }
  0x4c   :  { %p9320_p7 = por %p9319_p6, %p9318_p5 }
  0x4e   :  { %p9321_p8 = pnand %p9320_p7, %p9314_p4 }
  0x50   :  { %9324 = shalt.err (!%p9321_p8)
}
  0x51   :  { %72 = dma.hbm_to_vmem [thread:$0]  %s11974_s4, 512, %s67_s17, [#allocation11], %s12003_s1, %s12003_s1, %s12004_s19  }
  0x52   :  { %s9325_s28 = scalar_lea.vmem %s80_s15, 64  ;;  %p9330_p10 = scmp.lt.s32.totalorder %s80_s15, %s80_s15 }
  0x53   :  { %p9326_p9 = scmp.ne.s32.totalorder %s80_s15, %s9325_s28  ;;  %p9331_p11 = scmp.lt.s32.totalorder %s9325_s28, %s9325_s28 }
  0x55   :  { %p9332_p12 = por %p9331_p11, %p9330_p10 }
  0x57   :  { %p9333_p13 = pnand %p9332_p12, %p9326_p9 }
  0x59   :  { %9336 = shalt.err (!%p9333_p13)
}
  0x5a   :  { %s9378_s29 = smov [#allocation12]  }
  0x5b   :  { %82 = dma.vmem_to_smem %s80_s15, 64, %s9378_s29, [#allocation13]  }
  0x5c   :  { %9359 = dma.done.wait [#allocation3], 1024  }
  0x5d   :  { %9360 = vsyncadd [#allocation3], 4294966272 }
  0x5e   :  { %9361 = dma.done.wait [#allocation7], 384  }
  0x5f   :  { %9362 = vsyncadd [#allocation7], 4294966912 }
  0x60   :  { %9363 = dma.done.wait [#allocation5], 128  }
  0x61   :  { %9364 = vsyncadd [#allocation5], 4294967168 }
  0x62   :  { %9365 = dma.done.wait [#allocation11], 512  }
  0x63   :  { %9366 = vsyncadd [#allocation11], 4294966784 }
  0x64   :  { %9367 = dma.done.wait [#allocation13], 64  }
  0x65   :  { %9368 = vsyncadd [#allocation13], 4294967232 }
  0x66   :  { %101 = sfence }
  0x67   :  { %v112_v0 = vld [vmem:[#allocation8] sm:$0xff]  ;;  %v113_v1 = vld [vmem:[#allocation8 + $0x8] sm:$0xff]  ;;  %v104_v2 = vld [vmem:[#allocation2] sm:$0xff]  ;;  %vm114_vm0 = vcmask 130048   ;;  %v11979_v4 = vmov 32   ;;  %v11981_v12 = vmov 0.0   ;;  %v534_v14 = vlaneseq }
  0x68   :  { %v8814_v3 = vpack.c.bf16 %v113_v1, %v112_v0  ;;  %8450 = vmatprep.mubr.msk.f32.mxu0 %vm114_vm0, %v104_v2  ;;  %8923 = vset.pattern.permute.xlu1 %v11979_v4  ;;  %v105_v5 = vld [vmem:[#allocation2 + $0x8] sm:$0xff]  ;;  %v106_v6 = vld [vmem:[#allocation2 + $0x10] sm:$0xff]  ;;  %v107_v7 = vld [vmem:[#allocation2 + $0x18] sm:$0xff]  ;;  %v11977_v13 = vmov 33   ;;  %s9382_s4 = smov 92   ;;  %v9383_v20 = vmov 35  }
  0x69   :  { %v108_v8 = vld [vmem:[#allocation2 + $0x20] sm:$0xff]  ;;  %v109_v9 = vld [vmem:[#allocation2 + $0x28] sm:$0xff]  ;;  %v110_v10 = vld [vmem:[#allocation2 + $0x30] sm:$0xff]  ;;  %8462 = vmatprep.subr.mxu1 %v11981_v12  ;;  %8922 = vset.pattern.permute.xlu0 %v11977_v13  ;;  %v9506_v15 = vand.u32 127, %v534_v14  ;;  %v9384_v23 = vmov 34   ;;  %v9638_v56 = vshrl.u32 %v534_v14, 7 }
  0x6a   :  { %8815 = vmatprep.subr.bf16.mxu0 %v8814_v3  ;;  %v111_v11 = vld [vmem:[#allocation2 + $0x38] sm:$0xff]  ;;  %v9658_v1 = vld [vmem:[#allocation6] sm:$0xff]  ;;  %vm640_vm7 = vcmask 64512   ;;  %s10442_s30 = sld [smem:[#allocation9 + $0x80]]  ;;  %s10444_s7 = sld [smem:[#allocation9 + $0x81]] }
  0x6b   :  { %8817 = vmatpush3.bf16.msra.mxu0 %v8814_v3  ;;  %12068 = vst [vmem:[#allocation21_spill] sm:$0xff] %v9506_v15  ;;  %vm934_vm1 = vcmp.ge.s32.totalorder %v9506_v15, 8  ;;  %vm935_vm2 = vcmp.lt.s32.totalorder %v9506_v15, 16  ;;  %v9645_v59 = vsub.s32 0, %v9638_v56  ;;  %v9648_v60 = vsub.s32 1, %v9638_v56  ;;  %s10446_s8 = sld [smem:[#allocation9]] }
  0x6c   :  { %8497 = vmatprep.subr.mxu0 %v11981_v12  ;;  %vm9512_vm3 = vmand %vm934_vm1, %vm935_vm2  ;;  %vm103_vm4 = vcmp.gt.f32.partialorder %v9658_v1, 0.0  ;;  %s10448_s9 = sld [smem:[#allocation9 + $0x100]]  ;;  %s10458_s11 = sld [smem:[#allocation9 + $0x1]] }
  0x6d   :  { %12078 = vst [vmem:[#allocation29_spill] sm:$0xff] %v9645_v59  ;;  %12079 = vst [vmem:[#allocation30_spill] sm:$0xff] %v9648_v60  ;;  %s10450_s10 = sld [smem:[#allocation9 + $0x180]]  ;;  %s10462_s13 = sld [smem:[#allocation9 + $0x101]] }
  0x6e   :  { %8451 = vmatmul.mubr.msk.f32.vlgmr.msra.gmra.mrb[0].mxu0 %vm114_vm0, %v105_v5  ;;  %s10452_s0 = sld [smem:[#allocation9 + $0x200]]  ;;  %s10464_s14 = sld [smem:[#allocation9 + $0x181]] }
  0x6f   :  { %8453 = vmatprep.mubr.msk.f32.mxu0 %vm114_vm0, %v106_v6  ;;  %s10454_s3 = sld [smem:[#allocation9 + $0x280]]  ;;  %s10466_s15 = sld [smem:[#allocation9 + $0x201]] }
  0x70   :  { %s10456_s24 = sld [smem:[#allocation9 + $0x300]]  ;;  %s10468_s16 = sld [smem:[#allocation9 + $0x281]] }
  0x71   :  { %s10460_s12 = sld [smem:[#allocation9 + $0x380]]  ;;  %s10470_s17 = sld [smem:[#allocation9 + $0x301]] }
  0x72   :  { %8454 = vmatmul.mubr.msk.f32.gmra.mrb[2].mxu0 %vm114_vm0, %v107_v7  ;;  %s10472_s18 = sld [smem:[#allocation9 + $0x381]]  ;;  %s10522_s20 = sld [smem:[#allocation9 + $0x2]] }
  0x73   :  { %8456 = vmatprep.mubr.msk.f32.mxu0 %vm114_vm0, %v108_v8  ;;  %s10524_s2 = sld [smem:[#allocation9 + $0x3]]  ;;  %s10526_s21 = sld [smem:[#allocation9 + $0x82]] }
  0x74   :  { %s10528_s22 = sld [smem:[#allocation9 + $0x102]]  ;;  %s10534_s25 = sld [smem:[#allocation9 + $0x83]] }
  0x75   :  { %s10530_s23 = sld [smem:[#allocation9 + $0x182]]  ;;  %s10538_s27 = sld [smem:[#allocation9 + $0x103]] }
  0x76   :  { %8457 = vmatmul.mubr.msk.f32.gmra.mrb[4].mxu0 %vm114_vm0, %v109_v9  ;;  %12098 = sst [smem:[#allocation33_spill]] %s10456_s24  ;;  %s10532_s26 = sld [smem:[#allocation9 + $0x202]] }
  0x77   :  { %8459 = vmatprep.mubr.msk.f32.mxu0 %vm114_vm0, %v110_v10  ;;  %12099 = sst [smem:[#allocation34_spill]] %s10460_s12  ;;  %s10536_s5 = sld [smem:[#allocation9 + $0x282]] }
  0x78   :  { %12100 = sst [smem:[#allocation35_spill]] %s10470_s17  ;;  %s10540_s28 = sld [smem:[#allocation9 + $0x183]] }
  0x79   :  { %12101 = sst [smem:[#allocation36_spill]] %s10472_s18  ;;  %s10546_s1 = sld [smem:[#allocation9 + $0x302]] }
  0x7a   :  { %8460 = vmatmul.mubr.msk.f32.gmra.mrb[6].mxu0 %vm114_vm0, %v111_v11  ;;  %s10542_s29 = sld [smem:[#allocation9 + $0x203]]  ;;  %s10548_s19 = sld [smem:[#allocation9 + $0x382]] }
  0x7b   :  { %12102 = sst [smem:[#allocation37_spill]] %s10530_s23  ;;  %s10550_s6 = sld [smem:[#allocation9 + $0x303]] }
  0x7f   :  { %12104 = sst [smem:[#allocation39_spill]] %s10546_s1 }
  0x80   :  { %12105 = sst [smem:[#allocation40_spill]] %s10548_s19 }
 0x141   :  { %v9516_v17 = vpop.f32.mrb[0].mxu0 }
 0x142   :  { %541 = vperm.xlu1 %8923, %v9516_v17   ;;  %254 = vrot.lane.b32.xlu0 %v9516_v17, %s9382_s4  ;;  %v9521_v18 = vpop.f32.mrb[1].mxu0 }
 0x143   :  { %12071 = vst [vmem:[#allocation22_spill] sm:$0xff] %v9521_v18  ;;  %8463 = vmatpush3.msk.msra.mxu1 %vm9512_vm3, %v9521_v18 }
 0x144   :  { %8467 = vmatprep.subr.mxu1 %v11981_v12 }
 0x145   :  { %v9527_v19 = vpop.f32.mrb[2].mxu0 }
 0x146   :  { %12072 = vst [vmem:[#allocation23_spill] sm:$0xff] %v9527_v19  ;;  %8925 = vset.pattern.permute.xlu1 %v9383_v20  ;;  %747 = vperm.xlu0 %8922, %v9516_v17   ;;  %v9531_v21 = vpop.f32.mrb[3].mxu0 }
 0x147   :  { %12073 = vst [vmem:[#allocation24_spill] sm:$0xff] %v9531_v21  ;;  %2917 = vperm.xlu1 %8925, %v9516_v17  }
 0x149   :  { %v9534_v22 = vpop.f32.mrb[4].mxu0 }
 0x14a   :  { %12074 = vst [vmem:[#allocation25_spill] sm:$0xff] %v9534_v22  ;;  %8924 = vset.pattern.permute.xlu0 %v9384_v23  ;;  %v9536_v24 = vpop.f32.mrb[5].mxu0 }
 0x14b   :  { %12075 = vst [vmem:[#allocation26_spill] sm:$0xff] %v9536_v24  ;;  %8926 = vset.pattern.permute.xlu1 %v11977_v13  ;;  %2120 = vperm.xlu0 %8924, %v9516_v17  }
 0x14c   :  { %743 = vperm.xlu1 %8926, %v9521_v18  }
 0x14d   :  { %v9541_v25 = vpop.f32.mrb[6].mxu0 }
 0x14e   :  { %12076 = vst [vmem:[#allocation27_spill] sm:$0xff] %v9541_v25  ;;  %v9543_v26 = vpop.f32.mrb[7].mxu0  ;;  %8498 = vmatpush3.msk.msra.mxu0 %vm9512_vm3, %v9541_v25 }
 0x14f   :  { %12077 = vst [vmem:[#allocation28_spill] sm:$0xff] %v9543_v26  ;;  %252 = vrot.lane.b32.xlu0 %v9521_v18, %s9382_s4  ;;  %8527 = vmatprep.subr.mxu0 %v11981_v12 }
 0x150   :  { %258 = vrot.lane.b32.xlu1 %v9527_v19, %s9382_s4  ;;  %8927 = vset.pattern.permute.xlu0 %v11979_v4 }
 0x153   :  { %537 = vperm.xlu0 %8927, %v9521_v18  }
 0x154   :  { %755 = vperm.xlu1 %8926, %v9527_v19  }
 0x157   :  { %8928 = vset.pattern.permute.xlu0 %v9384_v23 }
 0x158   :  { %2116 = vperm.xlu0 %8928, %v9521_v18   ;;  %256 = vrot.lane.b32.xlu1 %v9531_v21, %s9382_s4 }
 0x15c   :  { %8929 = vset.pattern.permute.xlu0 %v9383_v20  ;;  %751 = vperm.xlu1 %8926, %v9531_v21  }
 0x15d   :  { %2913 = vperm.xlu0 %8929, %v9521_v18  }
 0x160   :  { %262 = vrot.lane.b32.xlu1 %v9534_v22, %s9382_s4 }
 0x161   :  { %8930 = vset.pattern.permute.xlu0 %v11979_v4 }
 0x162   :  { %549 = vperm.xlu0 %8930, %v9527_v19  }
 0x164   :  { %763 = vperm.xlu1 %8926, %v9534_v22  }
 0x166   :  { %8931 = vset.pattern.permute.xlu0 %v9384_v23 }
 0x167   :  { %2128 = vperm.xlu0 %8931, %v9527_v19  }
 0x168   :  { %8937 = vset.pattern.permute.xlu1 %v11979_v4 }
 0x169   :  { %553 = vperm.xlu1 %8937, %v9536_v24  }
 0x16b   :  { %8932 = vset.pattern.permute.xlu0 %v11979_v4 }
 0x16c   :  { %545 = vperm.xlu0 %8932, %v9531_v21  }
 0x16d   :  { %266 = vrot.lane.b32.xlu1 %v9541_v25, %s9382_s4 }
 0x16e   :  { %8939 = vset.pattern.permute.xlu1 %v11977_v13 }
 0x170   :  { %8933 = vset.pattern.permute.xlu0 %v9384_v23 }
 0x171   :  { %2124 = vperm.xlu0 %8933, %v9531_v21   ;;  %771 = vperm.xlu1 %8939, %v9541_v25  }
 0x175   :  { %8934 = vset.pattern.permute.xlu0 %v9383_v20  ;;  %8940 = vset.pattern.permute.xlu1 %v11979_v4 }
 0x176   :  { %2921 = vperm.xlu0 %8934, %v9531_v21   ;;  %565 = vperm.xlu1 %8940, %v9541_v25  }
 0x17a   :  { %8935 = vset.pattern.permute.xlu0 %v11979_v4  ;;  %8944 = vset.pattern.permute.xlu1 %v9384_v23 }
 0x17b   :  { %557 = vperm.xlu0 %8935, %v9534_v22   ;;  %2144 = vperm.xlu1 %8944, %v9541_v25  }
 0x17f   :  { %260 = vrot.lane.b32.xlu0 %v9536_v24, %s9382_s4 }
 0x180   :  { %8936 = vset.pattern.permute.xlu0 %v11977_v13 }
 0x183   :  { %759 = vperm.xlu0 %8936, %v9536_v24  }
 0x187   :  { %8938 = vset.pattern.permute.xlu0 %v9384_v23 }
 0x188   :  { %2132 = vperm.xlu0 %8938, %v9536_v24  }
 0x18c   :  { %264 = vrot.lane.b32.xlu0 %v9543_v26, %s9382_s4  ;;  %s10544_s4 = sld [smem:[#allocation9 + $0x283]] }
 0x18d   :  { %8941 = vset.pattern.permute.xlu0 %v11977_v13 }
 0x190   :  { %767 = vperm.xlu0 %8941, %v9543_v26  }
 0x192   :  { %12103 = sst [smem:[#allocation38_spill]] %s10544_s4 }
 0x194   :  { %8942 = vset.pattern.permute.xlu0 %v11979_v4 }
 0x195   :  { %561 = vperm.xlu0 %8942, %v9543_v26  }
 0x199   :  { %8943 = vset.pattern.permute.xlu0 %v9384_v23 }
 0x19a   :  { %2140 = vperm.xlu0 %8943, %v9543_v26  }
 0x19e   :  { %2136 = vperm.xlu0 %8943, %v9534_v22  }
 0x1b4   :  { %v255_v27 = vpop.permute.xlu0 %254 }
 0x1bc   :  { %308 = vxpose.xlu0.b32.start.end [1/1] (short) (narrow) %v255_v27, 8 }
 0x1c1   :  { %v542_v28 = vpop.permute.xlu1 %541 }
 0x1c5   :  { %v748_v29 = vpop.permute.xlu0 %747 }
 0x1c6   :  { %v9597_v30 = vpop.permute.xlu1 %2917 }
 0x1ca   :  { %v9599_v31 = vpop.permute.xlu0 %2120 }
 0x1cb   :  { %v9601_v32 = vpop.permute.xlu1 %743 }
 0x1ce   :  { %v253_v33 = vpop.permute.xlu0 %252 }
 0x1cf   :  { %v259_v34 = vpop.permute.xlu1 %258  ;;  %276 = vxpose.xlu1.b32.start.end [1/1] (short) (narrow) %v253_v33, 8 }
 0x1d2   :  { %v538_v35 = vpop.permute.xlu0 %537 }
 0x1d3   :  { %v9603_v36 = vpop.permute.xlu1 %755  ;;  %372 = vxpose.xlu1.b32.start.end [1/1] (short) (narrow) %v259_v34, 8 }
 0x1d7   :  { %v9605_v37 = vpop.permute.xlu0 %2116  ;;  %v257_v38 = vpop.permute.xlu1 %256 }
 0x1d8   :  { %340 = vxpose.xlu0.b32.start.end [1/1] (short) (narrow) %v257_v38, 8 }
 0x1db   :  { %v9607_v39 = vpop.permute.xlu1 %751 }
 0x1dc   :  { %v9609_v40 = vpop.permute.xlu0 %2913 }
 0x1df   :  { %v263_v41 = vpop.permute.xlu1 %262 }
 0x1e0   :  { %436 = vxpose.xlu0.b32.start.end [1/1] (short) (narrow) %v263_v41, 8 }
 0x1e1   :  { %v9611_v42 = vpop.permute.xlu0 %549 }
 0x1e3   :  { %v9633_v54 = vpop.permute.xlu1 %763 }
 0x1e6   :  { %v9613_v43 = vpop.permute.xlu0 %2128 }
 0x1e8   :  { %v9640_v57 = vpop.permute.xlu1 %553 }
 0x1eb   :  { %v9615_v44 = vpop.permute.xlu0 %545 }
 0x1ec   :  { %v9650_v61 = vpop.permute.xlu1 %266 }
 0x1f0   :  { %v9617_v45 = vpop.permute.xlu0 %2124  ;;  %v9660_v2 = vpop.permute.xlu1 %771 }
 0x1f5   :  { %v9619_v46 = vpop.permute.xlu0 %2921  ;;  %v9671_v14 = vpop.permute.xlu1 %565 }
 0x1fa   :  { %v9621_v47 = vpop.permute.xlu0 %557  ;;  %v9677_v27 = vpop.permute.xlu1 %2144 }
 0x1fe   :  { %v261_v48 = vpop.permute.xlu0 %260 }
 0x1ff   :  { %404 = vxpose.xlu0.b32.start.end [1/1] (short) (narrow) %v261_v48, 8 }
 0x202   :  { %v9623_v49 = vpop.permute.xlu0 %759 }
 0x207   :  { %v9625_v50 = vpop.permute.xlu0 %2132 }
 0x20b   :  { %v265_v51 = vpop.permute.xlu0 %264 }
 0x20c   :  { %468 = vxpose.xlu1.b32.start.end [1/1] (short) (narrow) %v265_v51, 8 }
 0x20f   :  { %v9627_v52 = vpop.permute.xlu0 %767 }
 0x214   :  { %v9631_v53 = vpop.permute.xlu0 %561 }
 0x219   :  { %v9635_v55 = vpop.permute.xlu0 %2140 }
 0x21d   :  { %v9642_v58 = vpop.permute.xlu0 %2136 }
 0x228   :  { %8945 = vset.pattern.permute.xlu0 %v9383_v20 }
 0x22a   :  { %8946 = vset.pattern.permute.xlu1 %v9383_v20 }
 0x23c   :  { %v9652_v62 = vpop.trf.xlu0 }
 0x23d   :  { %v575_v63 = vrot.slane %v9652_v62, %v9645_v59  ;;  %v781_v0 = vrot.slane %v9652_v62, %v9648_v60 }
 0x23f   :  { %v807_v3 = vadd.f32 %v781_v0, %v748_v29  ;;  %v601_v5 = vadd.f32 %v575_v63, %v542_v28 }
 0x241   :  { %vm815_vm5 = vcmp.gt.f32.partialorder %v807_v3, 0.0  ;;  %v823_v6 = vmul.f32 0.2, %v807_v3  ;;  %vm609_vm6 = vcmp.gt.f32.partialorder %v601_v5, 0.0  ;;  %v617_v7 = vmul.f32 0.2, %v601_v5 }
 0x243   :  { %v831_v8 = vsel %vm815_vm5, %v807_v3, %v823_v6  ;;  %v625_v9 = vsel %vm609_vm6, %v601_v5, %v617_v7 }
 0x244   :  { %v9665_v10 = vsel %vm103_vm4, %v831_v8, -9e+15  ;;  %v9669_v11 = vsel %vm103_vm4, %v625_v9, -9e+15 }
 0x245   :  { %v849_v20 = vsel %vm640_vm7, %v9665_v10, -inf  ;;  %v644_v23 = vsel %vm640_vm7, %v9669_v11, -inf }
 0x246   :  { %850 = vmax.xlane.f32.xlu0 %v849_v20  ;;  %645 = vmax.xlane.f32.xlu1 %v644_v23 }
 0x24f   :  { %v9679_v28 = vpop.trf.xlu1 }
 0x250   :  { %v571_v29 = vrot.slane %v9679_v28, %v9645_v59  ;;  %v777_v33 = vrot.slane %v9679_v28, %v9648_v60 }
 0x252   :  { %v806_v34 = vadd.f32 %v777_v33, %v9601_v32  ;;  %v600_v38 = vadd.f32 %v571_v29, %v538_v35 }
 0x253   :  { %v9686_v41 = vpop.trf.xlu1 }
 0x254   :  { %v789_v48 = vrot.slane %v9686_v41, %v9648_v60  ;;  %vm814_vm8 = vcmp.gt.f32.partialorder %v806_v34, 0.0  ;;  %v822_v51 = vmul.f32 0.2, %v806_v34  ;;  %vm608_vm9 = vcmp.gt.f32.partialorder %v600_v38, 0.0 }
 0x255   :  { %v616_v63 = vmul.f32 0.2, %v600_v38 }
 0x256   :  { %v809_v0 = vadd.f32 %v789_v48, %v9603_v36  ;;  %v830_v3 = vsel %vm814_vm8, %v806_v34, %v822_v51 }
 0x257   :  { %v624_v5 = vsel %vm608_vm9, %v600_v38, %v616_v63  ;;  %v9695_v7 = vsel %vm103_vm4, %v830_v3, -9e+15 }
 0x258   :  { %v9691_v6 = vpop.trf.xlu0  ;;  %v9699_v32 = vsel %vm103_vm4, %v624_v5, -9e+15  ;;  %vm817_vm10 = vcmp.gt.f32.partialorder %v809_v0, 0.0  ;;  %v846_v8 = vsel %vm640_vm7, %v9695_v7, -inf  ;;  %v825_v9 = vmul.f32 0.2, %v809_v0 }
 0x259   :  { %v785_v35 = vrot.slane %v9691_v6, %v9648_v60  ;;  %v641_v36 = vsel %vm640_vm7, %v9699_v32, -inf  ;;  %v579_v20 = vrot.slane %v9691_v6, %v9645_v59  ;;  %847 = vmax.xlane.f32.xlu1 %v846_v8 }
 0x25a   :  { %642 = vmax.xlane.f32.xlu0 %v641_v36  ;;  %v833_v29 = vsel %vm817_vm10, %v809_v0, %v825_v9 }
 0x25b   :  { %v808_v23 = vadd.f32 %v785_v35, %v9607_v39  ;;  %v9712_v33 = vsel %vm103_vm4, %v833_v29, -9e+15  ;;  %v602_v51 = vadd.f32 %v579_v20, %v9615_v44 }
 0x25c   :  { %v855_v38 = vsel %vm640_vm7, %v9712_v33, -inf }
 0x25d   :  { %vm816_vm11 = vcmp.gt.f32.partialorder %v808_v23, 0.0  ;;  %v824_v34 = vmul.f32 0.2, %v808_v23  ;;  %856 = vmax.xlane.f32.xlu1 %v855_v38  ;;  %v618_v35 = vmul.f32 0.2, %v602_v51  ;;  %vm610_vm12 = vcmp.gt.f32.partialorder %v602_v51, 0.0 }
 0x25f   :  { %v832_v48 = vsel %vm816_vm11, %v808_v23, %v824_v34  ;;  %v626_v36 = vsel %vm610_vm12, %v602_v51, %v618_v35 }
 0x260   :  { %v9717_v63 = vpop.trf.xlu0  ;;  %v9721_v3 = vsel %vm103_vm4, %v832_v48, -9e+15  ;;  %v9736_v23 = vsel %vm103_vm4, %v626_v36, -9e+15 }
 0x261   :  { %v797_v39 = vrot.slane %v9717_v63, %v9648_v60  ;;  %v852_v0 = vsel %vm640_vm7, %v9721_v3, -inf }
 0x262   :  { %853 = vmax.xlane.f32.xlu1 %v852_v0 }
 0x263   :  { %v811_v5 = vadd.f32 %v797_v39, %v9633_v54  ;;  %v647_v54 = vsel %vm640_vm7, %v9736_v23, -inf }
 0x265   :  { %vm819_vm13 = vcmp.gt.f32.partialorder %v811_v5, 0.0  ;;  %v827_v8 = vmul.f32 0.2, %v811_v5 }
 0x267   :  { %v835_v44 = vsel %vm819_vm13, %v811_v5, %v827_v8 }
 0x268   :  { %v9730_v9 = vsel %vm103_vm4, %v835_v44, -9e+15 }
 0x269   :  { %v861_v20 = vsel %vm640_vm7, %v9730_v9, -inf }
 0x26a   :  { %862 = vmax.xlane.f32.xlu1 %v861_v20 }
 0x26e   :  { %648 = vmax.xlane.f32.xlu1 %v647_v54 }
 0x27f   :  { %v9740_v29 = vpop.trf.xlu0 }
 0x280   :  { %v793_v34 = vrot.slane %v9740_v29, %v9648_v60  ;;  %v587_v54 = vrot.slane %v9740_v29, %v9645_v59 }
 0x282   :  { %v810_v38 = vadd.f32 %v793_v34, %v9623_v49 }
 0x284   :  { %vm818_vm14 = vcmp.gt.f32.partialorder %v810_v38, 0.0  ;;  %v826_v48 = vmul.f32 0.2, %v810_v38 }
 0x286   :  { %v834_v51 = vsel %vm818_vm14, %v810_v38, %v826_v48 }
 0x287   :  { %v9747_v39 = vsel %vm103_vm4, %v834_v51, -9e+15  ;;  %v604_v51 = vadd.f32 %v587_v54, %v9640_v57 }
 0x288   :  { %v858_v0 = vsel %vm640_vm7, %v9747_v39, -inf }
 0x289   :  { %859 = vmax.xlane.f32.xlu0 %v858_v0  ;;  %v9777_v0 = vsub.s32 2, %v9638_v56  ;;  %vm612_vm1 = vcmp.gt.f32.partialorder %v604_v51, 0.0 }
 0x28c   :  { %v9751_v5 = vpop.trf.xlu1 }
 0x28d   :  { %v801_v35 = vrot.slane %v9751_v5, %v9648_v60  ;;  %v595_v38 = vrot.slane %v9751_v5, %v9645_v59 }
 0x28f   :  { %v812_v8 = vadd.f32 %v801_v35, %v9627_v52  ;;  %v583_v52 = vrot.slane %v9686_v41, %v9645_v59  ;;  %v2150_v35 = vrot.slane %v9679_v28, %v9777_v0 }
 0x291   :  { %vm820_vm15 = vcmp.gt.f32.partialorder %v812_v8, 0.0  ;;  %v828_v49 = vmul.f32 0.2, %v812_v8  ;;  %v603_v34 = vadd.f32 %v583_v52, %v9611_v42  ;;  %v2179_v54 = vadd.f32 %v2150_v35, %v9605_v37 }
 0x293   :  { %v836_v44 = vsel %vm820_vm15, %v812_v8, %v828_v49  ;;  %v619_v48 = vmul.f32 0.2, %v603_v34  ;;  %vm611_vm0 = vcmp.gt.f32.partialorder %v603_v34, 0.0  ;;  %v620_v49 = vmul.f32 0.2, %v604_v51 }
 0x294   :  { %v9758_v36 = vsel %vm103_vm4, %v836_v44, -9e+15  ;;  %v606_v44 = vadd.f32 %v595_v38, %v9631_v53  ;;  %vm2187_vm6 = vcmp.gt.f32.partialorder %v2179_v54, 0.0 }
 0x295   :  { %v864_v20 = vsel %vm640_vm7, %v9758_v36, -inf  ;;  %v627_v8 = vsel %vm611_vm0, %v603_v34, %v619_v48  ;;  %v628_v57 = vsel %vm612_vm1, %v604_v51, %v620_v49  ;;  %v2162_v34 = vrot.slane %v9686_v41, %v9777_v0 }
 0x296   :  { %865 = vmax.xlane.f32.xlu1 %v864_v20  ;;  %v9784_v42 = vsel %vm103_vm4, %v627_v8, -9e+15  ;;  %v2158_v20 = vrot.slane %v9691_v6, %v9777_v0  ;;  %v622_v52 = vmul.f32 0.2, %v606_v44  ;;  %vm614_vm5 = vcmp.gt.f32.partialorder %v606_v44, 0.0 }
 0x297   :  { %v9793_v53 = vsel %vm103_vm4, %v628_v57, -9e+15  ;;  %v2195_v48 = vmul.f32 0.2, %v2179_v54  ;;  %v2182_v57 = vadd.f32 %v2162_v34, %v9613_v43 }
 0x298   :  { %v630_v38 = vsel %vm614_vm5, %v606_v44, %v622_v52  ;;  %v2181_v8 = vadd.f32 %v2158_v20, %v9617_v45  ;;  %v653_v37 = vsel %vm640_vm7, %v9793_v53, -inf  ;;  %v2174_v20 = vrot.slane %v9751_v5, %v9777_v0 }
 0x299   :  { %v9802_v51 = vsel %vm103_vm4, %v630_v38, -9e+15  ;;  %v2203_v35 = vsel %vm2187_vm6, %v2179_v54, %v2195_v48  ;;  %v2198_v38 = vmul.f32 0.2, %v2182_v57  ;;  %vm2190_vm9 = vcmp.gt.f32.partialorder %v2182_v57, 0.0 }
 0x29a   :  { %v2197_v49 = vmul.f32 0.2, %v2181_v8  ;;  %vm2189_vm8 = vcmp.gt.f32.partialorder %v2181_v8, 0.0  ;;  %v659_v45 = vsel %vm640_vm7, %v9802_v51, -inf  ;;  %v9811_v44 = vsel %vm103_vm4, %v2203_v35, -9e+15 }
 0x29b   :  { %v9817_v54 = vsub.s32 3, %v9638_v56  ;;  %v2219_v43 = vsel %vm640_vm7, %v9811_v44, -inf  ;;  %v2206_v35 = vsel %vm2190_vm9, %v2182_v57, %v2198_v38 }
 0x29c   :  { %v2205_v52 = vsel %vm2189_vm8, %v2181_v8, %v2197_v49  ;;  %v2185_v49 = vadd.f32 %v2174_v20, %v9635_v55  ;;  %v9832_v56 = vsel %vm103_vm4, %v2206_v35, -9e+15 }
 0x29d   :  { %v9823_v34 = vsel %vm103_vm4, %v2205_v52, -9e+15  ;;  %v2947_v48 = vrot.slane %v9679_v28, %v9817_v54  ;;  %v2228_v55 = vsel %vm640_vm7, %v9832_v56, -inf }
 0x29e   :  { %v2201_v52 = vmul.f32 0.2, %v2185_v49  ;;  %vm2193_vm11 = vcmp.gt.f32.partialorder %v2185_v49, 0.0 }
 0x29f   :  { %2937 = vperm.xlu0 %8945, %v9543_v26   ;;  %v2976_v28 = vadd.f32 %v2947_v48, %v9609_v40  ;;  %v591_v26 = vrot.slane %v9717_v63, %v9645_v59 }
 0x2a0   :  { %v2209_v20 = vsel %vm2193_vm11, %v2185_v49, %v2201_v52  ;;  %v2154_v52 = vrot.slane %v9652_v62, %v9777_v0 }
 0x2a1   :  { %v2992_v38 = vmul.f32 0.2, %v2976_v28  ;;  %vm2984_vm12 = vcmp.gt.f32.partialorder %v2976_v28, 0.0  ;;  %v9848_v40 = vsel %vm103_vm4, %v2209_v20, -9e+15 }
 0x2a3   :  { %8947 = vset.pattern.permute.xlu0 %v11977_v13  ;;  %v650_v13 = vsel %vm640_vm7, %v9784_v42, -inf  ;;  %v3000_v48 = vsel %vm2984_vm12, %v2976_v28, %v2992_v38  ;;  %v2180_v28 = vadd.f32 %v2154_v52, %v9599_v31 }
 0x2a4   :  { %v9854_v49 = vsel %vm103_vm4, %v3000_v48, -9e+15 }
 0x2a5   :  { %vm2188_vm14 = vcmp.gt.f32.partialorder %v2180_v28, 0.0 }
 0x2a7   :  { %2925 = vperm.xlu1 %8946, %v9527_v19  }
 0x2ab   :  { %2929 = vperm.xlu1 %8946, %v9536_v24  }
 0x2af   :  { %2933 = vperm.xlu1 %8946, %v9534_v22  }
 0x2b3   :  { %2941 = vperm.xlu1 %8946, %v9541_v25  }
 0x2be   :  { %651 = vmax.xlane.f32.xlu0 %v650_v13  ;;  %v2166_v13 = vrot.slane %v9740_v29, %v9777_v0 }
 0x2c2   :  { %654 = vmax.xlane.f32.xlu0 %v653_v37  ;;  %v2183_v37 = vadd.f32 %v2166_v13, %v9625_v50  ;;  %v2225_v50 = vsel %vm640_vm7, %v9823_v34, -inf  ;;  %v2951_v13 = vrot.slane %v9652_v62, %v9817_v54 }
 0x2c4   :  { %v2199_v8 = vmul.f32 0.2, %v2183_v37  ;;  %vm2191_vm10 = vcmp.gt.f32.partialorder %v2183_v37, 0.0 }
 0x2c6   :  { %660 = vmax.xlane.f32.xlu0 %v659_v45  ;;  %v2207_v45 = vsel %vm2191_vm10, %v2183_v37, %v2199_v8  ;;  %v2237_v8 = vsel %vm640_vm7, %v9848_v40, -inf }
 0x2c7   :  { %v9841_v57 = vsel %vm103_vm4, %v2207_v45, -9e+15 }
 0x2c8   :  { %v2231_v37 = vsel %vm640_vm7, %v9841_v57, -inf }
 0x2ca   :  { %2220 = vmax.xlane.f32.xlu0 %v2219_v43  ;;  %v2977_v43 = vadd.f32 %v2951_v13, %v9597_v30 }
 0x2cc   :  { %v2993_v35 = vmul.f32 0.2, %v2977_v43  ;;  %vm2985_vm13 = vcmp.gt.f32.partialorder %v2977_v43, 0.0 }
 0x2ce   :  { %2226 = vmax.xlane.f32.xlu0 %v2225_v50  ;;  %v3001_v30 = vsel %vm2985_vm13, %v2977_v43, %v2993_v35  ;;  %v3016_v50 = vsel %vm640_vm7, %v9854_v49, -inf }
 0x2cf   :  { %v9861_v13 = vsel %vm103_vm4, %v3001_v30, -9e+15 }
 0x2d0   :  { %v3019_v45 = vsel %vm640_vm7, %v9861_v13, -inf }
 0x2d2   :  { %2229 = vmax.xlane.f32.xlu0 %v2228_v55  ;;  %v2196_v55 = vmul.f32 0.2, %v2180_v28 }
 0x2d3   :  { %v9875_v43 = vpop.xlane.xlu1 %645  ;;  %v851_v35 = vpop.xlane.xlu0 %850 }
 0x2d6   :  { %2232 = vmax.xlane.f32.xlu0 %v2231_v37 }
 0x2da   :  { %2238 = vmax.xlane.f32.xlu0 %v2237_v8  ;;  %v871_v8 = vsub.f32 %v9665_v10, %v851_v35 }
 0x2dc   :  { %500 = vxpose.xlu1.b32.start.end [1/1] (short) (narrow) %v9650_v61, 8  ;;  %v2204_v61 = vsel %vm2188_vm14, %v2180_v28, %v2196_v55  ;;  %vm9385_vm14 = vmmov 0  }
 0x2dd   :  { %v9871_v20 = vsel %vm103_vm4, %v2204_v61, -9e+15  ;;  %v2959_v61 = vrot.slane %v9686_v41, %v9817_v54 }
 0x2de   :  { %3017 = vmax.xlane.f32.xlu0 %v3016_v50  ;;  %v2222_v38 = vsel %vm640_vm7, %v9871_v20, -inf  ;;  %v880_v50 = vmul.f32 1.442695, %v871_v8 }
 0x2e0   :  { %8969 = vpow2.f32 %v880_v50 }
 0x2e2   :  { %3020 = vmax.xlane.f32.xlu0 %v3019_v45 }
 0x2e6   :  { %v9877_v37 = vpop.xlane.xlu1 %847 }
 0x2e7   :  { %v643_v12 = vpop.xlane.xlu0 %642 }
 0x2ea   :  { %v857_v62 = vpop.xlane.xlu1 %856 }
 0x2eb   :  { %v873_v45 = vsub.f32 %v9712_v33, %v857_v62 }
 0x2ed   :  { %v884_v28 = vmul.f32 1.442695, %v873_v45 }
 0x2ef   :  { %v854_v48 = vpop.xlane.xlu1 %853  ;;  %8971 = vpow2.f32 %v884_v28 }
 0x2f0   :  { %v872_v55 = vsub.f32 %v9721_v3, %v854_v48  ;;  %v2967_v3 = vrot.slane %v9717_v63, %v9817_v54  ;;  %v9902_v48 = vpop.eup %8969 }
 0x2f2   :  { %v882_v25 = vmul.f32 1.442695, %v872_v55 }
 0x2f4   :  { %8973 = vpow2.f32 %v882_v25  ;;  %v897_v25 = vsel %vm640_vm7, %v9902_v48, 0.0 }
 0x2f7   :  { %v9879_v31 = vpop.xlane.xlu1 %862 }
 0x2f9   :  { %v9908_v55 = vpop.eup %8971 }
 0x2fa   :  { %8948 = vset.pattern.permute.xlu1 %v11979_v4  ;;  %12080 = vst [vmem:[#allocation31_spill] sm:$0xff] %v9908_v55 }
 0x2fb   :  { %v9882_v30 = vpop.xlane.xlu1 %648 }
 0x303   :  { %2223 = vmax.xlane.f32.xlu1 %v2222_v38 }
 0x316   :  { %v9892_v33 = vpop.xlane.xlu0 %859 }
 0x31e   :  { %v2938_v28 = vpop.permute.xlu0 %2937 }
 0x323   :  { %v9885_v52 = vpop.xlane.xlu1 %865 }
 0x327   :  { %v2926_v38 = vpop.permute.xlu1 %2925 }
 0x328   :  { %v2979_v4 = vadd.f32 %v2959_v61, %v2926_v38 }
 0x32a   :  { %v2995_v10 = vmul.f32 0.2, %v2979_v4  ;;  %vm2987_vm15 = vcmp.gt.f32.partialorder %v2979_v4, 0.0 }
 0x32b   :  { %v9890_v35 = vpop.permute.xlu1 %2929 }
 0x32c   :  { %v3003_v8 = vsel %vm2987_vm15, %v2979_v4, %v2995_v10  ;;  %v2971_v4 = vrot.slane %v9751_v5, %v9817_v54  ;;  %v903_v10 = vsel %vm640_vm7, %v9908_v55, 0.0  ;;  %vm2307_vm15 = vcmp.ge.s32.totalorder %v9506_v15, 16 }
 0x32d   :  { %v9896_v62 = vsel %vm103_vm4, %v3003_v8, -9e+15  ;;  %v9912_v8 = vpop.eup %8973 }
 0x32e   :  { %v3025_v41 = vsel %vm640_vm7, %v9896_v62, -inf  ;;  %v2982_v61 = vadd.f32 %v2971_v4, %v2938_v28  ;;  %12081 = vst [vmem:[#allocation32_spill] sm:$0xff] %v9912_v8  ;;  %v900_v5 = vsel %vm640_vm7, %v9912_v8, 0.0 }
 0x32f   :  { %3026 = vmax.xlane.f32.xlu1 %v3025_v41  ;;  %v2934_v50 = vpop.permute.xlu1 %2933 }
 0x330   :  { %v2981_v45 = vadd.f32 %v2967_v3, %v2934_v50  ;;  %v2998_v41 = vmul.f32 0.2, %v2982_v61  ;;  %vm2990_vm1 = vcmp.gt.f32.partialorder %v2982_v61, 0.0 }
 0x332   :  { %v2997_v38 = vmul.f32 0.2, %v2981_v45  ;;  %vm2989_vm0 = vcmp.gt.f32.partialorder %v2981_v45, 0.0  ;;  %v3006_v28 = vsel %vm2990_vm1, %v2982_v61, %v2998_v41  ;;  %v2955_v61 = vrot.slane %v9691_v6, %v9817_v54 }
 0x333   :  { %898 = vadd.xlane.f32.xlu1 %v897_v25  ;;  %v9924_v25 = vsel %vm103_vm4, %v3006_v28, -9e+15  ;;  %v667_v28 = vsub.f32 %v9736_v23, %v9882_v30  ;;  %v2942_v18 = vpop.permute.xlu1 %2941  ;;  %v870_v23 = vsub.f32 %v9695_v7, %v9877_v37 }
 0x334   :  { %v3005_v3 = vsel %vm2989_vm0, %v2981_v45, %v2997_v38  ;;  %v3034_v45 = vsel %vm640_vm7, %v9924_v25, -inf  ;;  %vm3105_vm0 = vcmp.lt.s32.totalorder %v9506_v15, 32 }
 0x335   :  { %v9918_v50 = vsel %vm103_vm4, %v3005_v3, -9e+15  ;;  %v665_v3 = vsub.f32 %v9699_v32, %v643_v12  ;;  %v677_v55 = vmul.f32 1.442695, %v667_v28  ;;  %v878_v37 = vmul.f32 1.442695, %v870_v23  ;;  %vm10120_vm1 = vmand %vm2307_vm15, %vm3105_vm0 }
 0x336   :  { %v3031_v4 = vsel %vm640_vm7, %v9918_v50, -inf }
 0x337   :  { %904 = vadd.xlane.f32.xlu1 %v903_v10 }
 0x33b   :  { %901 = vadd.xlane.f32.xlu1 %v900_v5 }
 0x33f   :  { %3032 = vmax.xlane.f32.xlu1 %v3031_v4  ;;  %v673_v4 = vmul.f32 1.442695, %v665_v3 }
 0x341   :  { %8975 = vpow2.f32 %v673_v4 }
 0x342   :  { %8977 = vpow2.f32 %v677_v55 }
 0x343   :  { %3035 = vmax.xlane.f32.xlu1 %v3034_v45  ;;  %v2978_v45 = vadd.f32 %v2955_v61, %v9619_v46  ;;  %v605_v46 = vadd.f32 %v591_v26, %v9621_v47 }
 0x345   :  { %vm2986_vm5 = vcmp.gt.f32.partialorder %v2978_v45, 0.0  ;;  %v2994_v30 = vmul.f32 0.2, %v2978_v45  ;;  %vm613_vm9 = vcmp.gt.f32.partialorder %v605_v46, 0.0  ;;  %v621_v26 = vmul.f32 0.2, %v605_v46 }
 0x347   :  { %v3002_v19 = vsel %vm2986_vm5, %v2978_v45, %v2994_v30  ;;  %vm730_vm5 = vcmp.lt.s32.totalorder %v9506_v15, 8 }
 0x34b   :  { %v9928_v38 = vpop.xlane.xlu0 %651 }
 0x34f   :  { %v655_v10 = vpop.xlane.xlu0 %654 }
 0x350   :  { %v669_v22 = vsub.f32 %v9793_v53, %v655_v10 }
 0x352   :  { %v681_v3 = vmul.f32 1.442695, %v669_v22 }
 0x353   :  { %v9930_v5 = vpop.xlane.xlu0 %660 }
 0x354   :  { %8979 = vpow2.f32 %v681_v3 }
 0x355   :  { %8981 = vpow2.f32 %v878_v37 }
 0x357   :  { %v2221_v41 = vpop.xlane.xlu0 %2220 }
 0x358   :  { %v2243_v28 = vsub.f32 %v9811_v44, %v2221_v41  ;;  %v9970_v41 = vpop.eup %8975 }
 0x359   :  { %v9986_v30 = vpop.eup %8977 }
 0x35a   :  { %v2251_v21 = vmul.f32 1.442695, %v2243_v28 }
 0x35b   :  { %v2227_v24 = vpop.xlane.xlu0 %2226 }
 0x35c   :  { %v9941_v12 = vpop.trf.xlu1  ;;  %8983 = vpow2.f32 %v2251_v21 }
 0x35d   :  { %v805_v6 = vrot.slane %v9941_v12, %v9648_v60  ;;  %v2975_v32 = vrot.slane %v9941_v12, %v9817_v54  ;;  %v599_v53 = vrot.slane %v9941_v12, %v9645_v59  ;;  %v2178_v21 = vrot.slane %v9941_v12, %v9777_v0 }
 0x35f   :  { %v9952_v10 = vpop.xlane.xlu0 %2229  ;;  %v813_v61 = vadd.f32 %v805_v6, %v9660_v2  ;;  %v2983_v4 = vadd.f32 %v2975_v32, %v2942_v18  ;;  %v607_v8 = vadd.f32 %v599_v53, %v9671_v14  ;;  %v2245_v18 = vsub.f32 %v9823_v34, %v2227_v24 }
 0x360   :  { %v9974_v24 = vsel %vm103_vm4, %v3002_v19, -9e+15  ;;  %v2170_v14 = vrot.slane %v9717_v63, %v9777_v0  ;;  %v629_v34 = vsel %vm613_vm9, %v605_v46, %v621_v26  ;;  %v689_v19 = vsel %vm640_vm7, %v9970_v41, 0.0 }
 0x361   :  { %vm821_vm6 = vcmp.gt.f32.partialorder %v813_v61, 0.0  ;;  %v829_v60 = vmul.f32 0.2, %v813_v61  ;;  %vm2991_vm8 = vcmp.gt.f32.partialorder %v2983_v4, 0.0  ;;  %v2999_v7 = vmul.f32 0.2, %v2983_v4 }
 0x362   :  { %v623_v45 = vmul.f32 0.2, %v607_v8  ;;  %v2255_v6 = vmul.f32 1.442695, %v2245_v18  ;;  %vm615_vm10 = vcmp.gt.f32.partialorder %v607_v8, 0.0  ;;  %v3022_v23 = vsel %vm640_vm7, %v9974_v24, -inf }
 0x363   :  { %v2233_v22 = vpop.xlane.xlu0 %2232  ;;  %v837_v47 = vsel %vm821_vm6, %v813_v61, %v829_v60  ;;  %v3007_v59 = vsel %vm2991_vm8, %v2983_v4, %v2999_v7  ;;  %v9990_v63 = vsel %vm103_vm4, %v629_v34, -9e+15  ;;  %v2184_v3 = vadd.f32 %v2170_v14, %v9642_v58  ;;  %v9996_v4 = vpop.eup %8979 }
 0x364   :  { %v9960_v2 = vsel %vm103_vm4, %v837_v47, -9e+15  ;;  %v9964_v44 = vsel %vm103_vm4, %v3007_v59, -9e+15  ;;  %v2247_v32 = vsub.f32 %v9841_v57, %v2233_v22  ;;  %v631_v57 = vsel %vm615_vm10, %v607_v8, %v623_v45  ;;  %v10009_v37 = vpop.eup %8981 }
 0x365   :  { %v867_v55 = vsel %vm640_vm7, %v9960_v2, -inf  ;;  %v3037_v60 = vsel %vm640_vm7, %v9964_v44, -inf  ;;  %8985 = vpow2.f32 %v2255_v6  ;;  %v656_v28 = vsel %vm640_vm7, %v9990_v63, -inf }
 0x366   :  { %868 = vmax.xlane.f32.xlu0 %v867_v55  ;;  %3038 = vmax.xlane.f32.xlu1 %v3037_v60  ;;  %v2259_v53 = vmul.f32 1.442695, %v2247_v32  ;;  %v695_v7 = vsel %vm640_vm7, %v9986_v30, 0.0  ;;  %v10004_v0 = vsel %vm103_vm4, %v631_v57, -9e+15  ;;  %v2186_v58 = vadd.f32 %v2178_v21, %v9677_v27  ;;  %v10017_v18 = vpop.eup %8983 }
 0x367   :  { %v9978_v59 = vpop.xlane.xlu0 %2238  ;;  %v2200_v8 = vmul.f32 0.2, %v2184_v3  ;;  %vm2192_vm11 = vcmp.gt.f32.partialorder %v2184_v3, 0.0  ;;  %v2963_v26 = vrot.slane %v9740_v29, %v9817_v54  ;;  %v662_v22 = vsel %vm640_vm7, %v10004_v0, -inf }
 0x368   :  { %8987 = vpow2.f32 %v2259_v53  ;;  %v701_v47 = vsel %vm640_vm7, %v9996_v4, 0.0  ;;  %v875_v55 = vsub.f32 %v9730_v9, %v9879_v31  ;;  %vm2194_vm12 = vcmp.gt.f32.partialorder %v2186_v58, 0.0 }
 0x369   :  { %v2980_v27 = vadd.f32 %v2963_v26, %v9890_v35  ;;  %v894_v29 = vsel %vm640_vm7, %v10009_v37, 0.0  ;;  %v2267_v54 = vsel %vm640_vm7, %v10017_v18, 0.0  ;;  %v876_v31 = vsub.f32 %v9758_v36, %v9885_v52 }
 0x36a   :  { %3023 = vmax.xlane.f32.xlu0 %v3022_v23  ;;  %690 = vadd.xlane.f32.xlu1 %v689_v19  ;;  %v888_v9 = vmul.f32 1.442695, %v875_v55  ;;  %vm3104_vm8 = vcmp.ge.s32.totalorder %v9506_v15, 24  ;;  %vm3921_vm10 = vcmask 261120  }
 0x36b   :  { %v3018_v46 = vpop.xlane.xlu0 %3017  ;;  %v2996_v34 = vmul.f32 0.2, %v2980_v27  ;;  %vm2988_vm13 = vcmp.gt.f32.partialorder %v2980_v27, 0.0  ;;  %v890_v36 = vmul.f32 1.442695, %v876_v31  ;;  %vm10335_vm9 = vmand %vm3104_vm8, %vm3105_vm0 }
 0x36c   :  { %v3040_v61 = vsub.f32 %v9854_v49, %v3018_v46  ;;  %v874_v49 = vsub.f32 %v9747_v39, %v9892_v33  ;;  %v2208_v39 = vsel %vm2192_vm11, %v2184_v3, %v2200_v8  ;;  %v2202_v33 = vmul.f32 0.2, %v2186_v58 }
 0x36d   :  { %v10030_v35 = vsel %vm103_vm4, %v2208_v39, -9e+15  ;;  %v3004_v21 = vsel %vm2988_vm13, %v2980_v27, %v2996_v34  ;;  %v666_v46 = vsub.f32 %v9669_v11, %v9875_v43  ;;  %v668_v11 = vsub.f32 %v9784_v42, %v9928_v38 }
 0x36e   :  { %657 = vmax.xlane.f32.xlu0 %v656_v28  ;;  %696 = vadd.xlane.f32.xlu1 %v695_v7  ;;  %v3048_v12 = vmul.f32 1.442695, %v3040_v61  ;;  %v886_v60 = vmul.f32 1.442695, %v874_v49  ;;  %v2210_v45 = vsel %vm2194_vm12, %v2186_v58, %v2202_v33  ;;  %v2234_v6 = vsel %vm640_vm7, %v10030_v35, -inf }
 0x36f   :  { %v10026_v14 = vpop.eup %8985  ;;  %v10042_v19 = vsel %vm103_vm4, %v2210_v45, -9e+15  ;;  %v10054_v53 = vsel %vm103_vm4, %v3004_v21, -9e+15  ;;  %v675_v61 = vmul.f32 1.442695, %v666_v46  ;;  %v671_v58 = vsub.f32 %v9802_v51, %v9930_v5 }
 0x370   :  { %8989 = vpow2.f32 %v3048_v12  ;;  %v2273_v32 = vsel %vm640_vm7, %v10026_v14, 0.0  ;;  %v2240_v52 = vsel %vm640_vm7, %v10042_v19, -inf  ;;  %v3028_v43 = vsel %vm640_vm7, %v10054_v53, -inf }
 0x371   :  { %8991 = vpow2.f32 %v886_v60  ;;  %v679_v8 = vmul.f32 1.442695, %v668_v11  ;;  %v685_v42 = vmul.f32 1.442695, %v671_v58  ;;  %v2246_v51 = vsub.f32 %v9832_v56, %v9952_v10 }
 0x372   :  { %663 = vmax.xlane.f32.xlu0 %v662_v22  ;;  %702 = vadd.xlane.f32.xlu1 %v701_v47  ;;  %v10038_v23 = vpop.eup %8987  ;;  %8993 = vpow2.f32 %v888_v9  ;;  %v2249_v60 = vsub.f32 %v9848_v40, %v9978_v59  ;;  %v12082_v56 = vmov 0.0  }
 0x373   :  { %v2279_v57 = vsel %vm640_vm7, %v10038_v23, 0.0  ;;  %8995 = vpow2.f32 %v890_v36  ;;  %v2257_v55 = vmul.f32 1.442695, %v2246_v51  ;;  %8464 = vmatprep.mubr.msk.f32.mxu1 %vm9385_vm14, %v12082_v56  ;;  %8499 = vmatprep.mubr.msk.f32.mxu0 %vm9385_vm14, %v12082_v56 }
 0x374   :  { %8997 = vpow2.f32 %v675_v61  ;;  %v2263_v10 = vmul.f32 1.442695, %v2249_v60 }
 0x375   :  { %8999 = vpow2.f32 %v679_v8 }
 0x376   :  { %895 = vadd.xlane.f32.xlu0 %v894_v29  ;;  %2268 = vadd.xlane.f32.xlu1 %v2267_v54  ;;  %9001 = vpow2.f32 %v685_v42  ;;  %v3021_v54 = vpop.xlane.xlu0 %3020 }
 0x377   :  { %v3041_v40 = vsub.f32 %v9861_v13, %v3021_v54 }
 0x379   :  { %v3050_v45 = vmul.f32 1.442695, %v3041_v40 }
 0x37a   :  { %2235 = vmax.xlane.f32.xlu0 %v2234_v6  ;;  %2274 = vadd.xlane.f32.xlu1 %v2273_v32  ;;  %v10050_v3 = vpop.eup %8989 }
 0x37b   :  { %v3064_v28 = vsel %vm640_vm7, %v10050_v3, 0.0  ;;  %v10062_v7 = vpop.eup %8991 }
 0x37c   :  { %v906_v49 = vsel %vm640_vm7, %v10062_v7, 0.0  ;;  %v10068_v12 = vpop.eup %8993 }
 0x37d   :  { %v909_v38 = vsel %vm640_vm7, %v10068_v12, 0.0  ;;  %v10072_v26 = vpop.eup %8995 }
 0x37e   :  { %2241 = vmax.xlane.f32.xlu0 %v2240_v52  ;;  %2280 = vadd.xlane.f32.xlu1 %v2279_v57  ;;  %v912_v22 = vsel %vm640_vm7, %v10072_v26, 0.0  ;;  %v10076_v47 = vpop.eup %8997 }
 0x37f   :  { %v692_v39 = vsel %vm640_vm7, %v10076_v47, 0.0  ;;  %v10083_v33 = vpop.eup %8999 }
 0x380   :  { %v698_v34 = vsel %vm640_vm7, %v10083_v33, 0.0 }
 0x382   :  { %3029 = vmax.xlane.f32.xlu0 %v3028_v43  ;;  %3065 = vadd.xlane.f32.xlu1 %v3064_v28 }
 0x386   :  { %907 = vadd.xlane.f32.xlu0 %v906_v49 }
 0x38a   :  { %910 = vadd.xlane.f32.xlu0 %v909_v38 }
 0x38e   :  { %913 = vadd.xlane.f32.xlu0 %v912_v22 }
 0x390   :  { %v2224_v5 = vpop.xlane.xlu1 %2223 }
 0x391   :  { %v2244_v27 = vsub.f32 %v9871_v20, %v2224_v5  ;;  %v10093_v20 = vpop.eup %9001 }
 0x392   :  { %693 = vadd.xlane.f32.xlu0 %v692_v39  ;;  %v707_v59 = vsel %vm640_vm7, %v10093_v20, 0.0 }
 0x393   :  { %v2253_v29 = vmul.f32 1.442695, %v2244_v27 }
 0x395   :  { %9003 = vpow2.f32 %v2253_v29 }
 0x396   :  { %699 = vadd.xlane.f32.xlu0 %v698_v34  ;;  %9005 = vpow2.f32 %v2257_v55 }
 0x397   :  { %9007 = vpow2.f32 %v2263_v10 }
 0x398   :  { %9009 = vpow2.f32 %v3050_v45 }
 0x39a   :  { %708 = vadd.xlane.f32.xlu0 %v707_v59 }
 0x39f   :  { %v10098_v9 = vpop.eup %9003 }
 0x3a0   :  { %v2270_v31 = vsel %vm640_vm7, %v10098_v9, 0.0  ;;  %v10102_v6 = vpop.eup %9005 }
 0x3a1   :  { %2271 = vadd.xlane.f32.xlu0 %v2270_v31  ;;  %v2276_v32 = vsel %vm640_vm7, %v10102_v6, 0.0  ;;  %v10106_v21 = vpop.eup %9007 }
 0x3a2   :  { %v2285_v13 = vsel %vm640_vm7, %v10106_v21, 0.0  ;;  %v10110_v46 = vpop.eup %9009 }
 0x3a3   :  { %v3067_v36 = vsel %vm640_vm7, %v10110_v46, 0.0 }
 0x3a5   :  { %2277 = vadd.xlane.f32.xlu0 %v2276_v32 }
 0x3a9   :  { %2286 = vadd.xlane.f32.xlu0 %v2285_v13 }
 0x3ad   :  { %3068 = vadd.xlane.f32.xlu0 %v3067_v36 }
 0x3bc   :  { %v3027_v57 = vpop.xlane.xlu1 %3026 }
 0x3bd   :  { %v3043_v28 = vsub.f32 %v9896_v62, %v3027_v57 }
 0x3bf   :  { %v3054_v38 = vmul.f32 1.442695, %v3043_v28 }
 0x3c0   :  { %v899_v61 = vpop.xlane.xlu1 %898 }
 0x3c4   :  { %v905_v8 = vpop.xlane.xlu1 %904 }
 0x3c8   :  { %v902_v5 = vpop.xlane.xlu1 %901 }
 0x3cc   :  { %v3033_v62 = vpop.xlane.xlu1 %3032 }
 0x3cd   :  { %v3045_v32 = vsub.f32 %v9918_v50, %v3033_v62 }
 0x3cf   :  { %v3058_v50 = vmul.f32 1.442695, %v3045_v32 }
 0x3f3   :  { %v869_v11 = vpop.xlane.xlu0 %868 }
 0x3f4   :  { %v877_v43 = vsub.f32 %v9960_v2, %v869_v11 }
 0x3f6   :  { %v892_v58 = vmul.f32 1.442695, %v877_v43 }
 0x3f7   :  { %v3024_v49 = vpop.xlane.xlu0 %3023 }
 0x3f8   :  { %v3042_v42 = vsub.f32 %v9974_v24, %v3024_v49  ;;  %9011 = vpow2.f32 %v892_v58 }
 0x3fa   :  { %v3052_v22 = vmul.f32 1.442695, %v3042_v42 }
 0x3fb   :  { %v658_v51 = vpop.xlane.xlu0 %657 }
 0x3fc   :  { %9013 = vpow2.f32 %v3052_v22  ;;  %v670_v27 = vsub.f32 %v9990_v63, %v658_v51 }
 0x3fd   :  { %9015 = vpow2.f32 %v3054_v38 }
 0x3fe   :  { %v683_v39 = vmul.f32 1.442695, %v670_v27 }
 0x3ff   :  { %v664_v55 = vpop.xlane.xlu0 %663 }
 0x400   :  { %9017 = vpow2.f32 %v683_v39  ;;  %v672_v2 = vsub.f32 %v10004_v0, %v664_v55  ;;  %v3036_v0 = vpop.xlane.xlu1 %3035 }
 0x401   :  { %v3046_v43 = vsub.f32 %v9924_v25, %v3036_v0 }
 0x402   :  { %v687_v60 = vmul.f32 1.442695, %v672_v2  ;;  %v10129_v29 = vpop.eup %9011  ;;  %v12085_v2 = vld [vmem:[#allocation24_spill] sm:$0xff] }
 0x403   :  { %v896_v54 = vpop.xlane.xlu0 %895  ;;  %v915_v24 = vsel %vm640_vm7, %v10129_v29, 0.0 }
 0x404   :  { %9019 = vpow2.f32 %v687_v60  ;;  %916 = vadd.xlane.f32.xlu1 %v915_v24  ;;  %v3039_v11 = vpop.xlane.xlu1 %3038 }
 0x405   :  { %9021 = vrcp.f32 %v896_v54  ;;  %v3047_v58 = vsub.f32 %v9964_v44, %v3039_v11 }
 0x406   :  { %v10133_v34 = vpop.eup %9013  ;;  %9023 = vrcp.f32 %v899_v61 }
 0x407   :  { %v2236_v63 = vpop.xlane.xlu0 %2235  ;;  %v3070_v10 = vsel %vm640_vm7, %v10133_v34, 0.0  ;;  %v10137_v40 = vpop.eup %9015  ;;  %9025 = vrcp.f32 %v902_v5  ;;  %v3060_v5 = vmul.f32 1.442695, %v3046_v43  ;;  %v3062_v25 = vmul.f32 1.442695, %v3047_v58 }
 0x408   :  { %v2248_v59 = vsub.f32 %v10030_v35, %v2236_v63  ;;  %3071 = vadd.xlane.f32.xlu0 %v3070_v10  ;;  %v3073_v36 = vsel %vm640_vm7, %v10137_v40, 0.0  ;;  %v12087_v10 = vld [vmem:[#allocation23_spill] sm:$0xff] }
 0x40a   :  { %v10140_v45 = vpop.eup %9017  ;;  %v2261_v31 = vmul.f32 1.442695, %v2248_v59  ;;  %v691_v59 = vpop.xlane.xlu1 %690 }
 0x40b   :  { %v2242_v13 = vpop.xlane.xlu0 %2241  ;;  %v704_v57 = vsel %vm640_vm7, %v10140_v45, 0.0 }
 0x40c   :  { %9027 = vpow2.f32 %v2261_v31  ;;  %v2250_v61 = vsub.f32 %v10042_v19, %v2242_v13  ;;  %3074 = vadd.xlane.f32.xlu0 %v3073_v36  ;;  %705 = vadd.xlane.f32.xlu1 %v704_v57  ;;  %v12088_v31 = vld [vmem:[#allocation31_spill] sm:$0xff] }
 0x40d   :  { %9029 = vrcp.f32 %v905_v8 }
 0x40e   :  { %v10148_v35 = vpop.eup %9019  ;;  %v2265_v28 = vmul.f32 1.442695, %v2250_v61  ;;  %v12089_v61 = vld [vmem:[#allocation26_spill] sm:$0xff] }
 0x40f   :  { %v3030_v49 = vpop.xlane.xlu0 %3029  ;;  %v710_v42 = vsel %vm640_vm7, %v10148_v35, 0.0  ;;  %v9022_v38 = vpop.eup %9021 }
 0x410   :  { %9031 = vpow2.f32 %v2265_v28  ;;  %v3044_v22 = vsub.f32 %v10054_v53, %v3030_v49  ;;  %711 = vadd.xlane.f32.xlu1 %v710_v42  ;;  %v926_v19 = vmul.f32 %v9022_v38, %v10009_v37  ;;  %v9024_v51 = vpop.eup %9023  ;;  %v12090_v38 = vld [vmem:[#allocation25_spill] sm:$0xff] }
 0x411   :  { %9033 = vpow2.f32 %v3058_v50  ;;  %v9026_v44 = vpop.eup %9025  ;;  %v927_v37 = vmul.f32 %v9024_v51, %v9902_v48  ;;  %v12086_v48 = vld [vmem:[#allocation32_spill] sm:$0xff] }
 0x412   :  { %v3056_v27 = vmul.f32 1.442695, %v3044_v22  ;;  %8465 = vmatmul.mubr.msk.f32.vlgmr.msra.gmra.mrb[0].mxu1 %vm640_vm7, %v926_v19  ;;  %v928_v60 = vmul.f32 %v9026_v44, %v12086_v48  ;;  %v697_v22 = vpop.xlane.xlu1 %696 }
 0x413   :  { %v908_v8 = vpop.xlane.xlu0 %907  ;;  %8468 = vmatpush3.msk.msra.mxu1 %vm9512_vm3, %v9516_v17  ;;  %8469 = vmatprep.mubr.msk.f32.mxu1 %vm9385_vm14, %v12082_v56 }
 0x414   :  { %9035 = vpow2.f32 %v3056_v27  ;;  %8472 = vmatprep.subr.mxu1 %v12082_v56 }
 0x415   :  { %9037 = vrcp.f32 %v908_v8  ;;  %v12092_v8 = vld [vmem:[#allocation22_spill] sm:$0xff] }
 0x416   :  { %v10164_v53 = vpop.eup %9027  ;;  %9039 = vpow2.f32 %v3060_v5  ;;  %8470 = vmatmul.mubr.msk.f32.vlgmr.msra.gmra.mrb[2].mxu1 %vm640_vm7, %v927_v37  ;;  %v12091_v5 = vld [vmem:[#allocation28_spill] sm:$0xff]  ;;  %v703_v16 = vpop.xlane.xlu1 %702 }
 0x417   :  { %9041 = vpow2.f32 %v3062_v25  ;;  %v911_v39 = vpop.xlane.xlu0 %910  ;;  %v2282_v55 = vsel %vm640_vm7, %v10164_v53, 0.0  ;;  %8473 = vmatpush3.msk.msra.mxu1 %vm9512_vm3, %v12085_v2  ;;  %8474 = vmatprep.mubr.msk.f32.mxu1 %vm9385_vm14, %v12082_v56  ;;  %v9030_v62 = vpop.eup %9029 }
 0x418   :  { %9043 = vrcp.f32 %v911_v39  ;;  %8477 = vmatprep.subr.mxu1 %v12082_v56  ;;  %2283 = vadd.xlane.f32.xlu0 %v2282_v55  ;;  %v929_v32 = vmul.f32 %v9030_v62, %v12088_v31 }
 0x41a   :  { %v10176_v54 = vpop.eup %9031  ;;  %8475 = vmatmul.mubr.msk.f32.vlgmr.msra.gmra.mrb[4].mxu1 %vm640_vm7, %v928_v60 }
 0x41b   :  { %v914_v24 = vpop.xlane.xlu0 %913  ;;  %v2288_v63 = vsel %vm640_vm7, %v10176_v54, 0.0  ;;  %8478 = vmatpush3.msk.msra.mxu1 %vm9512_vm3, %v12087_v10  ;;  %8479 = vmatprep.mubr.msk.f32.mxu1 %vm9385_vm14, %v12082_v56  ;;  %v10186_v0 = vpop.eup %9033 }
 0x41c   :  { %9045 = vrcp.f32 %v914_v24  ;;  %8482 = vmatprep.subr.mxu1 %v12082_v56  ;;  %2289 = vadd.xlane.f32.xlu1 %v2288_v63  ;;  %v3079_v43 = vsel %vm640_vm7, %v10186_v0, 0.0 }
 0x41d   :  { %9047 = vrcp.f32 %v691_v59 }
 0x41e   :  { %v10190_v13 = vpop.eup %9035  ;;  %8480 = vmatmul.mubr.msk.f32.vlgmr.msra.gmra.mrb[6].mxu1 %vm640_vm7, %v929_v32 }
 0x41f   :  { %v9038_v36 = vpop.eup %9037  ;;  %v3076_v57 = vsel %vm640_vm7, %v10190_v13, 0.0  ;;  %8483 = vmatpush3.msk.msra.mxu1 %vm9512_vm3, %v12089_v61  ;;  %8484 = vmatprep.mubr.msk.f32.mxu1 %vm9385_vm14, %v12082_v56  ;;  %v694_v58 = vpop.xlane.xlu0 %693 }
 0x420   :  { %v10195_v11 = vpop.eup %9039  ;;  %v930_v28 = vmul.f32 %v9038_v36, %v10062_v7  ;;  %8487 = vmatprep.subr.mxu1 %v12082_v56  ;;  %3080 = vadd.xlane.f32.xlu1 %v3079_v43  ;;  %9049 = vrcp.f32 %v694_v58 }
 0x421   :  { %v10205_v50 = vpop.eup %9041  ;;  %3077 = vadd.xlane.f32.xlu0 %v3076_v57  ;;  %v3082_v19 = vsel %vm640_vm7, %v10195_v11, 0.0  ;;  %9051 = vrcp.f32 %v697_v22 }
 0x422   :  { %v9044_v49 = vpop.eup %9043  ;;  %8485 = vmatmul.mubr.msk.f32.vlgmr.msra.gmra.mrb[8].mxu1 %vm640_vm7, %v930_v28  ;;  %v3085_v7 = vsel %vm640_vm7, %v10205_v50, 0.0 }
 0x423   :  { %v931_v42 = vmul.f32 %v9044_v49, %v10068_v12  ;;  %8488 = vmatpush3.msk.msra.mxu1 %vm9512_vm3, %v12090_v38  ;;  %8489 = vmatprep.mubr.msk.f32.mxu1 %vm9385_vm14, %v12082_v56  ;;  %v700_v27 = vpop.xlane.xlu0 %699 }
 0x424   :  { %3086 = vadd.xlane.f32.xlu1 %v3085_v7  ;;  %8492 = vmatprep.subr.mxu1 %v12082_v56  ;;  %9053 = vrcp.f32 %v700_v27 }
 0x425   :  { %3083 = vadd.xlane.f32.xlu0 %v3082_v19  ;;  %9055 = vrcp.f32 %v703_v16 }
 0x426   :  { %v9046_v51 = vpop.eup %9045  ;;  %8490 = vmatmul.mubr.msk.f32.vlgmr.msra.gmra.mrb[10].mxu1 %vm640_vm7, %v931_v42 }
 0x427   :  { %v932_v12 = vmul.f32 %v9046_v51, %v10072_v26  ;;  %8493 = vmatpush3.msk.msra.mxu1 %vm9512_vm3, %v12091_v5  ;;  %8494 = vmatprep.mubr.msk.f32.mxu1 %vm9385_vm14, %v12082_v56  ;;  %v9048_v25 = vpop.eup %9047  ;;  %v709_v37 = vpop.xlane.xlu0 %708  ;;  %vm2308_vm3 = vcmp.lt.s32.totalorder %v9506_v15, 24 }
 0x428   :  { %8502 = vmatprep.subr.mxu1 %v12082_v56  ;;  %v721_v26 = vmul.f32 %v9048_v25, %v9970_v41  ;;  %9057 = vrcp.f32 %v709_v37  ;;  %v2269_v41 = vpop.xlane.xlu1 %2268  ;;  %vm10280_vm6 = vmand %vm2307_vm15, %vm2308_vm3 }
 0x429   :  { %9059 = vrcp.f32 %v2269_v41 }
 0x42a   :  { %8495 = vmatmul.mubr.msk.f32.vlgmr.msra.gmra.mrb[12].mxu1 %vm640_vm7, %v932_v12  ;;  %v9050_v44 = vpop.eup %9049 }
 0x42b   :  { %8503 = vmatpush3.msk.msra.mxu1 %vm730_vm5, %v12092_v8  ;;  %8504 = vmatprep.mubr.msk.f32.mxu1 %vm9385_vm14, %v12082_v56  ;;  %v722_v39 = vmul.f32 %v9050_v44, %v10076_v47  ;;  %v9052_v55 = vpop.eup %9051 }
 0x42c   :  { %8507 = vmatprep.subr.mxu1 %v12082_v56  ;;  %v723_v62 = vmul.f32 %v9052_v55, %v9986_v30  ;;  %v2275_v30 = vpop.xlane.xlu1 %2274 }
 0x42e   :  { %8505 = vmatmul.mubr.msk.f32.vlgmr.msra.gmra.mrb[0].mxu1 %vm640_vm7, %v721_v26  ;;  %v9054_v48 = vpop.eup %9053  ;;  %v2272_v47 = vpop.xlane.xlu0 %2271 }
 0x42f   :  { %8508 = vmatpush3.msk.msra.mxu1 %vm730_vm5, %v9516_v17  ;;  %8509 = vmatprep.mubr.msk.f32.mxu1 %vm9385_vm14, %v12082_v56  ;;  %v724_v60 = vmul.f32 %v9054_v48, %v10083_v33  ;;  %v9056_v24 = vpop.eup %9055  ;;  %9061 = vrcp.f32 %v2272_v47 }
 0x430   :  { %8512 = vmatprep.subr.mxu1 %v12082_v56  ;;  %v725_v63 = vmul.f32 %v9056_v24, %v9996_v4  ;;  %9063 = vrcp.f32 %v2275_v30  ;;  %v2281_v36 = vpop.xlane.xlu1 %2280  ;;  %v3917_v4 = vld [vmem:[#allocation10] sm:$0xff] }
 0x432   :  { %8510 = vmatmul.mubr.msk.f32.vlgmr.msra.gmra.mrb[2].mxu1 %vm640_vm7, %v722_v39  ;;  %v9058_v59 = vpop.eup %9057  ;;  %v2278_v33 = vpop.xlane.xlu0 %2277 }
 0x433   :  { %8513 = vmatpush3.msk.msra.mxu1 %vm730_vm5, %v12085_v2  ;;  %8514 = vmatprep.mubr.msk.f32.mxu1 %vm9385_vm14, %v12082_v56  ;;  %v727_v31 = vmul.f32 %v9058_v59, %v10093_v20  ;;  %v9060_v32 = vpop.eup %9059  ;;  %9065 = vrcp.f32 %v2278_v33 }
 0x434   :  { %8517 = vmatprep.subr.mxu1 %v12082_v56  ;;  %v2299_v20 = vmul.f32 %v9060_v32, %v10017_v18  ;;  %9067 = vrcp.f32 %v2281_v36  ;;  %v3066_v18 = vpop.xlane.xlu1 %3065  ;;  %v3918_v32 = vld [vmem:[#allocation10 + $0x8] sm:$0xff]  ;;  %v3919_v36 = vld [vmem:[#allocation10 + $0x10] sm:$0xff] }
 0x436   :  { %8515 = vmatmul.mubr.msk.f32.vlgmr.msra.gmra.mrb[4].mxu1 %vm640_vm7, %v723_v62  ;;  %v2287_v43 = vpop.xlane.xlu0 %2286  ;;  %v12097_v62 = vld [vmem:[#allocation27_spill] sm:$0xff] }
 0x437   :  { %8518 = vmatpush3.msk.msra.mxu1 %vm730_vm5, %v12087_v10  ;;  %8519 = vmatprep.mubr.msk.f32.mxu1 %vm9385_vm14, %v12082_v56  ;;  %9069 = vrcp.f32 %v2287_v43  ;;  %v3740_v43 = vstv %s10444_s7  ;;  %s11699_s7 = sld [smem:[#allocation12 + $0x102]] }
 0x438   :  { %8522 = vmatprep.subr.mxu1 %v12082_v56  ;;  %9071 = vrcp.f32 %v3066_v18 }
 0x439   :  { %v9062_v57 = vpop.eup %9061 }
 0x43a   :  { %8520 = vmatmul.mubr.msk.f32.vlgmr.msra.gmra.mrb[6].mxu1 %vm640_vm7, %v724_v60  ;;  %v2300_v28 = vmul.f32 %v9062_v57, %v10098_v9  ;;  %v9064_v58 = vpop.eup %9063  ;;  %v3069_v9 = vpop.xlane.xlu0 %3068 }
 0x43b   :  { %8523 = vmatpush3.msk.msra.mxu1 %vm730_vm5, %v12089_v61  ;;  %8524 = vmatprep.mubr.msk.f32.mxu1 %vm9385_vm14, %v12082_v56  ;;  %v2301_v49 = vmul.f32 %v9064_v58, %v10026_v14  ;;  %9073 = vrcp.f32 %v3069_v9  ;;  %v3762_v58 = vstv %s10448_s9  ;;  %v3840_v9 = vstv %s10454_s3  ;;  %s11703_s9 = sld [smem:[#allocation12 + $0x4]] }
 0x43c   :  { %8532 = vmatprep.subr.mxu1 %v12082_v56  ;;  %s11709_s3 = sld [smem:[#allocation12 + $0x184]] }
 0x43d   :  { %v9066_v42 = vpop.eup %9065 }
 0x43e   :  { %8525 = vmatmul.mubr.msk.f32.vlgmr.msra.gmra.mrb[8].mxu1 %vm640_vm7, %v725_v63  ;;  %v2302_v7 = vmul.f32 %v9066_v42, %v10102_v6  ;;  %v9068_v22 = vpop.eup %9067  ;;  %v3814_v42 = vstv %s10452_s0  ;;  %s11707_s0 = sld [smem:[#allocation12 + $0x104]] }
 0x43f   :  { %8533 = vmatpush3.msk.msra.mxu1 %vm730_vm5, %v12091_v5  ;;  %8534 = vmatprep.mubr.msk.f32.mxu1 %vm9385_vm14, %v12082_v56  ;;  %v2303_v14 = vmul.f32 %v9068_v22, %v10038_v23  ;;  %v3892_v23 = vstv %s10460_s12  ;;  %s10554_s12 = sld [smem:[#allocation9 + $0x4]] }
 0x440   :  { %8542 = vmatprep.subr.mxu1 %v12082_v56 }
 0x441   :  { %v9070_v19 = vpop.eup %9069 }
 0x442   :  { %8535 = vmatmul.mubr.msk.f32.vlgmr.msra.gmra.mrb[12].mxu1 %vm640_vm7, %v727_v31  ;;  %v2305_v6 = vmul.f32 %v9070_v19, %v10106_v21  ;;  %v9072_v51 = vpop.eup %9071  ;;  %v3766_v19 = vstv %s10462_s13  ;;  %s11719_s13 = sld [smem:[#allocation12 + $0x8]] }
 0x443   :  { %8543 = vmatpush3.msk.msra.mxu1 %vm10280_vm6, %v12092_v8  ;;  %8544 = vmatprep.mubr.msk.f32.mxu1 %vm9385_vm14, %v12082_v56  ;;  %v3096_v21 = vmul.f32 %v9072_v51, %v10050_v3  ;;  %v3818_v51 = vstv %s10466_s15  ;;  %s11663_s15 = sld [smem:[#allocation12 + $0x85]] }
 0x444   :  { %8547 = vmatprep.subr.mxu1 %v12082_v56 }
 0x445   :  { %v9074_v12 = vpop.eup %9073 }
 0x446   :  { %8545 = vmatmul.mubr.msk.f32.vlgmr.msra.gmra.mrb[0].mxu1 %vm640_vm7, %v2299_v20  ;;  %v3097_v27 = vmul.f32 %v9074_v12, %v10110_v46  ;;  %v3920_v20 = vld [vmem:[#allocation10 + $0x18] sm:$0xff]  ;;  %v3870_v12 = vstv %s10470_s17  ;;  %s10559_s17 = sld [smem:[#allocation9 + $0x84]] }
 0x447   :  { %8548 = vmatpush3.msk.msra.mxu1 %vm10280_vm6, %v9516_v17  ;;  %8549 = vmatprep.mubr.msk.f32.mxu1 %vm9385_vm14, %v12082_v56  ;;  %v8822_v57 = vpack.c.bf16 %v3920_v20, %v3919_v36  ;;  %v3830_v20 = vstv %s10542_s29  ;;  %s11691_s29 = sld [smem:[#allocation12 + $0x181]] }
 0x448   :  { %8552 = vmatprep.subr.mxu1 %v12082_v56  ;;  %12162 = sst [smem:[#allocation50_spill]] %s11719_s13 }
 0x449   :  { %12152 = sst [smem:[#allocation33_spill]] %s11663_s15 }
 0x44a   :  { %8550 = vmatmul.mubr.msk.f32.vlgmr.msra.gmra.mrb[2].mxu1 %vm640_vm7, %v2300_v28  ;;  %v3710_v28 = vstv %s10446_s8  ;;  %s11701_s8 = sld [smem:[#allocation12 + $0x182]] }
 0x44b   :  { %8553 = vmatpush3.msk.msra.mxu1 %vm10280_vm6, %v12085_v2  ;;  %8554 = vmatprep.mubr.msk.f32.mxu1 %vm9385_vm14, %v12082_v56 }
 0x44c   :  { %8557 = vmatprep.subr.mxu1 %v12082_v56 }
 0x44e   :  { %8555 = vmatmul.mubr.msk.f32.vlgmr.msra.gmra.mrb[4].mxu1 %vm640_vm7, %v2301_v49  ;;  %v3788_v49 = vstv %s10450_s10  ;;  %s11705_s10 = sld [smem:[#allocation12 + $0x84]] }
 0x44f   :  { %8558 = vmatpush3.msk.msra.mxu1 %vm10280_vm6, %v12087_v10  ;;  %8559 = vmatprep.mubr.msk.f32.mxu1 %vm9385_vm14, %v12082_v56 }
 0x450   :  { %8562 = vmatprep.subr.mxu1 %v12082_v56 }
 0x452   :  { %8560 = vmatmul.mubr.msk.f32.vlgmr.msra.gmra.mrb[6].mxu1 %vm640_vm7, %v2302_v7  ;;  %v3866_v7 = vstv %s10456_s24  ;;  %s10562_s24 = sld [smem:[#allocation9 + $0x104]] }
 0x453   :  { %8563 = vmatpush3.msk.msra.mxu1 %vm10280_vm6, %v12089_v61  ;;  %8564 = vmatprep.mubr.msk.f32.mxu1 %vm9385_vm14, %v12082_v56 }
 0x454   :  { %8572 = vmatprep.subr.mxu1 %v12082_v56 }
 0x456   :  { %8565 = vmatmul.mubr.msk.f32.vlgmr.msra.gmra.mrb[8].mxu1 %vm640_vm7, %v2303_v14  ;;  %v3714_v14 = vstv %s10458_s11  ;;  %s11717_s11 = sld [smem:[#allocation12 + $0x6]] }
 0x457   :  { %8573 = vmatpush3.msk.msra.mxu1 %vm10280_vm6, %v12091_v5  ;;  %8574 = vmatprep.mubr.msk.f32.mxu1 %vm9385_vm14, %v12082_v56 }
 0x458   :  { %8582 = vmatprep.subr.mxu1 %v12082_v56 }
 0x45a   :  { %8575 = vmatmul.mubr.msk.f32.vlgmr.msra.gmra.mrb[12].mxu1 %vm640_vm7, %v2305_v6  ;;  %v3792_v6 = vstv %s10464_s14  ;;  %s11661_s14 = sld [smem:[#allocation12 + $0x5]] }
 0x45b   :  { %8583 = vmatpush3.msk.msra.mxu1 %vm10335_vm9, %v12092_v8  ;;  %8584 = vmatprep.mubr.msk.f32.mxu1 %vm9385_vm14, %v12082_v56 }
 0x45c   :  { %8587 = vmatprep.subr.mxu1 %v12082_v56 }
 0x45e   :  { %8585 = vmatmul.mubr.msk.f32.vlgmr.msra.gmra.mrb[0].mxu1 %vm640_vm7, %v3096_v21  ;;  %v3844_v21 = vstv %s10468_s16  ;;  %s11665_s16 = sld [smem:[#allocation12 + $0x105]] }
 0x45f   :  { %8588 = vmatpush3.msk.msra.mxu1 %vm10335_vm9, %v9516_v17  ;;  %8589 = vmatprep.mubr.msk.f32.mxu1 %vm9385_vm14, %v12082_v56 }
 0x460   :  { %8592 = vmatprep.subr.mxu1 %v12082_v56 }
 0x462   :  { %8590 = vmatmul.mubr.msk.f32.vlgmr.msra.gmra.mrb[2].mxu1 %vm640_vm7, %v3097_v27  ;;  %v3896_v27 = vstv %s10472_s18  ;;  %s10552_s18 = sld [smem:[#allocation9 + $0x383]] }
 0x463   :  { %8593 = vmatpush3.msk.msra.mxu1 %vm10335_vm9, %v12085_v2  ;;  %8594 = vmatprep.mubr.msk.f32.mxu1 %vm9385_vm14, %v12082_v56 }
 0x464   :  { %8597 = vmatprep.subr.mxu1 %v12082_v56  ;;  %12153 = sst [smem:[#allocation35_spill]] %s11665_s16 }
 0x468   :  { %12106 = sst [smem:[#allocation41_spill]] %s10552_s18 }
 0x491   :  { %v917_v3 = vpop.xlane.xlu1 %916 }
 0x492   :  { %9075 = vrcp.f32 %v917_v3 }
 0x495   :  { %v3072_v17 = vpop.xlane.xlu0 %3071 }
 0x496   :  { %9077 = vrcp.f32 %v3072_v17 }
 0x499   :  { %v706_v25 = vpop.xlane.xlu1 %705  ;;  %v3075_v8 = vpop.xlane.xlu0 %3074 }
 0x49a   :  { %9079 = vrcp.f32 %v706_v25 }
 0x49b   :  { %9081 = vrcp.f32 %v3075_v8 }
 0x49c   :  { %v9076_v46 = vpop.eup %9075 }
 0x49d   :  { %v712_v16 = vpop.xlane.xlu1 %711  ;;  %v933_v26 = vmul.f32 %v9076_v46, %v10129_v29 }
 0x49e   :  { %9083 = vrcp.f32 %v712_v16 }
 0x49f   :  { %8500 = vmatmul.mubr.msk.f32.vlgmr.msra.gmra.mrb[8].mxu0 %vm640_vm7, %v933_v26 }
 0x4a0   :  { %v9078_v44 = vpop.eup %9077  ;;  %8528 = vmatpush3.msk.msra.mxu0 %vm730_vm5, %v12090_v38  ;;  %8529 = vmatprep.mubr.msk.f32.mxu0 %vm9385_vm14, %v12082_v56 }
 0x4a1   :  { %v3098_v2 = vmul.f32 %v9078_v44, %v10133_v34  ;;  %8537 = vmatprep.subr.mxu0 %v12082_v56 }
 0x4a3   :  { %8595 = vmatmul.mubr.msk.f32.vlgmr.msra.gmra.mrb[4].mxu1 %vm640_vm7, %v3098_v2 }
 0x4a4   :  { %v9080_v37 = vpop.eup %9079  ;;  %8598 = vmatpush3.msk.msra.mxu1 %vm10335_vm9, %v12087_v10  ;;  %8599 = vmatprep.mubr.msk.f32.mxu1 %vm9385_vm14, %v12082_v56 }
 0x4a5   :  { %v9082_v29 = vpop.eup %9081  ;;  %8602 = vmatprep.subr.mxu1 %v12082_v56  ;;  %v726_v34 = vmul.f32 %v9080_v37, %v10140_v45  ;;  %v2284_v39 = vpop.xlane.xlu0 %2283 }
 0x4a6   :  { %v3099_v55 = vmul.f32 %v9082_v29, %v10137_v40  ;;  %9085 = vrcp.f32 %v2284_v39 }
 0x4a7   :  { %8530 = vmatmul.mubr.msk.f32.vlgmr.msra.gmra.mrb[10].mxu0 %vm640_vm7, %v726_v34 }
 0x4a8   :  { %v9084_v41 = vpop.eup %9083  ;;  %8538 = vmatpush3.msk.msra.mxu0 %vm730_vm5, %v12097_v62  ;;  %8600 = vmatmul.mubr.msk.f32.vlgmr.msra.gmra.mrb[6].mxu1 %vm640_vm7, %v3099_v55 }
 0x4a9   :  { %8603 = vmatpush3.msk.msra.mxu1 %vm10335_vm9, %v12089_v61  ;;  %8539 = vmatprep.mubr.msk.f32.mxu0 %vm9385_vm14, %v12082_v56  ;;  %v728_v45 = vmul.f32 %v9084_v41, %v10148_v35  ;;  %v2290_v40 = vpop.xlane.xlu1 %2289 }
 0x4aa   :  { %8567 = vmatprep.subr.mxu0 %v12082_v56  ;;  %8604 = vmatprep.mubr.msk.f32.mxu1 %vm9385_vm14, %v12082_v56  ;;  %9087 = vrcp.f32 %v2290_v40 }
 0x4ab   :  { %8540 = vmatmul.mubr.msk.f32.vlgmr.msra.gmra.mrb[8].mxu0 %vm640_vm7, %v728_v45  ;;  %8612 = vmatprep.subr.mxu1 %v12082_v56 }
 0x4ac   :  { %8568 = vmatpush3.msk.msra.mxu0 %vm10280_vm6, %v12090_v38  ;;  %8569 = vmatprep.mubr.msk.f32.mxu0 %vm9385_vm14, %v12082_v56 }
 0x4ad   :  { %8577 = vmatprep.subr.mxu0 %v12082_v56  ;;  %v3081_v35 = vpop.xlane.xlu1 %3080 }
 0x4ae   :  { %9089 = vrcp.f32 %v3081_v35  ;;  %v3078_v10 = vpop.xlane.xlu0 %3077 }
 0x4af   :  { %9091 = vrcp.f32 %v3078_v10 }
 0x4b0   :  { %v9086_v61 = vpop.eup %9085 }
 0x4b1   :  { %v3087_v48 = vpop.xlane.xlu1 %3086  ;;  %v2304_v47 = vmul.f32 %v9086_v61, %v10164_v53 }
 0x4b2   :  { %9093 = vrcp.f32 %v3087_v48  ;;  %v3084_v60 = vpop.xlane.xlu0 %3083 }
 0x4b3   :  { %9095 = vrcp.f32 %v3084_v60  ;;  %8570 = vmatmul.mubr.msk.f32.vlgmr.msra.gmra.mrb[10].mxu0 %vm640_vm7, %v2304_v47 }
 0x4b4   :  { %v9088_v24 = vpop.eup %9087  ;;  %8578 = vmatpush3.msk.msra.mxu0 %vm10280_vm6, %v12097_v62  ;;  %8579 = vmatprep.mubr.msk.f32.mxu0 %vm9385_vm14, %v12082_v56 }
 0x4b5   :  { %8607 = vmatprep.subr.mxu0 %v12082_v56  ;;  %v2306_v30 = vmul.f32 %v9088_v24, %v10176_v54 }
 0x4b7   :  { %8580 = vmatmul.mubr.msk.f32.vlgmr.msra.gmra.mrb[8].mxu0 %vm640_vm7, %v2306_v30 }
 0x4b8   :  { %v9090_v53 = vpop.eup %9089  ;;  %8608 = vmatpush3.msk.msra.mxu0 %vm10335_vm9, %v12090_v38  ;;  %8609 = vmatprep.mubr.msk.f32.mxu0 %vm9385_vm14, %v12082_v56 }
 0x4b9   :  { %v9092_v63 = vpop.eup %9091  ;;  %8617 = vmatprep.subr.mxu0 %v12082_v56  ;;  %v3101_v59 = vmul.f32 %v9090_v53, %v10186_v0  ;;  %v3720_v53 = vstv %s10522_s20  ;;  %s11671_s20 = sld [smem:[#allocation12 + $0x80]] }
 0x4ba   :  { %v3100_v33 = vmul.f32 %v9092_v63, %v10190_v13  ;;  %v3726_v63 = vstv %s10524_s2  ;;  %s11673_s2 = sld [smem:[#allocation12 + $0x100]] }
 0x4bb   :  { %8610 = vmatmul.mubr.msk.f32.vlgmr.msra.gmra.mrb[10].mxu0 %vm640_vm7, %v3101_v59  ;;  %v3746_v59 = vstv %s10526_s21  ;;  %s11675_s21 = sld [smem:[#allocation12 + $0x180]] }
 0x4bc   :  { %v9094_v54 = vpop.eup %9093  ;;  %8605 = vmatmul.mubr.msk.f32.vlgmr.msra.gmra.mrb[8].mxu1 %vm640_vm7, %v3100_v33  ;;  %8618 = vmatpush3.msk.msra.mxu0 %vm10335_vm9, %v12097_v62  ;;  %v3772_v33 = vstv %s10528_s22  ;;  %s11677_s22 = sld [smem:[#allocation12 + $0x7]] }
 0x4bd   :  { %v9096_v38 = vpop.eup %9095  ;;  %8613 = vmatpush3.msk.msra.mxu1 %vm10335_vm9, %v12091_v5  ;;  %8614 = vmatprep.mubr.msk.f32.mxu1 %vm9385_vm14, %v12082_v56  ;;  %v3103_v0 = vmul.f32 %v9094_v54, %v10205_v50  ;;  %v8818_v50 = vpack.c.bf16 %v3918_v32, %v3917_v4  ;;  %v3752_v54 = vstv %s10534_s25  ;;  %v3804_v4 = vstv %s10540_s28  ;;  %s11683_s25 = sld [smem:[#allocation12 + $0x187]]  ;;  %s11689_s28 = sld [smem:[#allocation12 + $0x101]] }
 0x4be   :  { %8619 = vmatprep.mubr.msk.f32.mxu0 %vm9385_vm14, %v12082_v56  ;;  %v3102_v13 = vmul.f32 %v9096_v38, %v10195_v11  ;;  %8669 = vmatprep.subr.mxu1 %v12082_v56  ;;  %v3736_v11 = vstv %s10442_s30  ;;  %v3798_v38 = vstv %s10530_s23  ;;  %v3876_v32 = vstv %s10546_s1  ;;  %s10592_s23 = sld [smem:[#allocation9 + $0x184]]  ;;  %s11697_s30 = sld [smem:[#allocation12 + $0x82]] }
 0x4bf   :  { %8620 = vmatmul.mubr.msk.f32.vlgmr.msra.gmra.mrb[8].mxu0 %vm640_vm7, %v3103_v0  ;;  %8819 = vmatprep.subr.bf16.mxu0 %v8818_v50  ;;  %v3824_v0 = vstv %s10532_s26  ;;  %s10615_s1 = sld [smem:[#allocation9 + $0x284]]  ;;  %12155 = sst [smem:[#allocation34_spill]] %s11671_s20 }
 0x4c0   :  { %8615 = vmatmul.mubr.msk.f32.vlgmr.msra.gmra.mrb[12].mxu1 %vm640_vm7, %v3102_v13  ;;  %8821 = vmatpush3.bf16.msra.mxu0 %v8818_v50  ;;  %v3850_v13 = vstv %s10536_s5  ;;  %v3902_v50 = vstv %s10548_s19  ;;  %s10597_s19 = sld [smem:[#allocation9 + $0x204]]  ;;  %12156 = sst [smem:[#allocation36_spill]] %s11673_s2 }
 0x4c1   :  { %8671 = vmatprep.mubr.msk.f32.mxu1 %vm9385_vm14, %v12082_v56  ;;  %8823 = vmatprep.subr.bf16.mxu0 %v8822_v57  ;;  %12157 = sst [smem:[#allocation40_spill]] %s11675_s21  ;;  %s11685_s5 = sld [smem:[#allocation12 + $0x1]] }
 0x4c2   :  { %12158 = sst [smem:[#allocation41_spill]] %s11677_s22  ;;  %s11681_s26 = sld [smem:[#allocation12 + $0x107]] }
 0x4c3   :  { %12161 = sst [smem:[#allocation49_spill]] %s11683_s25 }
 0x4c4   :  { %8825 = vmatpush3.bf16.msra.mxu0 %v8822_v57  ;;  %v3856_v57 = vstv %s10544_s4  ;;  %s10617_s4 = sld [smem:[#allocation9 + $0x304]] }
 0x4c5   :  { %8654 = vmatprep.subr.mxu0 %v12082_v56 }
 0x4c8   :  { %12160 = sst [smem:[#allocation48_spill]] %s11681_s26 }
 0x4f9   :  { %v10439_v5 = vpop.f32.mrb[10].mxu1 }
 0x4fa   :  { %v8491_v31 = vpop.f32.mrb[11].mxu1 }
 0x4fb   :  { %v3778_v31 = vstv %s10538_s27  ;;  %s11687_s27 = sld [smem:[#allocation12 + $0x81]] }
 0x531   :  { %v3186_v18 = vpop.f32.mrb[0].mxu1 }
 0x532   :  { %v8586_v22 = vpop.f32.mrb[1].mxu1  ;;  %v3737_v3 = vmul.f32 %v3736_v11, %v3186_v18  ;;  %v3711_v17 = vmul.f32 %v3710_v28, %v3186_v18  ;;  %v3763_v25 = vmul.f32 %v3762_v58, %v3186_v18  ;;  %v3789_v8 = vmul.f32 %v3788_v49, %v3186_v18 }
 0x533   :  { %v3815_v16 = vmul.f32 %v3814_v42, %v3186_v18  ;;  %v3841_v26 = vmul.f32 %v3840_v9, %v3186_v18  ;;  %v3867_v44 = vmul.f32 %v3866_v7, %v3186_v18  ;;  %v3893_v2 = vmul.f32 %v3892_v23, %v3186_v18 }
 0x534   :  { %v12014_v18 = vstv %s10550_s6  ;;  %v3908_v22 = vstv %s10552_s18  ;;  %s10627_s18 = sld [smem:[#allocation9 + $0x384]] }
 0x535   :  { %v3259_v46 = vpop.f32.mrb[2].mxu1 }
 0x536   :  { %v3741_v37 = vmul.f32 %v3740_v43, %v3259_v46  ;;  %v8591_v29 = vpop.f32.mrb[3].mxu1  ;;  %v3715_v34 = vmul.f32 %v3714_v14, %v3259_v46  ;;  %v3767_v39 = vmul.f32 %v3766_v19, %v3259_v46  ;;  %v3793_v55 = vmul.f32 %v3792_v6, %v3259_v46 }
 0x537   :  { %v3819_v41 = vmul.f32 %v3818_v51, %v3259_v46  ;;  %v3845_v62 = vmul.f32 %v3844_v21, %v3259_v46  ;;  %v3871_v45 = vmul.f32 %v3870_v12, %v3259_v46  ;;  %v3897_v40 = vmul.f32 %v3896_v27, %v3259_v46 }
 0x538   :  { %v3717_v35 = vadd.f32 %v3715_v34, %v3711_v17  ;;  %v3743_v10 = vadd.f32 %v3741_v37, %v3737_v3  ;;  %v3769_v61 = vadd.f32 %v3767_v39, %v3763_v25  ;;  %v3795_v48 = vadd.f32 %v3793_v55, %v3789_v8 }
 0x539   :  { %v3821_v47 = vadd.f32 %v3819_v41, %v3815_v16  ;;  %v3847_v60 = vadd.f32 %v3845_v62, %v3841_v26  ;;  %v3873_v24 = vadd.f32 %v3871_v45, %v3867_v44  ;;  %v3899_v30 = vadd.f32 %v3897_v40, %v3893_v2 }
 0x576   :  { %v3332_v36 = vpop.f32.mrb[4].mxu1 }
 0x577   :  { %v8596_v3 = vpop.f32.mrb[5].mxu1  ;;  %v3721_v17 = vmul.f32 %v3720_v53, %v3332_v36  ;;  %v3747_v25 = vmul.f32 %v3746_v59, %v3332_v36  ;;  %v3773_v8 = vmul.f32 %v3772_v33, %v3332_v36  ;;  %v3799_v46 = vmul.f32 %v3798_v38, %v3332_v36 }
 0x578   :  { %v3825_v16 = vmul.f32 %v3824_v0, %v3332_v36  ;;  %v3851_v26 = vmul.f32 %v3850_v13, %v3332_v36  ;;  %v3877_v44 = vmul.f32 %v3876_v32, %v3332_v36  ;;  %v3903_v2 = vmul.f32 %v3902_v50, %v3332_v36 }
 0x579   :  { %v3723_v37 = vadd.f32 %v3721_v17, %v3717_v35  ;;  %v3749_v29 = vadd.f32 %v3747_v25, %v3743_v10  ;;  %v3775_v34 = vadd.f32 %v3773_v8, %v3769_v61  ;;  %v3801_v39 = vadd.f32 %v3799_v46, %v3795_v48 }
 0x57a   :  { %v3827_v55 = vadd.f32 %v3825_v16, %v3821_v47  ;;  %v3853_v41 = vadd.f32 %v3851_v26, %v3847_v60  ;;  %v3879_v62 = vadd.f32 %v3877_v44, %v3873_v24  ;;  %v3905_v45 = vadd.f32 %v3903_v2, %v3899_v30 }
 0x57b   :  { %v3405_v40 = vpop.f32.mrb[6].mxu1  ;;  %v3732_v36 = vstv %s10554_s12  ;;  %v3758_v35 = vstv %s10559_s17  ;;  %v3784_v10 = vstv %s10562_s24  ;;  %s11657_s24 = sld [smem:[#allocation12 + $0x103]]  ;;  %s11667_s17 = sld [smem:[#allocation12 + $0x185]] }
 0x57c   :  { %v8601_v61 = vpop.f32.mrb[7].mxu1  ;;  %v3727_v48 = vmul.f32 %v3726_v63, %v3405_v40  ;;  %v3753_v3 = vmul.f32 %v3752_v54, %v3405_v40  ;;  %v3779_v47 = vmul.f32 %v3778_v31, %v3405_v40  ;;  %v3805_v60 = vmul.f32 %v3804_v4, %v3405_v40  ;;  %s11659_s12 = sld [smem:[#allocation12 + $0x183]] }
 0x57d   :  { %v3831_v24 = vmul.f32 %v3830_v20, %v3405_v40  ;;  %v3857_v30 = vmul.f32 %v3856_v57, %v3405_v40  ;;  %v3883_v17 = vmul.f32 %v12014_v18, %v3405_v40  ;;  %v3909_v25 = vmul.f32 %v3908_v22, %v3405_v40 }
 0x57e   :  { %v3729_v8 = vadd.f32 %v3727_v48, %v3723_v37  ;;  %v3755_v46 = vadd.f32 %v3753_v3, %v3749_v29  ;;  %v3781_v16 = vadd.f32 %v3779_v47, %v3775_v34  ;;  %v3807_v26 = vadd.f32 %v3805_v60, %v3801_v39 }
 0x57f   :  { %v3833_v44 = vadd.f32 %v3831_v24, %v3827_v55  ;;  %v3859_v2 = vadd.f32 %v3857_v30, %v3853_v41  ;;  %v3885_v61 = vadd.f32 %v3883_v17, %v3879_v62  ;;  %v3911_v18 = vadd.f32 %v3909_v25, %v3905_v45 }
 0x580   :  { %v3733_v40 = vadd.f32 %v3732_v36, %v3729_v8  ;;  %v3759_v37 = vadd.f32 %v3758_v35, %v3755_v46  ;;  %v3785_v29 = vadd.f32 %v3784_v10, %v3781_v16  ;;  %v3810_v34 = vstv %s10592_s23  ;;  %s11679_s23 = sld [smem:[#allocation12 + $0x87]] }
 0x581   :  { %v3836_v39 = vstv %s10597_s19  ;;  %v3811_v55 = vadd.f32 %v3810_v34, %v3807_v26  ;;  %v3862_v62 = vstv %s10615_s1  ;;  %v3888_v45 = vstv %s10617_s4  ;;  %s11653_s1 = sld [smem:[#allocation12 + $0x3]]  ;;  %12154 = sst [smem:[#allocation39_spill]] %s11667_s17 }
 0x582   :  { %8630 = vmatprep.mubr.msk.f32.mxu0 %vm3921_vm10, %v3733_v40  ;;  %v3837_v41 = vadd.f32 %v3836_v39, %v3833_v44  ;;  %v3863_v48 = vadd.f32 %v3862_v62, %v3859_v2  ;;  %v3889_v3 = vadd.f32 %v3888_v45, %v3885_v61  ;;  %v3914_v47 = vstv %s10627_s18  ;;  %s11655_s19 = sld [smem:[#allocation12 + $0x83]]  ;;  %12151 = sst [smem:[#allocation38_spill]] %s11659_s12 }
 0x583   :  { %8631 = vmatmul.mubr.msk.f32.vlgmr.msra.gmra.mrb[12].mxu0 %vm3921_vm10, %v3759_v37  ;;  %v3915_v60 = vadd.f32 %v3914_v47, %v3911_v18  ;;  %s11669_s18 = sld [smem:[#allocation12]]  ;;  %s11695_s4 = sld [smem:[#allocation12 + $0x2]] }
 0x584   :  { %8633 = vmatprep.mubr.msk.f32.mxu0 %vm3921_vm10, %v3785_v29 }
 0x586   :  { %12159 = sst [smem:[#allocation47_spill]] %s11679_s23 }
 0x587   :  { %8634 = vmatmul.mubr.msk.f32.gmra.mrb[14].mxu0 %vm3921_vm10, %v3811_v55 }
 0x588   :  { %8636 = vmatprep.mubr.msk.f32.mxu0 %vm3921_vm10, %v3837_v41  ;;  %12150 = sst [smem:[#allocation37_spill]] %s11655_s19 }
 0x58b   :  { %8637 = vmatmul.mubr.msk.f32.gmra.mrb[16].mxu0 %vm3921_vm10, %v3863_v48 }
 0x58c   :  { %8639 = vmatprep.mubr.msk.f32.mxu0 %vm3921_vm10, %v3889_v3 }
 0x58e   :  { %v3551_v24 = vpop.f32.mrb[10].mxu0 }
 0x58f   :  { %8640 = vmatmul.mubr.msk.f32.gmra.mrb[18].mxu0 %vm3921_vm10, %v3915_v60  ;;  %v3478_v30 = vpop.f32.mrb[8].mxu1  ;;  %v8826_v17 = vadd.f32 %v3551_v24, %v10439_v5  ;;  %v8611_v25 = vpop.f32.mrb[11].mxu0 }
 0x590   :  { %v8606_v8 = vpop.f32.mrb[9].mxu1  ;;  %v3712_v46 = vmul.f32 %v3710_v28, %v3478_v30  ;;  %v3738_v16 = vmul.f32 %v3736_v11, %v3478_v30  ;;  %v3764_v26 = vmul.f32 %v3762_v58, %v3478_v30  ;;  %v3790_v28 = vmul.f32 %v3788_v49, %v3478_v30 }
 0x591   :  { %v3716_v18 = vmul.f32 %v8826_v17, %v3714_v14  ;;  %v3742_v44 = vmul.f32 %v8826_v17, %v3740_v43  ;;  %v3768_v2 = vmul.f32 %v8826_v17, %v3766_v19  ;;  %v3794_v5 = vmul.f32 %v8826_v17, %v3792_v6 }
 0x592   :  { %v3697_v61 = vpop.f32.mrb[8].mxu0  ;;  %v3816_v11 = vmul.f32 %v3814_v42, %v3478_v30  ;;  %v3820_v58 = vmul.f32 %v8826_v17, %v3818_v51  ;;  %v3842_v14 = vmul.f32 %v3840_v9, %v3478_v30  ;;  %v3846_v6 = vmul.f32 %v8826_v17, %v3844_v21 }
 0x593   :  { %v3624_v40 = vpop.f32.mrb[12].mxu1  ;;  %v8621_v43 = vpop.f32.mrb[9].mxu0  ;;  %v3718_v37 = vadd.f32 %v3716_v18, %v3712_v46  ;;  %v3728_v19 = vmul.f32 %v3726_v63, %v3697_v61  ;;  %v3744_v29 = vadd.f32 %v3742_v44, %v3738_v16  ;;  %v3770_v41 = vadd.f32 %v3768_v2, %v3764_v26 }
 0x594   :  { %v8616_v55 = vpop.f32.mrb[13].mxu1  ;;  %v3722_v49 = vmul.f32 %v3720_v53, %v3624_v40  ;;  %v3748_v42 = vmul.f32 %v3746_v59, %v3624_v40  ;;  %v3774_v51 = vmul.f32 %v3772_v33, %v3624_v40  ;;  %v3754_v9 = vmul.f32 %v3752_v54, %v3697_v61 }
 0x595   :  { %v3780_v48 = vmul.f32 %v3778_v31, %v3697_v61  ;;  %v3796_v3 = vadd.f32 %v3794_v5, %v3790_v28  ;;  %v3800_v63 = vmul.f32 %v3798_v38, %v3624_v40  ;;  %v3822_v53 = vadd.f32 %v3820_v58, %v3816_v11 }
 0x596   :  { %v3724_v21 = vadd.f32 %v3722_v49, %v3718_v37  ;;  %v3750_v60 = vadd.f32 %v3748_v42, %v3744_v29  ;;  %v3776_v24 = vadd.f32 %v3774_v51, %v3770_v41  ;;  %v3806_v33 = vmul.f32 %v3804_v4, %v3697_v61 }
 0x597   :  { %v3802_v59 = vadd.f32 %v3800_v63, %v3796_v3  ;;  %v3826_v54 = vmul.f32 %v3824_v0, %v3624_v40  ;;  %v3848_v31 = vadd.f32 %v3846_v6, %v3842_v14  ;;  %v3852_v46 = vmul.f32 %v3850_v13, %v3624_v40 }
 0x598   :  { %v3730_v25 = vadd.f32 %v3728_v19, %v3724_v21  ;;  %v3756_v8 = vadd.f32 %v3754_v9, %v3750_v60  ;;  %v3782_v38 = vadd.f32 %v3780_v48, %v3776_v24  ;;  %v3832_v18 = vmul.f32 %v3830_v20, %v3697_v61 }
 0x599   :  { %v3808_v16 = vadd.f32 %v3806_v33, %v3802_v59  ;;  %v3828_v26 = vadd.f32 %v3826_v54, %v3822_v53  ;;  %v3854_v0 = vadd.f32 %v3852_v46, %v3848_v31  ;;  %v3858_v2 = vmul.f32 %v3856_v57, %v3697_v61 }
 0x59a   :  { %v3734_v4 = vadd.f32 %v3732_v36, %v3730_v25  ;;  %v3760_v44 = vadd.f32 %v3758_v35, %v3756_v8  ;;  %v3868_v28 = vmul.f32 %v3866_v7, %v3478_v30  ;;  %v3872_v13 = vmul.f32 %v8826_v17, %v3870_v12 }
 0x59b   :  { %v3834_v5 = vadd.f32 %v3832_v18, %v3828_v26  ;;  %v3878_v11 = vmul.f32 %v3876_v32, %v3624_v40  ;;  %v3786_v20 = vadd.f32 %v3784_v10, %v3782_v38  ;;  %v3860_v36 = vadd.f32 %v3858_v2, %v3854_v0 }
 0x59c   :  { %8642 = vmatprep.mubr.msk.f32.mxu0 %vm3921_vm10, %v3734_v4  ;;  %v3894_v35 = vmul.f32 %v3892_v23, %v3478_v30  ;;  %v3898_v58 = vmul.f32 %v8826_v17, %v3896_v27  ;;  %v3874_v7 = vadd.f32 %v3872_v13, %v3868_v28  ;;  %v3904_v57 = vmul.f32 %v3902_v50, %v3624_v40 }
 0x59d   :  { %8643 = vmatmul.mubr.msk.f32.gmra.mrb[20].mxu0 %vm3921_vm10, %v3760_v44  ;;  %v3812_v32 = vadd.f32 %v3810_v34, %v3808_v16  ;;  %v12116_v10 = vstv %s10550_s6  ;;  %v3838_v23 = vadd.f32 %v3836_v39, %v3834_v5  ;;  %v3910_v27 = vmul.f32 %v3908_v22, %v3697_v61  ;;  %s9386_s6 = smov 94  }
 0x59e   :  { %8645 = vmatprep.mubr.msk.f32.mxu0 %vm3921_vm10, %v3786_v20  ;;  %v3900_v12 = vadd.f32 %v3898_v58, %v3894_v35  ;;  %v3880_v14 = vadd.f32 %v3878_v11, %v3874_v7  ;;  %v3884_v43 = vmul.f32 %v12116_v10, %v3697_v61  ;;  %v3864_v40 = vadd.f32 %v3862_v62, %v3860_v36 }
 0x59f   :  { %v12122_v29 = vmov 32   ;;  %v12124_v55 = vmov 33  }
 0x5a0   :  { %v3906_v30 = vadd.f32 %v3904_v57, %v3900_v12  ;;  %v3886_v17 = vadd.f32 %v3884_v43, %v3880_v14 }
 0x5a1   :  { %8646 = vmatmul.mubr.msk.f32.gmra.mrb[22].mxu0 %vm3921_vm10, %v3812_v32 }
 0x5a2   :  { %8648 = vmatprep.mubr.msk.f32.mxu0 %vm3921_vm10, %v3838_v23  ;;  %v3912_v50 = vadd.f32 %v3910_v27, %v3906_v30  ;;  %v3890_v37 = vadd.f32 %v3888_v45, %v3886_v17 }
 0x5a4   :  { %v3916_v34 = vadd.f32 %v3914_v47, %v3912_v50 }
 0x5a5   :  { %8649 = vmatmul.mubr.msk.f32.gmra.mrb[24].mxu0 %vm3921_vm10, %v3864_v40 }
 0x5a6   :  { %8651 = vmatprep.mubr.msk.f32.mxu0 %vm3921_vm10, %v3890_v37 }
 0x5a9   :  { %8652 = vmatmul.mubr.msk.f32.gmra.mrb[26].mxu0 %vm3921_vm10, %v3916_v34 }
 0x5aa   :  { %8656 = vmatprep.mubr.msk.f32.mxu0 %vm9385_vm14, %v12082_v56 }
 0x656   :  { %v10741_v22 = vpop.f32.mrb[12].mxu0 }
 0x657   :  { %5099 = vperm.xlu0 %8947, %v10741_v22   ;;  %4133 = vrot.lane.b32.xlu1 %v10741_v22, %s9386_s6  ;;  %v10746_v39 = vpop.f32.mrb[13].mxu0 }
 0x658   :  { %12117 = vst [vmem:[#allocation24_spill] sm:$0xff] %v10746_v39  ;;  %8655 = vmatpush3.msk.msra.mxu0 %vm10120_vm1, %v10746_v39 }
 0x659   :  { %8659 = vmatprep.subr.mxu0 %v12082_v56 }
 0x65a   :  { %v10752_v62 = vpop.f32.mrb[14].mxu0 }
 0x65b   :  { %12118 = vst [vmem:[#allocation32_spill] sm:$0xff] %v10752_v62  ;;  %4696 = vperm.xlu1 %8948, %v10741_v22   ;;  %4131 = vrot.lane.b32.xlu0 %v10746_v39, %s9386_s6  ;;  %v10757_v45 = vpop.f32.mrb[15].mxu0 }
 0x65c   :  { %8670 = vmatpush3.msk.msra.mxu1 %vm10120_vm1, %v10752_v62 }
 0x65d   :  { %8679 = vmatprep.subr.mxu1 %v12082_v56 }
 0x65e   :  { %v10763_v47 = vpop.f32.mrb[16].mxu0 }
 0x65f   :  { %12119 = vst [vmem:[#allocation23_spill] sm:$0xff] %v10763_v47  ;;  %5095 = vperm.xlu0 %8947, %v10746_v39   ;;  %4137 = vrot.lane.b32.xlu1 %v10752_v62, %s9386_s6  ;;  %v10768_v61 = vpop.f32.mrb[17].mxu0 }
 0x660   :  { %12120 = vst [vmem:[#allocation31_spill] sm:$0xff] %v10768_v61 }
 0x662   :  { %v10770_v19 = vpop.f32.mrb[18].mxu0 }
 0x663   :  { %12121 = vst [vmem:[#allocation26_spill] sm:$0xff] %v10770_v19  ;;  %8949 = vset.pattern.permute.xlu0 %v12122_v29  ;;  %4704 = vperm.xlu1 %8948, %v10752_v62   ;;  %v10774_v6 = vpop.f32.mrb[19].mxu0 }
 0x664   :  { %12123 = vst [vmem:[#allocation25_spill] sm:$0xff] %v10774_v6  ;;  %4692 = vperm.xlu0 %8949, %v10746_v39  }
 0x667   :  { %4135 = vrot.lane.b32.xlu1 %v10757_v45, %s9386_s6 }
 0x668   :  { %8950 = vset.pattern.permute.xlu0 %v12124_v55 }
 0x669   :  { %5107 = vperm.xlu0 %8950, %v10752_v62  }
 0x66b   :  { %4141 = vrot.lane.b32.xlu1 %v10763_v47, %s9386_s6 }
 0x66d   :  { %5103 = vperm.xlu0 %8950, %v10757_v45  }
 0x66f   :  { %4139 = vrot.lane.b32.xlu1 %v10768_v61, %s9386_s6 }
 0x670   :  { %v10786_v49 = vpop.f32.mrb[20].mxu0 }
 0x671   :  { %12125 = vst [vmem:[#allocation28_spill] sm:$0xff] %v10786_v49  ;;  %8951 = vset.pattern.permute.xlu0 %v12122_v29  ;;  %v10789_v42 = vpop.f32.mrb[21].mxu0 }
 0x672   :  { %12126 = vst [vmem:[#allocation22_spill] sm:$0xff] %v10789_v42  ;;  %4700 = vperm.xlu0 %8951, %v10757_v45  }
 0x673   :  { %4145 = vrot.lane.b32.xlu1 %v10770_v19, %s9386_s6 }
 0x674   :  { %v10794_v41 = vpop.f32.mrb[22].mxu0 }
 0x675   :  { %12127 = vst [vmem:[#allocation27_spill] sm:$0xff] %v10794_v41  ;;  %v10796_v51 = vpop.f32.mrb[23].mxu0 }
 0x676   :  { %12128 = vst [vmem:[#allocation42_spill] sm:$0xff] %v10796_v51  ;;  %8952 = vset.pattern.permute.xlu0 %v12124_v55 }
 0x677   :  { %5115 = vperm.xlu0 %8952, %v10763_v47   ;;  %4720 = vperm.xlu1 %8948, %v10770_v19  }
 0x678   :  { %v10801_v9 = vpop.f32.mrb[24].mxu0 }
 0x679   :  { %12129 = vst [vmem:[#allocation43_spill] sm:$0xff] %v10801_v9  ;;  %v10803_v48 = vpop.f32.mrb[25].mxu0 }
 0x67a   :  { %12130 = vst [vmem:[#allocation44_spill] sm:$0xff] %v10803_v48 }
 0x67b   :  { %8953 = vset.pattern.permute.xlu0 %v12122_v29  ;;  %8957 = vset.pattern.permute.xlu1 %v12124_v55 }
 0x67c   :  { %4712 = vperm.xlu0 %8953, %v10763_v47   ;;  %5119 = vperm.xlu1 %8957, %v10774_v6   ;;  %v10809_v3 = vpop.f32.mrb[26].mxu0 }
 0x67d   :  { %12131 = vst [vmem:[#allocation45_spill] sm:$0xff] %v10809_v3  ;;  %v10811_v63 = vpop.f32.mrb[27].mxu0 }
 0x67e   :  { %12132 = vst [vmem:[#allocation46_spill] sm:$0xff] %v10811_v63 }
 0x680   :  { %8954 = vset.pattern.permute.xlu0 %v12124_v55  ;;  %8958 = vset.pattern.permute.xlu1 %v12122_v29 }
 0x681   :  { %5111 = vperm.xlu0 %8954, %v10768_v61   ;;  %4716 = vperm.xlu1 %8958, %v10774_v6  }
 0x685   :  { %8955 = vset.pattern.permute.xlu0 %v12122_v29  ;;  %4149 = vrot.lane.b32.xlu1 %v10786_v49, %s9386_s6 }
 0x686   :  { %4708 = vperm.xlu0 %8955, %v10768_v61  }
 0x689   :  { %4728 = vperm.xlu1 %8958, %v10786_v49  }
 0x68a   :  { %8956 = vset.pattern.permute.xlu0 %v12124_v55 }
 0x68b   :  { %5123 = vperm.xlu0 %8956, %v10770_v19  }
 0x68d   :  { %8959 = vset.pattern.permute.xlu1 %v12124_v55 }
 0x68e   :  { %5127 = vperm.xlu1 %8959, %v10789_v42  }
 0x68f   :  { %4143 = vrot.lane.b32.xlu0 %v10774_v6, %s9386_s6 }
 0x692   :  { %8960 = vset.pattern.permute.xlu1 %v12122_v29 }
 0x693   :  { %5131 = vperm.xlu0 %8956, %v10786_v49   ;;  %4724 = vperm.xlu1 %8960, %v10789_v42  }
 0x697   :  { %4147 = vrot.lane.b32.xlu0 %v10789_v42, %s9386_s6  ;;  %4153 = vrot.lane.b32.xlu1 %v10794_v41, %s9386_s6 }
 0x698   :  { %8961 = vset.pattern.permute.xlu1 %v12124_v55 }
 0x69b   :  { %5139 = vperm.xlu1 %8961, %v10794_v41   ;;  %4151 = vrot.lane.b32.xlu0 %v10796_v51, %s9386_s6 }
 0x69f   :  { %8962 = vset.pattern.permute.xlu1 %v12122_v29  ;;  %5147 = vperm.xlu0 %8956, %v10801_v9  }
 0x6a0   :  { %4736 = vperm.xlu1 %8962, %v10794_v41  }
 0x6a3   :  { %8965 = vset.pattern.permute.xlu0 %v12122_v29 }
 0x6a4   :  { %8963 = vset.pattern.permute.xlu1 %v12124_v55  ;;  %4744 = vperm.xlu0 %8965, %v10801_v9  }
 0x6a5   :  { %5135 = vperm.xlu1 %8963, %v10796_v51  }
 0x6a8   :  { %4155 = vrot.lane.b32.xlu0 %v10803_v48, %s9386_s6 }
 0x6a9   :  { %8964 = vset.pattern.permute.xlu1 %v12122_v29  ;;  %8966 = vset.pattern.permute.xlu0 %v12124_v55 }
 0x6aa   :  { %4732 = vperm.xlu1 %8964, %v10796_v51  }
 0x6ac   :  { %5143 = vperm.xlu0 %8966, %v10803_v48  }
 0x6ae   :  { %4157 = vrot.lane.b32.xlu1 %v10801_v9, %s9386_s6 }
 0x6b0   :  { %8967 = vset.pattern.permute.xlu0 %v12122_v29 }
 0x6b1   :  { %4740 = vperm.xlu0 %8967, %v10803_v48  }
 0x6b2   :  { %4161 = vrot.lane.b32.xlu1 %v10809_v3, %s9386_s6 }
 0x6b5   :  { %8968 = vset.pattern.permute.xlu0 %v12124_v55 }
 0x6b6   :  { %5155 = vperm.xlu0 %8968, %v10809_v3   ;;  %4752 = vperm.xlu1 %8964, %v10809_v3  }
 0x6ba   :  { %5151 = vperm.xlu0 %8968, %v10811_v63   ;;  %4159 = vrot.lane.b32.xlu1 %v10811_v63, %s9386_s6  ;;  %s11725_s6 = sld [smem:[#allocation12 + $0x86]] }
 0x6be   :  { %4748 = vperm.xlu1 %8964, %v10811_v63  }
 0x6c9   :  { %v4134_v21 = vpop.permute.xlu1 %4133 }
 0x6d6   :  { %v10865_v60 = vpop.permute.xlu0 %5099 }
 0x6d8   :  { %4211 = vxpose.xlu0.b32.start.end [1/1] (short) (narrow) %v4134_v21, 8 }
 0x6da   :  { %v10867_v24 = vpop.permute.xlu1 %4696  ;;  %v4132_v53 = vpop.permute.xlu0 %4131 }
 0x6de   :  { %v4138_v59 = vpop.permute.xlu1 %4137  ;;  %v10869_v33 = vpop.permute.xlu0 %5095 }
 0x6df   :  { %4275 = vxpose.xlu0.b32.start.end [1/1] (short) (narrow) %v4138_v59, 8 }
 0x6e2   :  { %v10871_v54 = vpop.permute.xlu1 %4704 }
 0x6e3   :  { %v10873_v31 = vpop.permute.xlu0 %4692 }
 0x6e6   :  { %v4136_v25 = vpop.permute.xlu1 %4135 }
 0x6e7   :  { %4179 = vxpose.xlu1.b32.start.end [1/1] (short) (narrow) %v4132_v53, 8 }
 0x6e8   :  { %v10875_v8 = vpop.permute.xlu0 %5107 }
 0x6ea   :  { %v4142_v38 = vpop.permute.xlu1 %4141 }
 0x6eb   :  { %4243 = vxpose.xlu1.b32.start.end [1/1] (short) (narrow) %v4136_v25, 8 }
 0x6ec   :  { %v10877_v46 = vpop.permute.xlu0 %5103 }
 0x6ee   :  { %v4140_v16 = vpop.permute.xlu1 %4139 }
 0x6ef   :  { %4307 = vxpose.xlu0.b32.start.end [1/1] (short) (narrow) %v4140_v16, 8  ;;  %4339 = vxpose.xlu1.b32.start.end [1/1] (short) (narrow) %v4142_v38, 8  ;;  %v12133_v38 = vld [vmem:[#allocation30_spill] sm:$0xff] }
 0x6f1   :  { %v10879_v26 = vpop.permute.xlu0 %4700 }
 0x6f2   :  { %v4146_v18 = vpop.permute.xlu1 %4145 }
 0x6f3   :  { %4403 = vxpose.xlu0.b32.start.end [1/1] (short) (narrow) %v4146_v18, 8 }
 0x6f6   :  { %v10881_v4 = vpop.permute.xlu1 %4720  ;;  %v10883_v44 = vpop.permute.xlu0 %5115 }
 0x6fb   :  { %v10885_v0 = vpop.permute.xlu1 %5119  ;;  %v10887_v2 = vpop.permute.xlu0 %4712 }
 0x700   :  { %v10889_v5 = vpop.permute.xlu1 %4716  ;;  %v10891_v28 = vpop.permute.xlu0 %5111 }
 0x704   :  { %v4150_v13 = vpop.permute.xlu1 %4149 }
 0x705   :  { %4467 = vxpose.xlu0.b32.start.end [1/1] (short) (narrow) %v4150_v13, 8  ;;  %v10893_v11 = vpop.permute.xlu0 %4708 }
 0x708   :  { %v10895_v20 = vpop.permute.xlu1 %4728 }
 0x70a   :  { %v10897_v36 = vpop.permute.xlu0 %5123 }
 0x70d   :  { %v10899_v35 = vpop.permute.xlu1 %5127 }
 0x70e   :  { %v4144_v58 = vpop.permute.xlu0 %4143 }
 0x70f   :  { %4371 = vxpose.xlu1.b32.start.end [1/1] (short) (narrow) %v4144_v58, 8 }
 0x712   :  { %v10901_v7 = vpop.permute.xlu1 %4724  ;;  %v10903_v57 = vpop.permute.xlu0 %5131 }
 0x716   :  { %v4154_v12 = vpop.permute.xlu1 %4153  ;;  %v4148_v32 = vpop.permute.xlu0 %4147 }
 0x717   :  { %4435 = vxpose.xlu0.b32.start.end [1/1] (short) (narrow) %v4148_v32, 8 }
 0x71a   :  { %v10905_v14 = vpop.permute.xlu1 %5139  ;;  %v4152_v10 = vpop.permute.xlu0 %4151 }
 0x71b   :  { %4531 = vxpose.xlu0.b32.start.end [1/1] (short) (narrow) %v4154_v12, 8 }
 0x71e   :  { %v10907_v43 = vpop.permute.xlu0 %5147 }
 0x71f   :  { %v10909_v23 = vpop.permute.xlu1 %4736  ;;  %4499 = vxpose.xlu0.b32.start.end [1/1] (short) (narrow) %v4152_v10, 8 }
 0x723   :  { %v10911_v30 = vpop.permute.xlu0 %4744 }
 0x724   :  { %v10913_v27 = vpop.permute.xlu1 %5135 }
 0x727   :  { %v4156_v17 = vpop.permute.xlu0 %4155 }
 0x728   :  { %4563 = vxpose.xlu0.b32.start.end [1/1] (short) (narrow) %v4156_v17, 8 }
 0x729   :  { %v10915_v50 = vpop.permute.xlu1 %4732 }
 0x72b   :  { %v10919_v55 = vpop.permute.xlu0 %5143 }
 0x72d   :  { %v4158_v40 = vpop.permute.xlu1 %4157 }
 0x72e   :  { %4595 = vxpose.xlu1.b32.start.end [1/1] (short) (narrow) %v4158_v40, 8 }
 0x730   :  { %v10921_v21 = vpop.permute.xlu0 %4740 }
 0x731   :  { %v4162_v37 = vpop.permute.xlu1 %4161 }
 0x732   :  { %4659 = vxpose.xlu0.b32.start.end [1/1] (short) (narrow) %v4162_v37, 8 }
 0x735   :  { %v10917_v34 = vpop.permute.xlu1 %4752  ;;  %v10923_v53 = vpop.permute.xlu0 %5155 }
 0x739   :  { %v4160_v29 = vpop.permute.xlu1 %4159  ;;  %v10925_v59 = vpop.permute.xlu0 %5151 }
 0x73a   :  { %4627 = vxpose.xlu0.b32.start.end [1/1] (short) (narrow) %v4160_v29, 8 }
 0x73d   :  { %v10942_v40 = vpop.permute.xlu1 %4748 }
 0x758   :  { %v10927_v25 = vpop.trf.xlu0 }
 0x759   :  { %v5165_v16 = vrot.slane %v10927_v25, %v12133_v38 }
 0x75b   :  { %v5223_v18 = vadd.f32 %v5165_v16, %v10865_v60 }
 0x75d   :  { %vm5239_vm11 = vcmp.gt.f32.partialorder %v5223_v18, 0.0  ;;  %v5255_v13 = vmul.f32 0.2, %v5223_v18 }
 0x75f   :  { %v10932_v58 = vpop.trf.xlu0  ;;  %v5271_v12 = vsel %vm5239_vm11, %v5223_v18, %v5255_v13 }
 0x760   :  { %v10936_v32 = vsel %vm103_vm4, %v5271_v12, -9e+15  ;;  %v5173_v17 = vrot.slane %v10932_v58, %v12133_v38 }
 0x761   :  { %v5305_v10 = vsel %vm640_vm7, %v10936_v32, -inf }
 0x762   :  { %5306 = vmax.xlane.f32.xlu1 %v5305_v10  ;;  %v5225_v60 = vadd.f32 %v5173_v17, %v10875_v8 }
 0x764   :  { %v5257_v18 = vmul.f32 0.2, %v5225_v60  ;;  %vm5241_vm12 = vcmp.gt.f32.partialorder %v5225_v60, 0.0 }
 0x766   :  { %v5273_v8 = vsel %vm5241_vm12, %v5225_v60, %v5257_v18 }
 0x767   :  { %v10945_v37 = vpop.trf.xlu1  ;;  %v10971_v60 = vsel %vm103_vm4, %v5273_v8, -9e+15 }
 0x768   :  { %v5161_v29 = vrot.slane %v10945_v37, %v12133_v38  ;;  %v5311_v9 = vsel %vm640_vm7, %v10971_v60, -inf }
 0x76a   :  { %v5222_v16 = vadd.f32 %v5161_v29, %v10869_v33 }
 0x76b   :  { %v10950_v13 = vpop.trf.xlu1 }
 0x76c   :  { %v5169_v12 = vrot.slane %v10950_v13, %v12133_v38  ;;  %vm5238_vm13 = vcmp.gt.f32.partialorder %v5222_v16, 0.0  ;;  %v5254_v10 = vmul.f32 0.2, %v5222_v16 }
 0x76e   :  { %v5224_v39 = vadd.f32 %v5169_v12, %v10877_v46  ;;  %v5270_v15 = vsel %vm5238_vm13, %v5222_v16, %v5254_v10 }
 0x76f   :  { %v10955_v17 = vpop.trf.xlu1  ;;  %v10957_v62 = vpop.trf.xlu0  ;;  %v10961_v33 = vsel %vm103_vm4, %v5270_v15, -9e+15 }
 0x770   :  { %v5181_v29 = vrot.slane %v10955_v17, %v12133_v38  ;;  %v5177_v3 = vrot.slane %v10957_v62, %v12133_v38  ;;  %v5302_v63 = vsel %vm640_vm7, %v10961_v33, -inf  ;;  %vm5240_vm15 = vcmp.gt.f32.partialorder %v5224_v39, 0.0 }
 0x771   :  { %v5256_v46 = vmul.f32 0.2, %v5224_v39  ;;  %5303 = vmax.xlane.f32.xlu0 %v5302_v63 }
 0x772   :  { %v5227_v16 = vadd.f32 %v5181_v29, %v10883_v44  ;;  %v5226_v15 = vadd.f32 %v5177_v3, %v10891_v28 }
 0x773   :  { %v10975_v18 = vpop.trf.xlu0  ;;  %v5272_v12 = vsel %vm5240_vm15, %v5224_v39, %v5256_v46 }
 0x774   :  { %v5189_v10 = vrot.slane %v10975_v18, %v12133_v38  ;;  %v10981_v48 = vsel %vm103_vm4, %v5272_v12, -9e+15  ;;  %vm5243_vm0 = vcmp.gt.f32.partialorder %v5227_v16, 0.0  ;;  %v5259_v8 = vmul.f32 0.2, %v5227_v16 }
 0x775   :  { %v5308_v44 = vsel %vm640_vm7, %v10981_v48, -inf  ;;  %vm5242_vm5 = vcmp.gt.f32.partialorder %v5226_v15, 0.0  ;;  %v5258_v3 = vmul.f32 0.2, %v5226_v15  ;;  %5312 = vmax.xlane.f32.xlu0 %v5311_v9 }
 0x776   :  { %v5229_v63 = vadd.f32 %v5189_v10, %v10897_v36  ;;  %5309 = vmax.xlane.f32.xlu1 %v5308_v44  ;;  %v5275_v39 = vsel %vm5243_vm0, %v5227_v16, %v5259_v8 }
 0x777   :  { %v5274_v28 = vsel %vm5242_vm5, %v5226_v15, %v5258_v3  ;;  %v10990_v29 = vsel %vm103_vm4, %v5275_v39, -9e+15 }
 0x778   :  { %v10994_v46 = vsel %vm103_vm4, %v5274_v28, -9e+15  ;;  %vm5245_vm3 = vcmp.gt.f32.partialorder %v5229_v63, 0.0  ;;  %v5317_v12 = vsel %vm640_vm7, %v10990_v29, -inf  ;;  %v5261_v36 = vmul.f32 0.2, %v5229_v63 }
 0x779   :  { %v5314_v51 = vsel %vm640_vm7, %v10994_v46, -inf  ;;  %5318 = vmax.xlane.f32.xlu0 %v5317_v12 }
 0x77a   :  { %5315 = vmax.xlane.f32.xlu1 %v5314_v51  ;;  %v5277_v9 = vsel %vm5245_vm3, %v5229_v63, %v5261_v36 }
 0x77b   :  { %v11002_v16 = vsel %vm103_vm4, %v5277_v9, -9e+15 }
 0x77c   :  { %v5323_v15 = vsel %vm640_vm7, %v11002_v16, -inf }
 0x77d   :  { %5324 = vmax.xlane.f32.xlu0 %v5323_v15 }
 0x785   :  { %v11006_v10 = vpop.trf.xlu0 }
 0x786   :  { %v5197_v44 = vrot.slane %v11006_v10, %v12133_v38 }
 0x788   :  { %v5231_v8 = vadd.f32 %v5197_v44, %v10903_v57 }
 0x78a   :  { %vm5247_vm6 = vcmp.gt.f32.partialorder %v5231_v8, 0.0  ;;  %v5263_v3 = vmul.f32 0.2, %v5231_v8 }
 0x78c   :  { %v5279_v39 = vsel %vm5247_vm6, %v5231_v8, %v5263_v3 }
 0x78d   :  { %v11013_v51 = vsel %vm103_vm4, %v5279_v39, -9e+15 }
 0x78e   :  { %v5329_v63 = vsel %vm640_vm7, %v11013_v51, -inf }
 0x78f   :  { %v11017_v28 = vpop.trf.xlu1  ;;  %5330 = vmax.xlane.f32.xlu0 %v5329_v63 }
 0x790   :  { %v5185_v12 = vrot.slane %v11017_v28, %v12133_v38 }
 0x792   :  { %v5228_v36 = vadd.f32 %v5185_v12, %v10885_v0 }
 0x794   :  { %vm5244_vm8 = vcmp.gt.f32.partialorder %v5228_v36, 0.0  ;;  %v5260_v57 = vmul.f32 0.2, %v5228_v36 }
 0x796   :  { %v5276_v9 = vsel %vm5244_vm8, %v5228_v36, %v5260_v57 }
 0x797   :  { %v11022_v15 = vpop.trf.xlu0  ;;  %v11026_v44 = vsel %vm103_vm4, %v5276_v9, -9e+15 }
 0x798   :  { %v5193_v8 = vrot.slane %v11022_v15, %v12133_v38  ;;  %v5320_v3 = vsel %vm640_vm7, %v11026_v44, -inf }
 0x799   :  { %5321 = vmax.xlane.f32.xlu1 %v5320_v3 }
 0x79a   :  { %v5230_v39 = vadd.f32 %v5193_v8, %v10899_v35 }
 0x79b   :  { %v11033_v63 = vpop.trf.xlu0 }
 0x79c   :  { %v5205_v0 = vrot.slane %v11033_v63, %v12133_v38  ;;  %vm5246_vm9 = vcmp.gt.f32.partialorder %v5230_v39, 0.0  ;;  %v5262_v12 = vmul.f32 0.2, %v5230_v39 }
 0x79e   :  { %v5233_v36 = vadd.f32 %v5205_v0, %v10905_v14  ;;  %v5278_v57 = vsel %vm5246_vm9, %v5230_v39, %v5262_v12 }
 0x79f   :  { %v11038_v9 = vpop.trf.xlu0  ;;  %v11042_v42 = vsel %vm103_vm4, %v5278_v57, -9e+15 }
 0x7a0   :  { %v5201_v3 = vrot.slane %v11038_v9, %v12133_v38  ;;  %v5326_v35 = vsel %vm640_vm7, %v11042_v42, -inf  ;;  %vm5249_vm11 = vcmp.gt.f32.partialorder %v5233_v36, 0.0  ;;  %v5265_v8 = vmul.f32 0.2, %v5233_v36 }
 0x7a1   :  { %5327 = vmax.xlane.f32.xlu1 %v5326_v35 }
 0x7a2   :  { %v5232_v41 = vadd.f32 %v5201_v3, %v10913_v27  ;;  %v5281_v49 = vsel %vm5249_vm11, %v5233_v36, %v5265_v8  ;;  %v12134_v3 = vld [vmem:[#allocation29_spill] sm:$0xff] }
 0x7a3   :  { %v11051_v14 = vsel %vm103_vm4, %v5281_v49, -9e+15  ;;  %v4770_v8 = vrot.slane %v10932_v58, %v12134_v3  ;;  %v4778_v6 = vrot.slane %v10955_v17, %v12134_v3  ;;  %v4758_v17 = vrot.slane %v10945_v37, %v12134_v3 }
 0x7a4   :  { %vm5248_vm12 = vcmp.gt.f32.partialorder %v5232_v41, 0.0  ;;  %v5264_v39 = vmul.f32 0.2, %v5232_v41  ;;  %v5335_v0 = vsel %vm640_vm7, %v11051_v14, -inf }
 0x7a5   :  { %5336 = vmax.xlane.f32.xlu0 %v5335_v0  ;;  %v4822_v19 = vadd.f32 %v4770_v8, %v10871_v54  ;;  %v4824_v8 = vadd.f32 %v4778_v6, %v10887_v2  ;;  %v4819_v2 = vadd.f32 %v4758_v17, %v10873_v31  ;;  %v4766_v31 = vrot.slane %v10950_v13, %v12134_v3 }
 0x7a6   :  { %v5280_v12 = vsel %vm5248_vm12, %v5232_v41, %v5264_v39  ;;  %v4802_v13 = vrot.slane %v11033_v63, %v12134_v3 }
 0x7a7   :  { %v11057_v57 = vsel %vm103_vm4, %v5280_v12, -9e+15  ;;  %vm4838_vm0 = vcmp.gt.f32.partialorder %v4822_v19, 0.0  ;;  %vm4840_vm3 = vcmp.gt.f32.partialorder %v4824_v8, 0.0  ;;  %vm4835_vm6 = vcmp.gt.f32.partialorder %v4819_v2, 0.0 }
 0x7a8   :  { %v11059_v35 = vpop.trf.xlu0  ;;  %v5332_v27 = vsel %vm640_vm7, %v11057_v57, -inf }
 0x7a9   :  { %v5209_v49 = vrot.slane %v11059_v35, %v12133_v38  ;;  %5333 = vmax.xlane.f32.xlu1 %v5332_v27 }
 0x7ab   :  { %v5234_v36 = vadd.f32 %v5209_v49, %v10919_v55 }
 0x7ad   :  { %vm5250_vm13 = vcmp.gt.f32.partialorder %v5234_v36, 0.0  ;;  %v5266_v41 = vmul.f32 0.2, %v5234_v36 }
 0x7ae   :  { %v11068_v39 = vpop.trf.xlu1 }
 0x7af   :  { %v5213_v0 = vrot.slane %v11068_v39, %v12133_v38  ;;  %v5282_v12 = vsel %vm5250_vm13, %v5234_v36, %v5266_v41  ;;  %v4786_v41 = vrot.slane %v10975_v18, %v12134_v3 }
 0x7b0   :  { %v11077_v27 = vsel %vm103_vm4, %v5282_v12, -9e+15 }
 0x7b1   :  { %v5235_v55 = vadd.f32 %v5213_v0, %v10907_v43  ;;  %v5338_v58 = vsel %vm640_vm7, %v11077_v27, -inf  ;;  %v4854_v43 = vmul.f32 0.2, %v4822_v19  ;;  %v4826_v18 = vadd.f32 %v4786_v41, %v10881_v4 }
 0x7b2   :  { %5339 = vmax.xlane.f32.xlu1 %v5338_v58  ;;  %v11082_v49 = vpop.trf.xlu0  ;;  %v4762_v58 = vrot.slane %v10927_v25, %v12134_v3  ;;  %v4851_v41 = vmul.f32 0.2, %v4819_v2 }
 0x7b3   :  { %v5221_v36 = vrot.slane %v11082_v49, %v12133_v38  ;;  %vm5251_vm15 = vcmp.gt.f32.partialorder %v5235_v55, 0.0  ;;  %v5267_v54 = vmul.f32 0.2, %v5235_v55  ;;  %v4858_v17 = vmul.f32 0.2, %v4826_v18 }
 0x7b4   :  { %vm4842_vm8 = vcmp.gt.f32.partialorder %v4826_v18, 0.0 }
 0x7b5   :  { %v5237_v0 = vadd.f32 %v5221_v36, %v10923_v53  ;;  %v5283_v12 = vsel %vm5251_vm15, %v5235_v55, %v5267_v54  ;;  %v4870_v53 = vsel %vm4838_vm0, %v4822_v19, %v4854_v43  ;;  %v4856_v55 = vmul.f32 0.2, %v4824_v8 }
 0x7b6   :  { %v11096_v47 = vsel %vm103_vm4, %v5283_v12, -9e+15  ;;  %v4794_v36 = vrot.slane %v11006_v10, %v12134_v3  ;;  %v4820_v54 = vadd.f32 %v4762_v58, %v10867_v24  ;;  %v11119_v10 = vsel %vm103_vm4, %v4870_v53, -9e+15 }
 0x7b7   :  { %v5341_v37 = vsel %vm640_vm7, %v11096_v47, -inf  ;;  %vm5253_vm5 = vcmp.gt.f32.partialorder %v5237_v0, 0.0  ;;  %v5269_v6 = vmul.f32 0.2, %v5237_v0  ;;  %v4872_v24 = vsel %vm4840_vm3, %v4824_v8, %v4856_v55 }
 0x7b8   :  { %5342 = vmax.xlane.f32.xlu0 %v5341_v37  ;;  %v4828_v43 = vadd.f32 %v4794_v36, %v10895_v20  ;;  %vm4836_vm9 = vcmp.gt.f32.partialorder %v4820_v54, 0.0  ;;  %v4821_v58 = vadd.f32 %v4766_v31, %v10879_v26  ;;  %v4908_v37 = vsel %vm640_vm7, %v11119_v10, -inf }
 0x7b9   :  { %v5285_v25 = vsel %vm5253_vm5, %v5237_v0, %v5269_v6  ;;  %v4774_v6 = vrot.slane %v10957_v62, %v12134_v3  ;;  %v11132_v20 = vsel %vm103_vm4, %v4872_v24, -9e+15  ;;  %v4874_v63 = vsel %vm4842_vm8, %v4826_v18, %v4858_v17 }
 0x7ba   :  { %v11105_v12 = vpop.trf.xlu0  ;;  %v11109_v61 = vsel %vm103_vm4, %v5285_v25, -9e+15  ;;  %v4830_v53 = vadd.f32 %v4802_v13, %v10909_v23  ;;  %v4810_v26 = vrot.slane %v11068_v39, %v12134_v3  ;;  %v4860_v36 = vmul.f32 0.2, %v4828_v43 }
 0x7bb   :  { %v5217_v19 = vrot.slane %v11105_v12, %v12133_v38  ;;  %v5347_v4 = vsel %vm640_vm7, %v11109_v61, -inf  ;;  %v4852_v38 = vmul.f32 0.2, %v4820_v54  ;;  %vm4844_vm12 = vcmp.gt.f32.partialorder %v4828_v43, 0.0 }
 0x7bc   :  { %5348 = vmax.xlane.f32.xlu0 %v5347_v4  ;;  %v4914_v31 = vsel %vm640_vm7, %v11132_v20, -inf  ;;  %v4853_v39 = vmul.f32 0.2, %v4821_v58  ;;  %v4823_v18 = vadd.f32 %v4774_v6, %v10893_v11  ;;  %vm4837_vm13 = vcmp.gt.f32.partialorder %v4821_v58, 0.0 }
 0x7bd   :  { %v5236_v0 = vadd.f32 %v5217_v19, %v10925_v59  ;;  %v4867_v59 = vsel %vm4835_vm6, %v4819_v2, %v4851_v41  ;;  %v4868_v62 = vsel %vm4836_vm9, %v4820_v54, %v4852_v38  ;;  %v4782_v19 = vrot.slane %v11017_v28, %v12134_v3 }
 0x7be   :  { %v11149_v23 = vsel %vm103_vm4, %v4867_v59, -9e+15  ;;  %v11156_v54 = vsel %vm103_vm4, %v4874_v63, -9e+15  ;;  %v4832_v4 = vadd.f32 %v4810_v26, %v10911_v30  ;;  %v4818_v24 = vrot.slane %v11082_v49, %v12134_v3 }
 0x7bf   :  { %vm5252_vm11 = vcmp.gt.f32.partialorder %v5236_v0, 0.0  ;;  %v5268_v8 = vmul.f32 0.2, %v5236_v0  ;;  %v4876_v17 = vsel %vm4844_vm12, %v4828_v43, %v4860_v36  ;;  %v4862_v41 = vmul.f32 0.2, %v4830_v53 }
 0x7c0   :  { %4909 = vmax.xlane.f32.xlu0 %v4908_v37  ;;  %vm4846_vm15 = vcmp.gt.f32.partialorder %v4830_v53, 0.0  ;;  %v4920_v11 = vsel %vm640_vm7, %v11156_v54, -inf  ;;  %v4899_v28 = vsel %vm640_vm7, %v11149_v23, -inf  ;;  %v11167_v13 = vsel %vm103_vm4, %v4868_v62, -9e+15 }
 0x7c1   :  { %v5284_v55 = vsel %vm5252_vm11, %v5236_v0, %v5268_v8  ;;  %v4869_v0 = vsel %vm4837_vm13, %v4821_v58, %v4853_v39  ;;  %v4825_v38 = vadd.f32 %v4782_v19, %v10889_v5  ;;  %v11172_v30 = vsel %vm103_vm4, %v4876_v17, -9e+15 }
 0x7c2   :  { %v11140_v25 = vsel %vm103_vm4, %v5284_v55, -9e+15  ;;  %vm4839_vm0 = vcmp.gt.f32.partialorder %v4823_v18, 0.0  ;;  %v4855_v49 = vmul.f32 0.2, %v4823_v18  ;;  %v4790_v43 = vrot.slane %v11022_v15, %v12134_v3 }
 0x7c3   :  { %v5344_v2 = vsel %vm640_vm7, %v11140_v25, -inf  ;;  %v4834_v37 = vadd.f32 %v4818_v24, %v10917_v34  ;;  %v4878_v8 = vsel %vm4846_vm15, %v4830_v53, %v4862_v41  ;;  %v4864_v6 = vmul.f32 0.2, %v4832_v4 }
 0x7c4   :  { %4915 = vmax.xlane.f32.xlu0 %v4914_v31  ;;  %5345 = vmax.xlane.f32.xlu1 %v5344_v2  ;;  %vm4848_vm5 = vcmp.gt.f32.partialorder %v4832_v4, 0.0  ;;  %v4926_v58 = vsel %vm640_vm7, %v11172_v30, -inf  ;;  %v4902_v5 = vsel %vm640_vm7, %v11167_v13, -inf  ;;  %v11183_v63 = vsel %vm103_vm4, %v4869_v0, -9e+15 }
 0x7c5   :  { %v11187_v15 = vsel %vm103_vm4, %v4878_v8, -9e+15  ;;  %v4871_v34 = vsel %vm4839_vm0, %v4823_v18, %v4855_v49  ;;  %vm4841_vm3 = vcmp.gt.f32.partialorder %v4825_v38, 0.0  ;;  %v4857_v59 = vmul.f32 0.2, %v4825_v38 }
 0x7c6   :  { %v4827_v53 = vadd.f32 %v4790_v43, %v10901_v7  ;;  %v4798_v26 = vrot.slane %v11038_v9, %v12134_v3  ;;  %v4880_v55 = vsel %vm4848_vm5, %v4832_v4, %v4864_v6  ;;  %v4866_v36 = vmul.f32 0.2, %v4834_v37 }
 0x7c7   :  { %vm4850_vm6 = vcmp.gt.f32.partialorder %v4834_v37, 0.0  ;;  %v4932_v62 = vsel %vm640_vm7, %v11187_v15, -inf  ;;  %v4905_v31 = vsel %vm640_vm7, %v11183_v63, -inf  ;;  %v11198_v2 = vsel %vm103_vm4, %v4880_v55, -9e+15 }
 0x7c8   :  { %4921 = vmax.xlane.f32.xlu0 %v4920_v11  ;;  %4900 = vmax.xlane.f32.xlu1 %v4899_v28  ;;  %v11202_v7 = vsel %vm103_vm4, %v4871_v34, -9e+15  ;;  %v4873_v9 = vsel %vm4841_vm3, %v4825_v38, %v4857_v59  ;;  %v4829_v39 = vadd.f32 %v4798_v26, %v10915_v50  ;;  %v4806_v18 = vrot.slane %v11059_v35, %v12134_v3 }
 0x7c9   :  { %v4882_v19 = vsel %vm4850_vm6, %v4834_v37, %v4866_v36  ;;  %v4859_v4 = vmul.f32 0.2, %v4827_v53  ;;  %vm4843_vm8 = vcmp.gt.f32.partialorder %v4827_v53, 0.0  ;;  %v4938_v24 = vsel %vm640_vm7, %v11198_v2, -inf }
 0x7ca   :  { %v4911_v17 = vsel %vm640_vm7, %v11202_v7, -inf  ;;  %v11213_v41 = vsel %vm103_vm4, %v4882_v19, -9e+15  ;;  %v11217_v50 = vsel %vm103_vm4, %v4873_v9, -9e+15  ;;  %v4831_v35 = vadd.f32 %v4806_v18, %v10921_v21 }
 0x7cb   :  { %v4814_v11 = vrot.slane %v11105_v12, %v12134_v3  ;;  %v4875_v28 = vsel %vm4843_vm8, %v4827_v53, %v4859_v4  ;;  %v4861_v0 = vmul.f32 0.2, %v4829_v39  ;;  %vm4845_vm9 = vcmp.gt.f32.partialorder %v4829_v39, 0.0 }
 0x7cc   :  { %4927 = vmax.xlane.f32.xlu0 %v4926_v58  ;;  %4903 = vmax.xlane.f32.xlu1 %v4902_v5  ;;  %v4944_v38 = vsel %vm640_vm7, %v11213_v41, -inf  ;;  %v4917_v49 = vsel %vm640_vm7, %v11217_v50, -inf  ;;  %v11228_v43 = vsel %vm103_vm4, %v4875_v28, -9e+15  ;;  %v4863_v8 = vmul.f32 0.2, %v4831_v35 }
 0x7cd   :  { %v4833_v21 = vadd.f32 %v4814_v11, %v10942_v40  ;;  %v4877_v37 = vsel %vm4845_vm9, %v4829_v39, %v4861_v0  ;;  %vm4847_vm11 = vcmp.gt.f32.partialorder %v4831_v35, 0.0  ;;  %v4923_v3 = vsel %vm640_vm7, %v11228_v43, -inf }
 0x7ce   :  { %v11235_v12 = vsel %vm103_vm4, %v4877_v37, -9e+15  ;;  %v4879_v6 = vsel %vm4847_vm11, %v4831_v35, %v4863_v8 }
 0x7cf   :  { %v4865_v58 = vmul.f32 0.2, %v4833_v21  ;;  %vm4849_vm12 = vcmp.gt.f32.partialorder %v4833_v21, 0.0  ;;  %v4929_v5 = vsel %vm640_vm7, %v11235_v12, -inf  ;;  %v11241_v40 = vsel %vm103_vm4, %v4879_v6, -9e+15 }
 0x7d0   :  { %4933 = vmax.xlane.f32.xlu0 %v4932_v62  ;;  %4906 = vmax.xlane.f32.xlu1 %v4905_v31  ;;  %v4935_v59 = vsel %vm640_vm7, %v11241_v40, -inf }
 0x7d1   :  { %v4881_v34 = vsel %vm4849_vm12, %v4833_v21, %v4865_v58 }
 0x7d2   :  { %v11247_v53 = vsel %vm103_vm4, %v4881_v34, -9e+15 }
 0x7d3   :  { %v4941_v26 = vsel %vm640_vm7, %v11247_v53, -inf }
 0x7d4   :  { %4939 = vmax.xlane.f32.xlu0 %v4938_v24  ;;  %4912 = vmax.xlane.f32.xlu1 %v4911_v17 }
 0x7d8   :  { %4945 = vmax.xlane.f32.xlu0 %v4944_v38  ;;  %4918 = vmax.xlane.f32.xlu1 %v4917_v49 }
 0x7dc   :  { %4924 = vmax.xlane.f32.xlu1 %v4923_v3 }
 0x7e0   :  { %4930 = vmax.xlane.f32.xlu1 %v4929_v5 }
 0x7e4   :  { %4936 = vmax.xlane.f32.xlu1 %v4935_v59 }
 0x7e8   :  { %4942 = vmax.xlane.f32.xlu1 %v4941_v26 }
 0x7ef   :  { %v5307_v55 = vpop.xlane.xlu1 %5306 }
 0x7f0   :  { %v5351_v36 = vsub.f32 %v10936_v32, %v5307_v55 }
 0x7f2   :  { %v5368_v62 = vmul.f32 1.442695, %v5351_v36 }
 0x7f4   :  { %9097 = vpow2.f32 %v5368_v62 }
 0x7fe   :  { %v11252_v31 = vpop.eup %9097  ;;  %v5304_v9 = vpop.xlane.xlu0 %5303 }
 0x7ff   :  { %v5401_v39 = vsel %vm640_vm7, %v11252_v31, 0.0  ;;  %v5350_v18 = vsub.f32 %v10961_v33, %v5304_v9 }
 0x800   :  { %5402 = vadd.xlane.f32.xlu0 %v5401_v39 }
 0x801   :  { %v5366_v1 = vmul.f32 1.442695, %v5350_v18 }
 0x802   :  { %v5313_v4 = vpop.xlane.xlu0 %5312 }
 0x803   :  { %v5310_v19 = vpop.xlane.xlu1 %5309  ;;  %9099 = vpow2.f32 %v5366_v1  ;;  %v5353_v32 = vsub.f32 %v10971_v60, %v5313_v4 }
 0x804   :  { %v5352_v24 = vsub.f32 %v10981_v48, %v5310_v19 }
 0x805   :  { %v5372_v0 = vmul.f32 1.442695, %v5353_v32 }
 0x806   :  { %v5370_v17 = vmul.f32 1.442695, %v5352_v24  ;;  %v5319_v11 = vpop.xlane.xlu0 %5318 }
 0x807   :  { %v5316_v35 = vpop.xlane.xlu1 %5315  ;;  %v5355_v49 = vsub.f32 %v10990_v29, %v5319_v11 }
 0x808   :  { %9101 = vpow2.f32 %v5370_v17  ;;  %v5354_v28 = vsub.f32 %v10994_v46, %v5316_v35 }
 0x809   :  { %v5376_v37 = vmul.f32 1.442695, %v5355_v49 }
 0x80a   :  { %v5374_v38 = vmul.f32 1.442695, %v5354_v28  ;;  %v5325_v33 = vpop.xlane.xlu0 %5324 }
 0x80b   :  { %v5357_v48 = vsub.f32 %v11002_v16, %v5325_v33 }
 0x80c   :  { %9103 = vpow2.f32 %v5374_v38 }
 0x80d   :  { %v11261_v21 = vpop.eup %9099  ;;  %9105 = vpow2.f32 %v5372_v0  ;;  %v5380_v46 = vmul.f32 1.442695, %v5357_v48 }
 0x80e   :  { %v5398_v60 = vsel %vm640_vm7, %v11261_v21, 0.0  ;;  %9107 = vpow2.f32 %v5376_v37 }
 0x80f   :  { %5399 = vadd.xlane.f32.xlu1 %v5398_v60  ;;  %9109 = vpow2.f32 %v5380_v46 }
 0x812   :  { %v11266_v8 = vpop.eup %9101 }
 0x813   :  { %v5404_v3 = vsel %vm640_vm7, %v11266_v8, 0.0 }
 0x814   :  { %5405 = vadd.xlane.f32.xlu1 %v5404_v3 }
 0x816   :  { %v11270_v29 = vpop.eup %9103 }
 0x817   :  { %v5410_v6 = vsel %vm640_vm7, %v11270_v29, 0.0  ;;  %v11274_v58 = vpop.eup %9105 }
 0x818   :  { %5411 = vadd.xlane.f32.xlu0 %v5410_v6  ;;  %v5407_v16 = vsel %vm640_vm7, %v11274_v58, 0.0  ;;  %v11278_v5 = vpop.eup %9107 }
 0x819   :  { %v5413_v55 = vsel %vm640_vm7, %v11278_v5, 0.0  ;;  %v11283_v36 = vpop.eup %9109 }
 0x81a   :  { %v5419_v62 = vsel %vm640_vm7, %v11283_v36, 0.0 }
 0x81c   :  { %5408 = vadd.xlane.f32.xlu0 %v5407_v16  ;;  %v5331_v34 = vpop.xlane.xlu0 %5330 }
 0x81d   :  { %v5359_v59 = vsub.f32 %v11013_v51, %v5331_v34 }
 0x81f   :  { %v5384_v26 = vmul.f32 1.442695, %v5359_v59 }
 0x820   :  { %5414 = vadd.xlane.f32.xlu0 %v5413_v55 }
 0x821   :  { %9111 = vpow2.f32 %v5384_v26 }
 0x824   :  { %5420 = vadd.xlane.f32.xlu0 %v5419_v62 }
 0x826   :  { %v5322_v9 = vpop.xlane.xlu1 %5321 }
 0x827   :  { %v5356_v39 = vsub.f32 %v11026_v44, %v5322_v9 }
 0x829   :  { %v5378_v18 = vmul.f32 1.442695, %v5356_v39 }
 0x82b   :  { %v11288_v1 = vpop.eup %9111  ;;  %9113 = vpow2.f32 %v5378_v18 }
 0x82c   :  { %v5425_v51 = vsel %vm640_vm7, %v11288_v1, 0.0 }
 0x82d   :  { %5426 = vadd.xlane.f32.xlu0 %v5425_v51 }
 0x82e   :  { %v5328_v19 = vpop.xlane.xlu1 %5327 }
 0x82f   :  { %v5358_v4 = vsub.f32 %v11042_v42, %v5328_v19 }
 0x831   :  { %v5382_v24 = vmul.f32 1.442695, %v5358_v4 }
 0x832   :  { %v5337_v17 = vpop.xlane.xlu0 %5336 }
 0x833   :  { %9115 = vpow2.f32 %v5382_v24  ;;  %v5361_v32 = vsub.f32 %v11051_v14, %v5337_v17 }
 0x835   :  { %v11294_v35 = vpop.eup %9113  ;;  %v5388_v11 = vmul.f32 1.442695, %v5361_v32 }
 0x836   :  { %v5334_v44 = vpop.xlane.xlu1 %5333  ;;  %v5416_v28 = vsel %vm640_vm7, %v11294_v35, 0.0 }
 0x837   :  { %v5360_v0 = vsub.f32 %v11057_v57, %v5334_v44  ;;  %5417 = vadd.xlane.f32.xlu1 %v5416_v28  ;;  %9117 = vpow2.f32 %v5388_v11 }
 0x839   :  { %v5386_v38 = vmul.f32 1.442695, %v5360_v0 }
 0x83b   :  { %9119 = vpow2.f32 %v5386_v38 }
 0x83d   :  { %v11299_v49 = vpop.eup %9115 }
 0x83e   :  { %v5422_v42 = vsel %vm640_vm7, %v11299_v49, 0.0 }
 0x83f   :  { %v5340_v33 = vpop.xlane.xlu1 %5339  ;;  %5423 = vadd.xlane.f32.xlu1 %v5422_v42 }
 0x840   :  { %v5362_v14 = vsub.f32 %v11077_v27, %v5340_v33 }
 0x841   :  { %v11304_v37 = vpop.eup %9117 }
 0x842   :  { %v5390_v48 = vmul.f32 1.442695, %v5362_v14  ;;  %v5431_v60 = vsel %vm640_vm7, %v11304_v37, 0.0 }
 0x843   :  { %5432 = vadd.xlane.f32.xlu0 %v5431_v60 }
 0x844   :  { %9121 = vpow2.f32 %v5390_v48 }
 0x845   :  { %v11308_v57 = vpop.eup %9119  ;;  %v5343_v46 = vpop.xlane.xlu0 %5342 }
 0x846   :  { %v5363_v3 = vsub.f32 %v11096_v47, %v5343_v46  ;;  %v5428_v6 = vsel %vm640_vm7, %v11308_v57, 0.0 }
 0x847   :  { %5429 = vadd.xlane.f32.xlu1 %v5428_v6 }
 0x848   :  { %v5392_v16 = vmul.f32 1.442695, %v5363_v3 }
 0x849   :  { %v5349_v34 = vpop.xlane.xlu0 %5348 }
 0x84a   :  { %9123 = vpow2.f32 %v5392_v16  ;;  %v5365_v27 = vsub.f32 %v11109_v61, %v5349_v34 }
 0x84c   :  { %v5396_v59 = vmul.f32 1.442695, %v5365_v27 }
 0x84d   :  { %v4910_v26 = vpop.xlane.xlu0 %4909 }
 0x84e   :  { %v11314_v55 = vpop.eup %9121  ;;  %9125 = vpow2.f32 %v5396_v59  ;;  %v4950_v62 = vsub.f32 %v11119_v10, %v4910_v26 }
 0x84f   :  { %v5434_v9 = vsel %vm640_vm7, %v11314_v55, 0.0 }
 0x850   :  { %v4969_v47 = vmul.f32 1.442695, %v4950_v62  ;;  %5435 = vadd.xlane.f32.xlu1 %v5434_v9 }
 0x851   :  { %v5346_v39 = vpop.xlane.xlu1 %5345  ;;  %v4916_v18 = vpop.xlane.xlu0 %4915 }
 0x852   :  { %9127 = vpow2.f32 %v4969_v47  ;;  %v5364_v51 = vsub.f32 %v11140_v25, %v5346_v39  ;;  %v4952_v19 = vsub.f32 %v11132_v20, %v4916_v18 }
 0x854   :  { %v11321_v61 = vpop.eup %9123  ;;  %v5394_v4 = vmul.f32 1.442695, %v5364_v51  ;;  %v4973_v24 = vmul.f32 1.442695, %v4952_v19 }
 0x855   :  { %v4901_v17 = vpop.xlane.xlu1 %4900  ;;  %v4922_v32 = vpop.xlane.xlu0 %4921  ;;  %v5437_v10 = vsel %vm640_vm7, %v11321_v61, 0.0 }
 0x856   :  { %9129 = vpow2.f32 %v5394_v4  ;;  %v4947_v11 = vsub.f32 %v11149_v23, %v4901_v17  ;;  %v4954_v44 = vsub.f32 %v11156_v54, %v4922_v32  ;;  %5438 = vadd.xlane.f32.xlu0 %v5437_v10 }
 0x857   :  { %9131 = vpow2.f32 %v4973_v24 }
 0x858   :  { %v11327_v28 = vpop.eup %9125  ;;  %v4963_v25 = vmul.f32 1.442695, %v4947_v11  ;;  %v4977_v20 = vmul.f32 1.442695, %v4954_v44 }
 0x859   :  { %v4904_v0 = vpop.xlane.xlu1 %4903  ;;  %v4928_v38 = vpop.xlane.xlu0 %4927  ;;  %v5443_v42 = vsel %vm640_vm7, %v11327_v28, 0.0 }
 0x85a   :  { %9133 = vpow2.f32 %v4963_v25  ;;  %v4948_v33 = vsub.f32 %v11167_v13, %v4904_v0  ;;  %v4956_v14 = vsub.f32 %v11172_v30, %v4928_v38  ;;  %5444 = vadd.xlane.f32.xlu0 %v5443_v42 }
 0x85b   :  { %9135 = vpow2.f32 %v4977_v20 }
 0x85c   :  { %v11333_v23 = vpop.eup %9127  ;;  %v4965_v54 = vmul.f32 1.442695, %v4948_v33  ;;  %v4981_v48 = vmul.f32 1.442695, %v4956_v14 }
 0x85d   :  { %v4907_v60 = vpop.xlane.xlu1 %4906  ;;  %v4934_v46 = vpop.xlane.xlu0 %4933  ;;  %v5004_v3 = vsel %vm640_vm7, %v11333_v23, 0.0 }
 0x85e   :  { %9137 = vpow2.f32 %v4965_v54  ;;  %v4949_v6 = vsub.f32 %v11183_v63, %v4907_v60  ;;  %v4958_v16 = vsub.f32 %v11187_v15, %v4934_v46  ;;  %5005 = vadd.xlane.f32.xlu0 %v5004_v3 }
 0x85f   :  { %9139 = vpow2.f32 %v4981_v48 }
 0x860   :  { %v11339_v13 = vpop.eup %9129  ;;  %v4967_v30 = vmul.f32 1.442695, %v4949_v6  ;;  %v4985_v34 = vmul.f32 1.442695, %v4958_v16 }
 0x861   :  { %v11341_v27 = vpop.eup %9131  ;;  %v4913_v59 = vpop.xlane.xlu1 %4912  ;;  %v5440_v62 = vsel %vm640_vm7, %v11339_v13, 0.0 }
 0x862   :  { %v4940_v26 = vpop.xlane.xlu0 %4939  ;;  %9141 = vpow2.f32 %v4967_v30  ;;  %v4951_v9 = vsub.f32 %v11202_v7, %v4913_v59  ;;  %5441 = vadd.xlane.f32.xlu1 %v5440_v62  ;;  %v5010_v15 = vsel %vm640_vm7, %v11341_v27, 0.0 }
 0x863   :  { %v4960_v63 = vsub.f32 %v11198_v2, %v4940_v26  ;;  %9143 = vpow2.f32 %v4985_v34  ;;  %5011 = vadd.xlane.f32.xlu0 %v5010_v15 }
 0x864   :  { %v11349_v47 = vpop.eup %9133  ;;  %v4971_v39 = vmul.f32 1.442695, %v4951_v9 }
 0x865   :  { %v4989_v18 = vmul.f32 1.442695, %v4960_v63  ;;  %v11351_v51 = vpop.eup %9135  ;;  %v4919_v19 = vpop.xlane.xlu1 %4918  ;;  %v4995_v24 = vsel %vm640_vm7, %v11349_v47, 0.0 }
 0x866   :  { %v4946_v4 = vpop.xlane.xlu0 %4945  ;;  %9145 = vpow2.f32 %v4971_v39  ;;  %v4953_v2 = vsub.f32 %v11217_v50, %v4919_v19  ;;  %4996 = vadd.xlane.f32.xlu1 %v4995_v24  ;;  %v5016_v17 = vsel %vm640_vm7, %v11351_v51, 0.0 }
 0x867   :  { %v4962_v7 = vsub.f32 %v11213_v41, %v4946_v4  ;;  %9147 = vpow2.f32 %v4989_v18  ;;  %5017 = vadd.xlane.f32.xlu0 %v5016_v17 }
 0x868   :  { %v11359_v32 = vpop.eup %9137  ;;  %v4975_v10 = vmul.f32 1.442695, %v4953_v2 }
 0x869   :  { %v4993_v11 = vmul.f32 1.442695, %v4962_v7  ;;  %v11361_v44 = vpop.eup %9139  ;;  %v4925_v25 = vpop.xlane.xlu1 %4924  ;;  %v4998_v20 = vsel %vm640_vm7, %v11359_v32, 0.0 }
 0x86a   :  { %9149 = vpow2.f32 %v4975_v10  ;;  %v4955_v50 = vsub.f32 %v11228_v43, %v4925_v25  ;;  %4999 = vadd.xlane.f32.xlu1 %v4998_v20  ;;  %v5022_v41 = vsel %vm640_vm7, %v11361_v44, 0.0 }
 0x86b   :  { %9151 = vpow2.f32 %v4993_v11  ;;  %5023 = vadd.xlane.f32.xlu0 %v5022_v41 }
 0x86c   :  { %v11368_v0 = vpop.eup %9141  ;;  %v4979_v38 = vmul.f32 1.442695, %v4955_v50 }
 0x86d   :  { %v11370_v42 = vpop.eup %9143  ;;  %v4931_v33 = vpop.xlane.xlu1 %4930  ;;  %v5001_v14 = vsel %vm640_vm7, %v11368_v0, 0.0 }
 0x86e   :  { %9153 = vpow2.f32 %v4979_v38  ;;  %v4957_v54 = vsub.f32 %v11235_v12, %v4931_v33  ;;  %5002 = vadd.xlane.f32.xlu1 %v5001_v14  ;;  %v5028_v43 = vsel %vm640_vm7, %v11370_v42, 0.0 }
 0x86f   :  { %5029 = vadd.xlane.f32.xlu0 %v5028_v43 }
 0x870   :  { %v11377_v48 = vpop.eup %9145  ;;  %v4983_v60 = vmul.f32 1.442695, %v4957_v54 }
 0x871   :  { %v11379_v46 = vpop.eup %9147  ;;  %v4937_v3 = vpop.xlane.xlu1 %4936  ;;  %v5007_v6 = vsel %vm640_vm7, %v11377_v48, 0.0 }
 0x872   :  { %9155 = vpow2.f32 %v4983_v60  ;;  %v4959_v16 = vsub.f32 %v11241_v40, %v4937_v3  ;;  %5008 = vadd.xlane.f32.xlu1 %v5007_v6  ;;  %v5034_v12 = vsel %vm640_vm7, %v11379_v46, 0.0  ;;  %v12135_v60 = vld [vmem:[#allocation31_spill] sm:$0xff] }
 0x873   :  { %5035 = vadd.xlane.f32.xlu0 %v5034_v12  ;;  %v12137_v12 = vld [vmem:[#allocation25_spill] sm:$0xff] }
 0x874   :  { %v11386_v30 = vpop.eup %9149  ;;  %v4987_v34 = vmul.f32 1.442695, %v4959_v16  ;;  %v12136_v16 = vld [vmem:[#allocation23_spill] sm:$0xff] }
 0x875   :  { %v11388_v59 = vpop.eup %9151  ;;  %v4943_v26 = vpop.xlane.xlu1 %4942  ;;  %v5013_v62 = vsel %vm640_vm7, %v11386_v30, 0.0 }
 0x876   :  { %9157 = vpow2.f32 %v4987_v34  ;;  %v4961_v9 = vsub.f32 %v11247_v53, %v4943_v26  ;;  %5014 = vadd.xlane.f32.xlu1 %v5013_v62  ;;  %v5040_v40 = vsel %vm640_vm7, %v11388_v59, 0.0  ;;  %v12138_v26 = vld [vmem:[#allocation26_spill] sm:$0xff]  ;;  %v12139_v62 = vld [vmem:[#allocation28_spill] sm:$0xff] }
 0x877   :  { %5041 = vadd.xlane.f32.xlu0 %v5040_v40 }
 0x878   :  { %v11395_v63 = vpop.eup %9153  ;;  %v4991_v15 = vmul.f32 1.442695, %v4961_v9 }
 0x879   :  { %v5019_v39 = vsel %vm640_vm7, %v11395_v63, 0.0 }
 0x87a   :  { %9159 = vpow2.f32 %v4991_v15  ;;  %5020 = vadd.xlane.f32.xlu1 %v5019_v39 }
 0x87c   :  { %v11399_v18 = vpop.eup %9155 }
 0x87d   :  { %v5025_v19 = vsel %vm640_vm7, %v11399_v18, 0.0 }
 0x87e   :  { %5026 = vadd.xlane.f32.xlu1 %v5025_v19 }
 0x880   :  { %v11403_v53 = vpop.eup %9157 }
 0x881   :  { %v5031_v4 = vsel %vm640_vm7, %v11403_v53, 0.0 }
 0x882   :  { %5032 = vadd.xlane.f32.xlu1 %v5031_v4 }
 0x884   :  { %v11407_v24 = vpop.eup %9159 }
 0x885   :  { %v5037_v2 = vsel %vm640_vm7, %v11407_v24, 0.0 }
 0x886   :  { %5038 = vadd.xlane.f32.xlu1 %v5037_v2 }
 0x88d   :  { %v5403_v7 = vpop.xlane.xlu0 %5402 }
 0x89c   :  { %v5400_v17 = vpop.xlane.xlu1 %5399 }
 0x89d   :  { %9161 = vrcp.f32 %v5400_v17 }
 0x89e   :  { %9163 = vrcp.f32 %v5403_v7 }
 0x8a1   :  { %v5406_v10 = vpop.xlane.xlu1 %5405 }
 0x8a2   :  { %9165 = vrcp.f32 %v5406_v10 }
 0x8a5   :  { %v5412_v11 = vpop.xlane.xlu0 %5411 }
 0x8a6   :  { %9167 = vrcp.f32 %v5412_v11 }
 0x8a7   :  { %v9162_v25 = vpop.eup %9161 }
 0x8a8   :  { %v5462_v20 = vmul.f32 %v9162_v25, %v11261_v21  ;;  %v9164_v41 = vpop.eup %9163 }
 0x8a9   :  { %v5409_v50 = vpop.xlane.xlu0 %5408  ;;  %v5463_v38 = vmul.f32 %v9164_v41, %v11252_v31  ;;  %v12143_v41 = vld [vmem:[#allocation43_spill] sm:$0xff] }
 0x8aa   :  { %9169 = vrcp.f32 %v5409_v50  ;;  %8657 = vmatmul.mubr.msk.f32.vlgmr.msra.gmra.mrb[28].mxu0 %vm640_vm7, %v5462_v20 }
 0x8ab   :  { %8660 = vmatpush3.msk.msra.mxu0 %vm10120_vm1, %v10741_v22  ;;  %8661 = vmatprep.mubr.msk.f32.mxu0 %vm9385_vm14, %v12082_v56 }
 0x8ac   :  { %8664 = vmatprep.subr.mxu0 %v12082_v56  ;;  %v9166_v14 = vpop.eup %9165 }
 0x8ad   :  { %v5415_v33 = vpop.xlane.xlu0 %5414  ;;  %v5464_v21 = vmul.f32 %v9166_v14, %v11266_v8 }
 0x8ae   :  { %9171 = vrcp.f32 %v5415_v33  ;;  %8662 = vmatmul.mubr.msk.f32.vlgmr.msra.gmra.mrb[30].mxu0 %vm640_vm7, %v5463_v38  ;;  %v12144_v38 = vld [vmem:[#allocation44_spill] sm:$0xff] }
 0x8af   :  { %8665 = vmatpush3.msk.msra.mxu0 %vm10120_vm1, %v10757_v45  ;;  %8666 = vmatprep.mubr.msk.f32.mxu0 %vm9385_vm14, %v12082_v56 }
 0x8b0   :  { %8674 = vmatprep.subr.mxu0 %v12082_v56  ;;  %v9168_v31 = vpop.eup %9167 }
 0x8b1   :  { %v5421_v54 = vpop.xlane.xlu0 %5420  ;;  %v5466_v3 = vmul.f32 %v9168_v31, %v11270_v29 }
 0x8b2   :  { %9173 = vrcp.f32 %v5421_v54  ;;  %8667 = vmatmul.mubr.msk.f32.vlgmr.msra.gmra.mrb[32].mxu0 %vm640_vm7, %v5464_v21  ;;  %v12145_v54 = vld [vmem:[#allocation46_spill] sm:$0xff] }
 0x8b3   :  { %8675 = vmatpush3.msk.msra.mxu0 %vm10120_vm1, %v12135_v60  ;;  %8676 = vmatprep.mubr.msk.f32.mxu0 %vm9385_vm14, %v12082_v56 }
 0x8b4   :  { %v9170_v43 = vpop.eup %9169  ;;  %8684 = vmatprep.subr.mxu0 %v12082_v56 }
 0x8b5   :  { %v5465_v6 = vmul.f32 %v9170_v43, %v11274_v58 }
 0x8b6   :  { %8677 = vmatmul.mubr.msk.f32.vlgmr.msra.gmra.mrb[34].mxu0 %vm640_vm7, %v5466_v3 }
 0x8b7   :  { %8672 = vmatmul.mubr.msk.f32.vlgmr.msra.gmra.mrb[14].mxu1 %vm640_vm7, %v5465_v6  ;;  %8685 = vmatpush3.msk.msra.mxu0 %vm10120_vm1, %v12137_v12 }
 0x8b8   :  { %v9172_v8 = vpop.eup %9171  ;;  %8680 = vmatpush3.msk.msra.mxu1 %vm10120_vm1, %v12136_v16  ;;  %8681 = vmatprep.mubr.msk.f32.mxu1 %vm9385_vm14, %v12082_v56 }
 0x8b9   :  { %v5467_v34 = vmul.f32 %v9172_v8, %v11278_v5  ;;  %8689 = vmatprep.subr.mxu1 %v12082_v56  ;;  %8686 = vmatprep.mubr.msk.f32.mxu0 %vm9385_vm14, %v12082_v56  ;;  %v12146_v8 = vld [vmem:[#allocation45_spill] sm:$0xff] }
 0x8ba   :  { %v5427_v29 = vpop.xlane.xlu0 %5426  ;;  %8694 = vmatprep.subr.mxu0 %v12082_v56 }
 0x8bb   :  { %8682 = vmatmul.mubr.msk.f32.vlgmr.msra.gmra.mrb[16].mxu1 %vm640_vm7, %v5467_v34  ;;  %9175 = vrcp.f32 %v5427_v29 }
 0x8bc   :  { %v9174_v58 = vpop.eup %9173  ;;  %8690 = vmatpush3.msk.msra.mxu1 %vm10120_vm1, %v12138_v26  ;;  %8691 = vmatprep.mubr.msk.f32.mxu1 %vm9385_vm14, %v12082_v56 }
 0x8bd   :  { %v5469_v5 = vmul.f32 %v9174_v58, %v11283_v36  ;;  %8699 = vmatprep.subr.mxu1 %v12082_v56  ;;  %v12140_v36 = vld [vmem:[#allocation27_spill] sm:$0xff] }
 0x8bf   :  { %8692 = vmatmul.mubr.msk.f32.vlgmr.msra.gmra.mrb[18].mxu1 %vm640_vm7, %v5469_v5  ;;  %v12147_v5 = vld [vmem:[#allocation32_spill] sm:$0xff] }
 0x8c0   :  { %8700 = vmatpush3.msk.msra.mxu1 %vm10120_vm1, %v12139_v62  ;;  %8701 = vmatprep.mubr.msk.f32.mxu1 %vm9385_vm14, %v12082_v56 }
 0x8c1   :  { %8709 = vmatprep.subr.mxu1 %v12082_v56 }
 0x8c4   :  { %v5418_v9 = vpop.xlane.xlu1 %5417 }
 0x8c5   :  { %v9176_v40 = vpop.eup %9175  ;;  %9177 = vrcp.f32 %v5418_v9  ;;  %v7874_v9 = vstv %s11677_s22 }
 0x8c6   :  { %v5471_v15 = vmul.f32 %v9176_v40, %v11288_v1  ;;  %v12141_v1 = vld [vmem:[#allocation22_spill] sm:$0xff] }
 0x8c8   :  { %8702 = vmatmul.mubr.msk.f32.vlgmr.msra.gmra.mrb[20].mxu1 %vm640_vm7, %v5471_v15 }
 0x8c9   :  { %8710 = vmatpush3.msk.msra.mxu1 %vm10120_vm1, %v12140_v36  ;;  %8711 = vmatprep.mubr.msk.f32.mxu1 %vm9385_vm14, %v12082_v56 }
 0x8ca   :  { %8719 = vmatprep.subr.mxu1 %v12082_v56 }
 0x8cc   :  { %v5424_v39 = vpop.xlane.xlu1 %5423 }
 0x8cd   :  { %9179 = vrcp.f32 %v5424_v39 }
 0x8cf   :  { %v9178_v19 = vpop.eup %9177 }
 0x8d0   :  { %v5468_v4 = vmul.f32 %v9178_v19, %v11294_v35  ;;  %v5433_v2 = vpop.xlane.xlu0 %5432  ;;  %v12142_v35 = vld [vmem:[#allocation42_spill] sm:$0xff] }
 0x8d1   :  { %9181 = vrcp.f32 %v5433_v2 }
 0x8d2   :  { %8687 = vmatmul.mubr.msk.f32.vlgmr.msra.gmra.mrb[36].mxu0 %vm640_vm7, %v5468_v4 }
 0x8d3   :  { %8695 = vmatpush3.msk.msra.mxu0 %vm10120_vm1, %v12141_v1  ;;  %8696 = vmatprep.mubr.msk.f32.mxu0 %vm9385_vm14, %v12082_v56 }
 0x8d4   :  { %v5430_v7 = vpop.xlane.xlu1 %5429  ;;  %8704 = vmatprep.subr.mxu0 %v12082_v56 }
 0x8d5   :  { %9183 = vrcp.f32 %v5430_v7 }
 0x8d7   :  { %v9180_v17 = vpop.eup %9179 }
 0x8d8   :  { %v5470_v10 = vmul.f32 %v9180_v17, %v11299_v49  ;;  %v12149_v17 = vld [vmem:[#allocation24_spill] sm:$0xff] }
 0x8da   :  { %8697 = vmatmul.mubr.msk.f32.vlgmr.msra.gmra.mrb[38].mxu0 %vm640_vm7, %v5470_v10 }
 0x8db   :  { %8705 = vmatpush3.msk.msra.mxu0 %vm10120_vm1, %v12142_v35  ;;  %8706 = vmatprep.mubr.msk.f32.mxu0 %vm9385_vm14, %v12082_v56  ;;  %v9182_v11 = vpop.eup %9181 }
 0x8dc   :  { %8714 = vmatprep.subr.mxu0 %v12082_v56  ;;  %v5473_v25 = vmul.f32 %v9182_v11, %v11304_v37 }
 0x8dd   :  { %v5436_v20 = vpop.xlane.xlu1 %5435 }
 0x8de   :  { %9185 = vrcp.f32 %v5436_v20  ;;  %8712 = vmatmul.mubr.msk.f32.vlgmr.msra.gmra.mrb[22].mxu1 %vm640_vm7, %v5473_v25 }
 0x8df   :  { %v9184_v50 = vpop.eup %9183  ;;  %8720 = vmatpush3.msk.msra.mxu1 %vm10120_vm1, %v12143_v41  ;;  %8721 = vmatprep.mubr.msk.f32.mxu1 %vm9385_vm14, %v12082_v56 }
 0x8e0   :  { %v5472_v49 = vmul.f32 %v9184_v50, %v11308_v57  ;;  %8729 = vmatprep.subr.mxu1 %v12082_v56 }
 0x8e2   :  { %8707 = vmatmul.mubr.msk.f32.vlgmr.msra.gmra.mrb[40].mxu0 %vm640_vm7, %v5472_v49 }
 0x8e3   :  { %8715 = vmatpush3.msk.msra.mxu0 %vm10120_vm1, %v12144_v38  ;;  %v5439_v37 = vpop.xlane.xlu0 %5438  ;;  %8716 = vmatprep.mubr.msk.f32.mxu0 %vm9385_vm14, %v12082_v56 }
 0x8e4   :  { %9187 = vrcp.f32 %v5439_v37  ;;  %8724 = vmatprep.subr.mxu0 %v12082_v56 }
 0x8e7   :  { %v5445_v57 = vpop.xlane.xlu0 %5444 }
 0x8e8   :  { %v9186_v33 = vpop.eup %9185  ;;  %9189 = vrcp.f32 %v5445_v57 }
 0x8e9   :  { %v5474_v14 = vmul.f32 %v9186_v33, %v11314_v55 }
 0x8eb   :  { %8717 = vmatmul.mubr.msk.f32.vlgmr.msra.gmra.mrb[42].mxu0 %vm640_vm7, %v5474_v14  ;;  %v5006_v21 = vpop.xlane.xlu0 %5005 }
 0x8ec   :  { %8725 = vmatpush3.msk.msra.mxu0 %vm10120_vm1, %v12145_v54  ;;  %9191 = vrcp.f32 %v5006_v21  ;;  %8726 = vmatprep.mubr.msk.f32.mxu0 %vm9385_vm14, %v12082_v56  ;;  %v7950_v21 = vstv %s11657_s24 }
 0x8ed   :  { %8734 = vmatprep.subr.mxu0 %v12082_v56 }
 0x8ee   :  { %v9188_v31 = vpop.eup %9187 }
 0x8ef   :  { %v5475_v43 = vmul.f32 %v9188_v31, %v11321_v61  ;;  %v5442_v3 = vpop.xlane.xlu1 %5441 }
 0x8f0   :  { %9193 = vrcp.f32 %v5442_v3  ;;  %v5012_v6 = vpop.xlane.xlu0 %5011  ;;  %v7912_v3 = vstv %s11663_s15  ;;  %s11735_s15 = sld [smem:[#allocation12 + $0x108]] }
 0x8f1   :  { %9195 = vrcp.f32 %v5012_v6  ;;  %8722 = vmatmul.mubr.msk.f32.vlgmr.msra.gmra.mrb[24].mxu1 %vm640_vm7, %v5475_v43  ;;  %v7862_v43 = vstv %s11661_s14  ;;  %v7962_v6 = vstv %s11665_s16  ;;  %s11743_s16 = sld [smem:[#allocation12 + $0x188]] }
 0x8f2   :  { %v9190_v55 = vpop.eup %9189  ;;  %8730 = vmatpush3.msk.msra.mxu1 %vm10120_vm1, %v12146_v8  ;;  %8731 = vmatprep.mubr.msk.f32.mxu1 %vm9385_vm14, %v12082_v56 }
 0x8f3   :  { %v5477_v34 = vmul.f32 %v9190_v55, %v11327_v28  ;;  %v4997_v29 = vpop.xlane.xlu1 %4996  ;;  %8749 = vmatprep.subr.mxu1 %v12082_v56  ;;  %v8012_v55 = vstv %s11667_s17  ;;  %s11741_s17 = sld [smem:[#allocation12 + $0x186]] }
 0x8f4   :  { %9197 = vrcp.f32 %v4997_v29  ;;  %v5018_v61 = vpop.xlane.xlu0 %5017  ;;  %v7884_v29 = vstv %s11671_s20 }
 0x8f5   :  { %9199 = vrcp.f32 %v5018_v61  ;;  %8732 = vmatmul.mubr.msk.f32.vlgmr.msra.gmra.mrb[26].mxu1 %vm640_vm7, %v5477_v34  ;;  %v7834_v34 = vstv %s11669_s18  ;;  %v7934_v61 = vstv %s11673_s2  ;;  %s12178_s2 = sld [smem:[#allocation48_spill]] }
 0x8f6   :  { %v9192_v58 = vpop.eup %9191  ;;  %8750 = vmatpush3.msk.msra.mxu1 %vm935_vm2, %v12147_v5  ;;  %8751 = vmatprep.mubr.msk.f32.mxu1 %vm9385_vm14, %v12082_v56 }
 0x8f7   :  { %v5062_v52 = vmul.f32 %v9192_v58, %v11333_v23  ;;  %v5000_v40 = vpop.xlane.xlu1 %4999  ;;  %8759 = vmatprep.subr.mxu1 %v12082_v56  ;;  %v7984_v58 = vstv %s11675_s21 }
 0x8f8   :  { %9201 = vrcp.f32 %v5000_v40  ;;  %v5024_v28 = vpop.xlane.xlu0 %5023  ;;  %v12061_v40 = vstv %s11681_s26 }
 0x8f9   :  { %9203 = vrcp.f32 %v5024_v28  ;;  %8752 = vmatmul.mubr.msk.f32.vlgmr.msra.gmra.mrb[14].mxu1 %vm640_vm7, %v5062_v52  ;;  %v7924_v52 = vstv %s11679_s23  ;;  %v8024_v28 = vstv %s11683_s25 }
 0x8fa   :  { %v9194_v15 = vpop.eup %9193  ;;  %8760 = vmatpush3.msk.msra.mxu1 %vm935_vm2, %v12136_v16  ;;  %8761 = vmatprep.mubr.msk.f32.mxu1 %vm9385_vm14, %v12082_v56 }
 0x8fb   :  { %v9196_v39 = vpop.eup %9195  ;;  %v5476_v19 = vmul.f32 %v9194_v15, %v11339_v13  ;;  %v5003_v23 = vpop.xlane.xlu1 %5002  ;;  %8769 = vmatprep.subr.mxu1 %v12082_v56 }
 0x8fc   :  { %v5064_v4 = vmul.f32 %v9196_v39, %v11341_v27  ;;  %9205 = vrcp.f32 %v5003_v23  ;;  %v5030_v2 = vpop.xlane.xlu0 %5029  ;;  %v7888_v23 = vstv %s11687_s27 }
 0x8fd   :  { %9207 = vrcp.f32 %v5030_v2  ;;  %8727 = vmatmul.mubr.msk.f32.vlgmr.msra.gmra.mrb[44].mxu0 %vm640_vm7, %v5476_v19  ;;  %v7838_v19 = vstv %s11685_s5  ;;  %v7988_v2 = vstv %s11691_s29 }
 0x8fe   :  { %v9198_v7 = vpop.eup %9197  ;;  %8735 = vmatpush3.msk.msra.mxu0 %vm935_vm2, %v12149_v17  ;;  %8762 = vmatmul.mubr.msk.f32.vlgmr.msra.gmra.mrb[16].mxu1 %vm640_vm7, %v5064_v4  ;;  %v7938_v4 = vstv %s11689_s28  ;;  %v7844_v17 = vstv %s11695_s4 }
 0x8ff   :  { %v9200_v16 = vpop.eup %9199  ;;  %v5059_v13 = vmul.f32 %v9198_v7, %v11349_v47  ;;  %8770 = vmatpush3.msk.msra.mxu1 %vm935_vm2, %v12138_v26  ;;  %v5009_v27 = vpop.xlane.xlu1 %5008  ;;  %8736 = vmatprep.mubr.msk.f32.mxu0 %vm9385_vm14, %v12082_v56 }
 0x900   :  { %v5066_v10 = vmul.f32 %v9200_v16, %v11351_v51  ;;  %9209 = vrcp.f32 %v5009_v27  ;;  %v5036_v11 = vpop.xlane.xlu0 %5035  ;;  %8739 = vmatprep.subr.mxu0 %v12082_v56  ;;  %8771 = vmatprep.mubr.msk.f32.mxu1 %vm9385_vm14, %v12082_v56  ;;  %v7894_v16 = vstv %s11697_s30  ;;  %v7994_v27 = vstv %s11701_s8 }
 0x901   :  { %9211 = vrcp.f32 %v5036_v11  ;;  %8779 = vmatprep.subr.mxu1 %v12082_v56  ;;  %8737 = vmatmul.mubr.msk.f32.vlgmr.msra.gmra.mrb[28].mxu0 %vm640_vm7, %v5059_v13  ;;  %v7944_v13 = vstv %s11699_s7  ;;  %v7906_v11 = vstv %s11705_s10 }
 0x902   :  { %v9202_v47 = vpop.eup %9201  ;;  %8740 = vmatpush3.msk.msra.mxu0 %vm935_vm2, %v10741_v22  ;;  %8772 = vmatmul.mubr.msk.f32.vlgmr.msra.gmra.mrb[18].mxu1 %vm640_vm7, %v5066_v10  ;;  %v7856_v10 = vstv %s11703_s9 }
 0x903   :  { %v9204_v51 = vpop.eup %9203  ;;  %v5060_v26 = vmul.f32 %v9202_v47, %v11359_v32  ;;  %8780 = vmatpush3.msk.msra.mxu1 %vm935_vm2, %v12139_v62  ;;  %v5015_v25 = vpop.xlane.xlu1 %5014  ;;  %8741 = vmatprep.mubr.msk.f32.mxu0 %vm9385_vm14, %v12082_v56  ;;  %v7956_v47 = vstv %s11707_s0 }
 0x904   :  { %v5068_v20 = vmul.f32 %v9204_v51, %v11361_v44  ;;  %9213 = vrcp.f32 %v5015_v25  ;;  %v5042_v50 = vpop.xlane.xlu0 %5041  ;;  %8744 = vmatprep.subr.mxu0 %v12082_v56  ;;  %8781 = vmatprep.mubr.msk.f32.mxu1 %vm9385_vm14, %v12082_v56  ;;  %v8006_v51 = vstv %s11709_s3 }
 0x905   :  { %9215 = vrcp.f32 %v5042_v50  ;;  %8789 = vmatprep.subr.mxu1 %v12082_v56  ;;  %8742 = vmatmul.mubr.msk.f32.vlgmr.msra.gmra.mrb[30].mxu0 %vm640_vm7, %v5060_v26 }
 0x906   :  { %v9206_v22 = vpop.eup %9205  ;;  %8745 = vmatpush3.msk.msra.mxu0 %vm935_vm2, %v10757_v45  ;;  %8782 = vmatmul.mubr.msk.f32.vlgmr.msra.gmra.mrb[20].mxu1 %vm640_vm7, %v5068_v20 }
 0x907   :  { %v9208_v32 = vpop.eup %9207  ;;  %v5061_v44 = vmul.f32 %v9206_v22, %v11368_v0  ;;  %8790 = vmatpush3.msk.msra.mxu1 %vm935_vm2, %v12140_v36  ;;  %v5021_v62 = vpop.xlane.xlu1 %5020  ;;  %8746 = vmatprep.mubr.msk.f32.mxu0 %vm9385_vm14, %v12082_v56 }
 0x908   :  { %v5070_v49 = vmul.f32 %v9208_v32, %v11370_v42  ;;  %9217 = vrcp.f32 %v5021_v62  ;;  %8754 = vmatprep.subr.mxu0 %v12082_v56  ;;  %8791 = vmatprep.mubr.msk.f32.mxu1 %vm9385_vm14, %v12082_v56 }
 0x909   :  { %8799 = vmatprep.subr.mxu1 %v12082_v56  ;;  %8747 = vmatmul.mubr.msk.f32.vlgmr.msra.gmra.mrb[32].mxu0 %vm640_vm7, %v5061_v44 }
 0x90a   :  { %v9210_v45 = vpop.eup %9209  ;;  %8755 = vmatpush3.msk.msra.mxu0 %vm935_vm2, %v12135_v60  ;;  %8792 = vmatmul.mubr.msk.f32.vlgmr.msra.gmra.mrb[22].mxu1 %vm640_vm7, %v5070_v49 }
 0x90b   :  { %v9212_v0 = vpop.eup %9211  ;;  %v5063_v42 = vmul.f32 %v9210_v45, %v11377_v48  ;;  %8800 = vmatpush3.msk.msra.mxu1 %vm935_vm2, %v12143_v41  ;;  %v5027_v36 = vpop.xlane.xlu1 %5026  ;;  %8756 = vmatprep.mubr.msk.f32.mxu0 %vm9385_vm14, %v12082_v56 }
 0x90c   :  { %v5072_v37 = vmul.f32 %v9212_v0, %v11379_v46  ;;  %9219 = vrcp.f32 %v5027_v36  ;;  %8764 = vmatprep.subr.mxu0 %v12082_v56  ;;  %8801 = vmatprep.mubr.msk.f32.mxu1 %vm9385_vm14, %v12082_v56  ;;  %v7868_v36 = vstv %s11717_s11 }
 0x90d   :  { %8809 = vmatprep.subr.mxu1 %v12082_v56  ;;  %8757 = vmatmul.mubr.msk.f32.vlgmr.msra.gmra.mrb[34].mxu0 %vm640_vm7, %v5063_v42 }
 0x90e   :  { %v9214_v48 = vpop.eup %9213  ;;  %8765 = vmatpush3.msk.msra.mxu0 %vm935_vm2, %v12137_v12  ;;  %8802 = vmatmul.mubr.msk.f32.vlgmr.msra.gmra.mrb[24].mxu1 %vm640_vm7, %v5072_v37  ;;  %v7880_v37 = vstv %s11719_s13 }
 0x90f   :  { %v9216_v60 = vpop.eup %9215  ;;  %v5065_v46 = vmul.f32 %v9214_v48, %v11386_v30  ;;  %8810 = vmatpush3.msk.msra.mxu1 %vm935_vm2, %v12146_v8  ;;  %v5033_v41 = vpop.xlane.xlu1 %5032  ;;  %8766 = vmatprep.mubr.msk.f32.mxu0 %vm9385_vm14, %v12082_v56  ;;  %v7918_v48 = vstv %s11725_s6 }
 0x910   :  { %v5074_v57 = vmul.f32 %v9216_v60, %v11388_v59  ;;  %9221 = vrcp.f32 %v5033_v41  ;;  %8774 = vmatprep.subr.mxu0 %v12082_v56  ;;  %8811 = vmatprep.mubr.msk.f32.mxu1 %vm9385_vm14, %v12082_v56 }
 0x911   :  { %8767 = vmatmul.mubr.msk.f32.vlgmr.msra.gmra.mrb[36].mxu0 %vm640_vm7, %v5065_v46 }
 0x912   :  { %v9218_v12 = vpop.eup %9217  ;;  %8775 = vmatpush3.msk.msra.mxu0 %vm935_vm2, %v12141_v1  ;;  %8812 = vmatmul.mubr.msk.f32.vlgmr.msra.gmra.mrb[26].mxu1 %vm640_vm7, %v5074_v57 }
 0x913   :  { %v5067_v30 = vmul.f32 %v9218_v12, %v11395_v63  ;;  %v5039_v33 = vpop.xlane.xlu1 %5038  ;;  %8776 = vmatprep.mubr.msk.f32.mxu0 %vm9385_vm14, %v12082_v56  ;;  %8784 = vmatprep.subr.mxu0 %v12082_v56 }
 0x914   :  { %9223 = vrcp.f32 %v5039_v33 }
 0x915   :  { %8777 = vmatmul.mubr.msk.f32.vlgmr.msra.gmra.mrb[38].mxu0 %vm640_vm7, %v5067_v30 }
 0x916   :  { %v9220_v59 = vpop.eup %9219  ;;  %8785 = vmatpush3.msk.msra.mxu0 %vm935_vm2, %v12142_v35  ;;  %8786 = vmatprep.mubr.msk.f32.mxu0 %vm9385_vm14, %v12082_v56 }
 0x917   :  { %v5069_v1 = vmul.f32 %v9220_v59, %v11399_v18  ;;  %8794 = vmatprep.subr.mxu0 %v12082_v56  ;;  %v7980_v59 = vstv %s11735_s15 }
 0x919   :  { %8787 = vmatmul.mubr.msk.f32.vlgmr.msra.gmra.mrb[40].mxu0 %vm640_vm7, %v5069_v1  ;;  %v8018_v1 = vstv %s11741_s17 }
 0x91a   :  { %v9222_v63 = vpop.eup %9221  ;;  %8795 = vmatpush3.msk.msra.mxu0 %vm935_vm2, %v12144_v38  ;;  %8796 = vmatprep.mubr.msk.f32.mxu0 %vm9385_vm14, %v12082_v56  ;;  %v7900_v38 = vstv %s11655_s19  ;;  %s11727_s19 = sld [smem:[#allocation12 + $0x88]] }
 0x91b   :  { %v5071_v14 = vmul.f32 %v9222_v63, %v11403_v53  ;;  %8804 = vmatprep.subr.mxu0 %v12082_v56  ;;  %v8030_v63 = vstv %s11743_s16 }
 0x91d   :  { %8797 = vmatmul.mubr.msk.f32.vlgmr.msra.gmra.mrb[42].mxu0 %vm640_vm7, %v5071_v14 }
 0x91e   :  { %v9224_v35 = vpop.eup %9223  ;;  %8805 = vmatpush3.msk.msra.mxu0 %vm935_vm2, %v12145_v54  ;;  %8806 = vmatprep.mubr.msk.f32.mxu0 %vm9385_vm14, %v12082_v56  ;;  %v8000_v54 = vstv %s11659_s12  ;;  %s11733_s12 = sld [smem:[#allocation12 + $0x106]] }
 0x91f   :  { %v5073_v18 = vmul.f32 %v9224_v35, %v11407_v24  ;;  %v7850_v24 = vstv %s11653_s1 }
 0x920   :  { %12163 = sst [smem:[#allocation51_spill]] %s11727_s19  ;;  %v7930_v60 = vstv %s11727_s19  ;;  %s9387_s19 = smov [#allocation14]  }
 0x921   :  { %8807 = vmatmul.mubr.msk.f32.vlgmr.msra.gmra.mrb[44].mxu0 %vm640_vm7, %v5073_v18  ;;  %s8046_s17 = sshll.u32 %s9387_s19, 4  ;;  %s8047_s17 = int_to_ptr.vmem [resolvable:$true] %s8046_s17 }
 0x922   :  { %s9337_s20 = scalar_lea.vmem %s8047_s17, 1024  ;;  %p9342_p1 = scmp.lt.s32.totalorder %s8047_s17, %s8047_s17 }
 0x923   :  { %p9338_p0 = scmp.ne.s32.totalorder %s8047_s17, %s9337_s20  ;;  %p9343_p2 = scmp.lt.s32.totalorder %s9337_s20, %s9337_s20 }
 0x924   :  { %12164 = sst [smem:[#allocation52_spill]] %s11733_s12  ;;  %v7968_v33 = vstv %s11733_s12 }
 0x925   :  { %p9344_p3 = por %p9343_p2, %p9342_p1 }
 0x927   :  { %p9345_p4 = pnand %p9344_p3, %p9338_p0 }
 0x9cc   :  { %v11693_v56 = vpop.f32.mrb[14].mxu1 }
 0x9cd   :  { %v8753_v53 = vpop.f32.mrb[15].mxu1 }
 0x9d1   :  { %v11715_v31 = vpop.f32.mrb[16].mxu1 }
 0x9d2   :  { %v8763_v8 = vpop.f32.mrb[17].mxu1 }
 0x9d4   :  { %v6734_v5 = vpop.f32.mrb[28].mxu0 }
 0x9d5   :  { %v11745_v15 = vpop.f32.mrb[18].mxu1  ;;  %v8738_v39 = vpop.f32.mrb[29].mxu0  ;;  %v7835_v26 = vmul.f32 %v7834_v34, %v6734_v5  ;;  %v7885_v25 = vmul.f32 %v7884_v29, %v6734_v5  ;;  %v7935_v20 = vmul.f32 %v7934_v61, %v6734_v5  ;;  %v7985_v50 = vmul.f32 %v7984_v58, %v6734_v5 }
 0x9d6   :  { %v8773_v7 = vpop.f32.mrb[19].mxu1  ;;  %v7851_v39 = vmul.f32 %v7850_v24, %v11693_v56 }
 0x9d7   :  { %v7901_v7 = vmul.f32 %v7900_v38, %v11693_v56 }
 0x9d8   :  { %v6807_v22 = vpop.f32.mrb[30].mxu0 }
 0x9d9   :  { %v7839_v32 = vmul.f32 %v7838_v19, %v6807_v22  ;;  %v7889_v44 = vmul.f32 %v7888_v23, %v6807_v22  ;;  %v7939_v62 = vmul.f32 %v7938_v4, %v6807_v22  ;;  %v7989_v49 = vmul.f32 %v7988_v2, %v6807_v22  ;;  %v11775_v45 = vpop.f32.mrb[20].mxu1  ;;  %v8743_v0 = vpop.f32.mrb[31].mxu0 }
 0x9da   :  { %v8783_v42 = vpop.f32.mrb[21].mxu1  ;;  %v7963_v0 = vmul.f32 %v7962_v6, %v11715_v31 }
 0x9db   :  { %v7841_v46 = vadd.f32 %v7839_v32, %v7835_v26  ;;  %v7891_v41 = vadd.f32 %v7889_v44, %v7885_v25  ;;  %v7941_v57 = vadd.f32 %v7939_v62, %v7935_v20  ;;  %v7991_v12 = vadd.f32 %v7989_v49, %v7985_v50 }
 0x9dc   :  { %v6880_v30 = vpop.f32.mrb[32].mxu0  ;;  %v7951_v26 = vmul.f32 %v7950_v21, %v11693_v56  ;;  %v8001_v25 = vmul.f32 %v8000_v54, %v11693_v56  ;;  %v7863_v62 = vmul.f32 %v7862_v43, %v11715_v31  ;;  %v7913_v49 = vmul.f32 %v7912_v3, %v11715_v31 }
 0x9dd   :  { %v7845_v14 = vmul.f32 %v7844_v17, %v6880_v30  ;;  %v7895_v35 = vmul.f32 %v7894_v16, %v6880_v30  ;;  %v7945_v18 = vmul.f32 %v7944_v13, %v6880_v30  ;;  %v7995_v53 = vmul.f32 %v7994_v27, %v6880_v30  ;;  %v11793_v8 = vpop.f32.mrb[22].mxu1  ;;  %v8748_v5 = vpop.f32.mrb[33].mxu0 }
 0x9de   :  { %v8793_v20 = vpop.f32.mrb[23].mxu1  ;;  %v8013_v56 = vmul.f32 %v8012_v55, %v11715_v31 }
 0x9df   :  { %v7847_v50 = vadd.f32 %v7845_v14, %v7841_v46  ;;  %v7897_v22 = vadd.f32 %v7895_v35, %v7891_v41  ;;  %v7947_v32 = vadd.f32 %v7945_v18, %v7941_v57  ;;  %v7997_v44 = vadd.f32 %v7995_v53, %v7991_v12 }
 0x9e0   :  { %v7026_v42 = vpop.f32.mrb[34].mxu0 }
 0x9e1   :  { %v7853_v46 = vadd.f32 %v7851_v39, %v7847_v50  ;;  %v7857_v41 = vmul.f32 %v7856_v10, %v7026_v42  ;;  %v7903_v57 = vadd.f32 %v7901_v7, %v7897_v22  ;;  %v7907_v12 = vmul.f32 %v7906_v11, %v7026_v42  ;;  %v11823_v30 = vpop.f32.mrb[24].mxu1  ;;  %v8758_v14 = vpop.f32.mrb[35].mxu0 }
 0x9e2   :  { %v7953_v35 = vadd.f32 %v7951_v26, %v7947_v32  ;;  %v7957_v18 = vmul.f32 %v7956_v47, %v7026_v42  ;;  %v8003_v53 = vadd.f32 %v8001_v25, %v7997_v44  ;;  %v8007_v31 = vmul.f32 %v8006_v51, %v7026_v42  ;;  %v8803_v5 = vpop.f32.mrb[25].mxu1 }
 0x9e3   :  { %v7875_v39 = vmul.f32 %v7874_v9, %v11745_v15  ;;  %v7925_v7 = vmul.f32 %v7924_v52, %v11745_v15  ;;  %v7859_v20 = vadd.f32 %v7857_v41, %v7853_v46  ;;  %v7909_v50 = vadd.f32 %v7907_v12, %v7903_v57 }
 0x9e4   :  { %v7975_v26 = vmul.f32 %v12061_v40, %v11745_v15  ;;  %v8025_v25 = vmul.f32 %v8024_v28, %v11745_v15  ;;  %v7959_v22 = vadd.f32 %v7957_v18, %v7953_v35  ;;  %v8009_v32 = vadd.f32 %v8007_v31, %v8003_v53  ;;  %v7172_v44 = vpop.f32.mrb[36].mxu0 }
 0x9e5   :  { %v7865_v42 = vadd.f32 %v7863_v62, %v7859_v20  ;;  %v7869_v14 = vmul.f32 %v7868_v36, %v7172_v44  ;;  %v7915_v5 = vadd.f32 %v7913_v49, %v7909_v50  ;;  %v7919_v46 = vmul.f32 %v7918_v48, %v7172_v44  ;;  %v11845_v41 = vpop.f32.mrb[26].mxu1  ;;  %v8768_v57 = vpop.f32.mrb[37].mxu0 }
 0x9e6   :  { %v7965_v12 = vadd.f32 %v7963_v0, %v7959_v22  ;;  %v7969_v40 = vmul.f32 %v7968_v33, %v7172_v44  ;;  %v8015_v15 = vadd.f32 %v8013_v56, %v8009_v32  ;;  %v8019_v35 = vmul.f32 %v8018_v1, %v7172_v44  ;;  %v8813_v18 = vpop.f32.mrb[27].mxu1 }
 0x9e7   :  { %v7840_v62 = vmul.f32 %v7838_v19, %v11775_v45  ;;  %v7890_v49 = vmul.f32 %v7888_v23, %v11775_v45  ;;  %v7871_v53 = vadd.f32 %v7869_v14, %v7865_v42  ;;  %v7921_v31 = vadd.f32 %v7919_v46, %v7915_v5 }
 0x9e8   :  { %v7940_v0 = vmul.f32 %v7938_v4, %v11775_v45  ;;  %v7990_v56 = vmul.f32 %v7988_v2, %v11775_v45  ;;  %v7971_v20 = vadd.f32 %v7969_v40, %v7965_v12  ;;  %v8021_v50 = vadd.f32 %v8019_v35, %v8015_v15  ;;  %v7318_v19 = vpop.f32.mrb[38].mxu0 }
 0x9e9   :  { %v7877_v22 = vadd.f32 %v7875_v39, %v7871_v53  ;;  %v7927_v32 = vadd.f32 %v7925_v7, %v7921_v31  ;;  %v7836_v23 = vmul.f32 %v7834_v34, %v7318_v19  ;;  %v7886_v44 = vmul.f32 %v7884_v29, %v7318_v19  ;;  %v8778_v42 = vpop.f32.mrb[39].mxu0 }
 0x9ea   :  { %v7977_v14 = vadd.f32 %v7975_v26, %v7971_v20  ;;  %v8027_v5 = vadd.f32 %v8025_v25, %v8021_v50  ;;  %v7936_v4 = vmul.f32 %v7934_v61, %v7318_v19  ;;  %v7986_v40 = vmul.f32 %v7984_v58, %v7318_v19 }
 0x9eb   :  { %v7881_v2 = vadd.f32 %v7880_v37, %v7877_v22  ;;  %v7931_v45 = vadd.f32 %v7930_v60, %v7927_v32  ;;  %v7842_v34 = vadd.f32 %v7840_v62, %v7836_v23  ;;  %v7892_v39 = vadd.f32 %v7890_v49, %v7886_v44 }
 0x9ec   :  { %v7981_v29 = vadd.f32 %v7980_v59, %v7977_v14  ;;  %v8031_v7 = vadd.f32 %v8030_v63, %v8027_v5  ;;  %v7942_v26 = vadd.f32 %v7940_v0, %v7936_v4  ;;  %v7992_v25 = vadd.f32 %v7990_v56, %v7986_v40  ;;  %v7464_v46 = vpop.f32.mrb[40].mxu0 }
 0x9ed   :  { %8033 = vst.msk [vmem:[#allocation14] sm:$0xff] %vm3921_vm10, %v7881_v2  ;;  %8034 = vst.msk [vmem:[#allocation14 + $0x8] sm:$0xff] %vm3921_vm10, %v7931_v45  ;;  %v7846_v61 = vmul.f32 %v7844_v17, %v7464_v46  ;;  %v7896_v58 = vmul.f32 %v7894_v16, %v7464_v46  ;;  %v7946_v57 = vmul.f32 %v7944_v13, %v7464_v46  ;;  %v8788_v15 = vpop.f32.mrb[41].mxu0 }
 0x9ee   :  { %v7996_v12 = vmul.f32 %v7994_v27, %v7464_v46  ;;  %v7852_v35 = vmul.f32 %v7850_v24, %v11793_v8  ;;  %v7902_v18 = vmul.f32 %v7900_v38, %v11793_v8  ;;  %8035 = vst.msk [vmem:[#allocation14 + $0x10] sm:$0xff] %vm3921_vm10, %v7981_v29  ;;  %8036 = vst.msk [vmem:[#allocation14 + $0x18] sm:$0xff] %vm3921_vm10, %v8031_v7 }
 0x9ef   :  { %v7848_v17 = vadd.f32 %v7846_v61, %v7842_v34  ;;  %v7898_v16 = vadd.f32 %v7896_v58, %v7892_v39  ;;  %v7948_v13 = vadd.f32 %v7946_v57, %v7942_v26  ;;  %v7952_v62 = vmul.f32 %v7950_v21, %v11793_v8 }
 0x9f0   :  { %v7998_v27 = vadd.f32 %v7996_v12, %v7992_v25  ;;  %v8002_v24 = vmul.f32 %v8000_v54, %v11793_v8  ;;  %v7610_v38 = vpop.f32.mrb[42].mxu0  ;;  %v7864_v54 = vmul.f32 %v7862_v43, %v11823_v30  ;;  %v7914_v8 = vmul.f32 %v7912_v3, %v11823_v30 }
 0x9f1   :  { %v7854_v49 = vadd.f32 %v7852_v35, %v7848_v17  ;;  %v7858_v53 = vmul.f32 %v7856_v10, %v7610_v38  ;;  %v7904_v31 = vadd.f32 %v7902_v18, %v7898_v16  ;;  %v7908_v0 = vmul.f32 %v7906_v11, %v7610_v38  ;;  %v8798_v56 = vpop.f32.mrb[43].mxu0 }
 0x9f2   :  { %v7954_v20 = vadd.f32 %v7952_v62, %v7948_v13  ;;  %v7958_v50 = vmul.f32 %v7956_v47, %v7610_v38  ;;  %v8004_v19 = vadd.f32 %v8002_v24, %v7998_v27  ;;  %v8008_v21 = vmul.f32 %v8006_v51, %v7610_v38 }
 0x9f3   :  { %v7860_v10 = vadd.f32 %v7858_v53, %v7854_v49  ;;  %v7910_v11 = vadd.f32 %v7908_v0, %v7904_v31  ;;  %v7964_v22 = vmul.f32 %v7962_v6, %v11823_v30  ;;  %v8014_v47 = vmul.f32 %v8012_v55, %v11823_v30 }
 0x9f4   :  { %v7960_v32 = vadd.f32 %v7958_v50, %v7954_v20  ;;  %v8010_v51 = vadd.f32 %v8008_v21, %v8004_v19  ;;  %v7756_v23 = vpop.f32.mrb[44].mxu0  ;;  %v7876_v55 = vmul.f32 %v7874_v9, %v11845_v41  ;;  %v7926_v30 = vmul.f32 %v7924_v52, %v11845_v41 }
 0x9f5   :  { %v7866_v43 = vadd.f32 %v7864_v54, %v7860_v10  ;;  %v7870_v44 = vmul.f32 %v7868_v36, %v7756_v23  ;;  %v7916_v3 = vadd.f32 %v7914_v8, %v7910_v11  ;;  %v7920_v42 = vmul.f32 %v7918_v48, %v7756_v23  ;;  %v8808_v14 = vpop.f32.mrb[45].mxu0 }
 0x9f6   :  { %v7966_v5 = vadd.f32 %v7964_v22, %v7960_v32  ;;  %v7970_v4 = vmul.f32 %v7968_v33, %v7756_v23  ;;  %v8016_v40 = vadd.f32 %v8014_v47, %v8010_v51  ;;  %v8020_v6 = vmul.f32 %v8018_v1, %v7756_v23 }
 0x9f7   :  { %v7872_v36 = vadd.f32 %v7870_v44, %v7866_v43  ;;  %v7922_v2 = vadd.f32 %v7920_v42, %v7916_v3  ;;  %v12180_v48 = vstv %s12178_s2  ;;  %v8026_v33 = vmul.f32 %v8024_v28, %v11845_v41 }
 0x9f8   :  { %v7976_v45 = vmul.f32 %v12180_v48, %v11845_v41  ;;  %v7972_v34 = vadd.f32 %v7970_v4, %v7966_v5  ;;  %v8022_v39 = vadd.f32 %v8020_v6, %v8016_v40 }
 0x9f9   :  { %v7878_v1 = vadd.f32 %v7876_v55, %v7872_v36  ;;  %v7928_v29 = vadd.f32 %v7926_v30, %v7922_v2 }
 0x9fa   :  { %v7978_v9 = vadd.f32 %v7976_v45, %v7972_v34  ;;  %v8028_v7 = vadd.f32 %v8026_v33, %v8022_v39 }
 0x9fb   :  { %v7882_v26 = vadd.f32 %v7880_v37, %v7878_v1  ;;  %v7932_v52 = vadd.f32 %v7930_v60, %v7928_v29 }
 0x9fc   :  { %v7982_v25 = vadd.f32 %v7980_v59, %v7978_v9  ;;  %v8032_v46 = vadd.f32 %v8030_v63, %v8028_v7 }
 0x9fd   :  { %8037 = vst.msk [vmem:[#allocation14 + $0x20] sm:$0xff] %vm3921_vm10, %v7882_v26  ;;  %8038 = vst.msk [vmem:[#allocation14 + $0x28] sm:$0xff] %vm3921_vm10, %v7932_v52 }
 0x9fe   :  { %8039 = vst.msk [vmem:[#allocation14 + $0x30] sm:$0xff] %vm3921_vm10, %v7982_v25  ;;  %8040 = vst.msk [vmem:[#allocation14 + $0x38] sm:$0xff] %vm3921_vm10, %v8032_v46 }
 0x9ff   :  { %9348 = shalt.err (!%p9345_p4)
}
 0xa00   :  { %s12181_s16 = sld [smem:[#allocation53_spill]] }
 0xa06   :  { %s9349_s21 = scalar_lea.hbm %s12181_s16, 1024 }
 0xa07   :  { %p9350_p5 = scmp.ne.s32.totalorder %s12181_s16, %s9349_s21  ;;  %p9353_p6 = scmp.lt.u32.totalorder %s9349_s21, %s12181_s16 }
 0xa09   :  { %p9355_p7 = pnand %p9353_p6, %p9350_p5 }
 0xa0b   :  { %9358 = shalt.err (!%p9355_p7)
}
 0xa0c   :  { %s12182_s5 = smov 8   ;;  %s12183_s27 = smov 128  }
 0xa0d   :  { %8052 = dma.vmem_to_hbm [thread:$0]  %s8047_s17, 1024, %s12181_s16, [#allocation4], %s12183_s27, %s12183_s27, %s12182_s5  }
 0xa0e   :  { %9369 = dma.done.wait [#allocation4], 1024  }
 0xa0f   :  { %9370 = vsyncadd [#allocation4], 4294966272 }
 0xa10   :  { %8056 = vsyncpa [#allocation3], 1 }
 0xa11   :  { %8057 = vsyncpa [#allocation7], 1 }
 0xa12   :  { %8058 = vsyncpa [#allocation11], 1 }
 0xa13   :  { %8059 = vsyncpa [#allocation4], 1 }
 0xa14   :  { %8060 = vsyncpa [#allocation5], 1 }
 0xa15   :  { %8061 = vsyncpa [#allocation13], 1 }

</bundles_post_ra>
